<compile_context>
chip_gen: v7x
topology: tpu7x:2x2x1
jax: 0.10.0
libtpu: 0.0.40
codegen_flags: <defaults>
</compile_context>

<pallas_src>
import functools

import jax
import jax.numpy as jnp
from jax.experimental import pallas as pl
from jax.experimental.pallas import tpu as pltpu


def _round_up(x, m):
    return ((x + m - 1) // m) * m


def _pad2d(x, rows, cols):
    return jnp.pad(x, ((0, rows - x.shape[0]), (0, cols - x.shape[1])))


# ----------------------------- Pallas kernel -----------------------------
def wdl_kernel(tb, b_valid,
               wide_in_ref, wide_w_ref, wide_b_ref,
               deep_in_ref, w1_ref, b1_ref, w2_ref, b2_ref,
               w3_ref, b3_ref, wo_ref, bo_ref, label_ref,
               y_ref, bce_ref):
    f32 = jnp.float32
    bf16 = jnp.bfloat16

    # --- Wide branch: Linear(D_wide -> 1) as a VPU multiply + lane reduction
    #     (a [TB, D] x [D, 1] MXU matmul would waste 255/256 of the lanes). ---
    wide_x = wide_in_ref[...].astype(f32)
    wide_out = (jnp.sum(wide_x * wide_w_ref[...], axis=-1, keepdims=True)
                + wide_b_ref[...])

    # --- Deep branch: 3 x (Linear + ReLU) on the MXU (bf16 in, f32 acc),
    #     1-column output head as a VPU reduction, then sigmoid. ---
    h = deep_in_ref[...]                                            # bf16
    h = jnp.maximum(jnp.dot(h, w1_ref[...],
                            preferred_element_type=f32) + b1_ref[...], 0.0)
    h = jnp.maximum(jnp.dot(h.astype(bf16), w2_ref[...],
                            preferred_element_type=f32) + b2_ref[...], 0.0)
    h = jnp.maximum(jnp.dot(h.astype(bf16), w3_ref[...],
                            preferred_element_type=f32) + b3_ref[...], 0.0)
    deep_logit = jnp.sum(h * wo_ref[...], axis=-1, keepdims=True) + bo_ref[...]
    deep = jax.nn.sigmoid(deep_logit)

    # --- Combine.  The reference really nests sigmoids:
    #     y = sigmoid(wide_out + sigmoid(deep_logit)). ---
    y = jax.nn.sigmoid(wide_out + deep)
    y_ref[...] = y

    # --- BCE per-row terms (PyTorch BCELoss clamps log terms at -100).
    #     Padded batch rows are masked to 0; the wrapper does sum / B. ---
    lbl = label_ref[...]
    log_p = jnp.maximum(jnp.log(y), -100.0)
    log_1mp = jnp.maximum(jnp.log(1.0 - y), -100.0)
    bce = -(lbl * log_p + (1.0 - lbl) * log_1mp)
    row = (pl.program_id(0) * tb
           + jax.lax.broadcasted_iota(jnp.int32, (tb, 1), 0))
    bce_ref[...] = jnp.where(row < b_valid, bce, 0.0)


# ------------------------------ wrapper ------------------------------
def wdl_forward(params, x_sparse, x_dense, label, *, tile_b=512):
    """x_sparse: [B, n_sparse] int32 ids; x_dense: [B, n_dense] f32; label: [B] f32."""
    B = x_sparse.shape[0]
    n_sparse = x_sparse.shape[1]

    # ---- Embedding gathers / concat: cheap glue, stays in JAX. ----
    # TODO(synk): fuse into the kernel via PrefetchScalarGridSpec at production sizes.
    deep_embs = [params["emb_deep"][i][x_sparse[:, i]] for i in range(n_sparse)]
    wide_embs = [params["emb_wide"][i][x_sparse[:, i]] for i in range(n_sparse)]
    deep_in = jnp.concatenate(deep_embs + [x_dense], axis=1)   # [B, D_deep]
    wide_in = jnp.concatenate(wide_embs + [x_dense], axis=1)   # [B, D_wide]

    d_deep, d_wide = deep_in.shape[1], wide_in.shape[1]
    h1, h2, h3 = (params["w1"].shape[1], params["w2"].shape[1],
                  params["w3"].shape[1])

    # ---- Pad feature / hidden dims to multiples of 128 (lane-dense MXU / vld)
    #      and pad the batch to a multiple of the batch tile. ----
    dd_p, dw_p = _round_up(d_deep, 128), _round_up(d_wide, 128)
    h1_p, h2_p, h3_p = (_round_up(h1, 128), _round_up(h2, 128),
                        _round_up(h3, 128))
    b_pad = _round_up(B, tile_b)
    num_tiles = b_pad // tile_b

    bf16, f32 = jnp.bfloat16, jnp.float32
    deep_in_p = _pad2d(deep_in.astype(f32), b_pad, dd_p).astype(bf16)
    wide_in_p = _pad2d(wide_in.astype(f32), b_pad, dw_p).astype(bf16)
    label_p = _pad2d(label.reshape(-1, 1).astype(f32), b_pad, 1)

    w1 = _pad2d(params["w1"], dd_p, h1_p).astype(bf16)
    w2 = _pad2d(params["w2"], h1_p, h2_p).astype(bf16)
    w3 = _pad2d(params["w3"], h2_p, h3_p).astype(bf16)
    b1 = _pad2d(params["b1"], 1, h1_p)
    b2 = _pad2d(params["b2"], 1, h2_p)
    b3 = _pad2d(params["b3"], 1, h3_p)
    wo_row = _pad2d(params["wo"].T, 1, h3_p)           # [1, H3p]  f32
    wide_w_row = _pad2d(params["wide_w"].T, 1, dw_p)   # [1, Dwp]  f32
    wide_b = params["wide_b"]                          # [1, 1]    f32
    bo = params["bo"]                                  # [1, 1]    f32

    tiled = lambda shape: pl.BlockSpec(shape, lambda i: (i, 0))      # per batch tile
    resident = lambda shape: pl.BlockSpec(shape, lambda i: (0, 0))   # stays in VMEM

    flops = 2 * b_pad * (dd_p * h1_p + h1_p * h2_p + h2_p * h3_p + h3_p + dw_p)
    bytes_accessed = (
        (deep_in_p.size + wide_in_p.size) * 2            # bf16 activations
        + (w1.size + w2.size + w3.size) * 2              # bf16 weights
        + (b1.size + b2.size + b3.size + wo_row.size
           + wide_w_row.size + wide_b.size + bo.size) * 4
        + label_p.size * 4 + 2 * b_pad * 4)              # label + y + bce

    y_pad, bce_pad = pl.pallas_call(
        functools.partial(wdl_kernel, tile_b, B),
        out_shape=(jax.ShapeDtypeStruct((b_pad, 1), f32),
                   jax.ShapeDtypeStruct((b_pad, 1), f32)),
        grid=(num_tiles,),
        in_specs=[
            tiled((tile_b, dw_p)),        # wide_in
            resident((1, dw_p)),          # wide_w  (row)
            resident((1, 1)),             # wide_b
            tiled((tile_b, dd_p)),        # deep_in
            resident((dd_p, h1_p)),       # w1
            resident((1, h1_p)),          # b1
            resident((h1_p, h2_p)),       # w2
            resident((1, h2_p)),          # b2
            resident((h2_p, h3_p)),       # w3
            resident((1, h3_p)),          # b3
            resident((1, h3_p)),          # wo (row)
            resident((1, 1)),             # bo
            tiled((tile_b, 1)),           # label
        ],
        out_specs=(tiled((tile_b, 1)), tiled((tile_b, 1))),
        compiler_params=pltpu.CompilerParams(
            dimension_semantics=("parallel",),        # shard batch tiles (v7x: 2 TCs)
            vmem_limit_bytes=32 * 1024 * 1024),
        cost_estimate=pl.CostEstimate(
            flops=int(flops),
            transcendentals=int(4 * b_pad),
            bytes_accessed=int(bytes_accessed)),
    )(wide_in_p, wide_w_row, wide_b, deep_in_p, w1, b1, w2, b2,
      w3, b3, wo_row, bo, label_p)

    y_pred = y_pad[:B]
    loss = jnp.sum(bce_pad) / B     # padded rows already masked to 0 in-kernel
    return {"y_pred": y_pred, "loss": loss}


# --------------------------- parameter init ---------------------------
def init_params(key, vocab_sizes, n_dense, emb_dim, hidden_units):
    n_sparse = len(vocab_sizes)
    d_deep = n_sparse * emb_dim + n_dense
    d_wide = n_sparse * 1 + n_dense

    keys = jax.random.split(key, 32)
    ki = iter(range(32))
    nrm = lambda shape: 0.1 * jax.random.normal(keys[next(ki)], shape, dtype=jnp.float32)

    params = {
        "emb_deep": [nrm((v, emb_dim)) for v in vocab_sizes],
        "emb_wide": [nrm((v, 1)) for v in vocab_sizes],
        "wide_w": nrm((d_wide, 1)),
        "wide_b": nrm((1, 1)),
    }
    dims = [d_deep] + list(hidden_units)
    ws, bs = [], []
    for i in range(len(hidden_units)):
        ws.append(nrm((dims[i], dims[i + 1])))
        bs.append(nrm((1, dims[i + 1])))
    params["w1"], params["w2"], params["w3"] = ws
    params["b1"], params["b2"], params["b3"] = bs
    params["wo"] = nrm((hidden_units[-1], 1))
    params["bo"] = nrm((1, 1))
    return params


# -------------------------------- main --------------------------------
if __name__ == "__main__":
    B = 8
    vocab_sizes = [10, 20, 30]     # 3 sparse features
    n_dense = 2                    # 2 dense features
    emb_dim = 8                    # (default is 40; small synthetic size)
    hidden_units = [32, 32, 32]    # (default is [64,64,64]; small synthetic size)

    key = jax.random.PRNGKey(0)
    k_par, k_sp, k_de, k_lb = jax.random.split(key, 4)

    params = init_params(k_par, vocab_sizes, n_dense, emb_dim, hidden_units)

    x_sparse = jnp.stack(
        [jax.random.randint(jax.random.fold_in(k_sp, i), (B,), 0, v, dtype=jnp.int32)
         for i, v in enumerate(vocab_sizes)], axis=1)                 # [B, 3]
    x_dense = jax.random.uniform(k_de, (B, n_dense), dtype=jnp.float32)  # [B, 2]
    label = jax.random.bernoulli(k_lb, 0.5, (B,)).astype(jnp.float32)    # [B]

    out = wdl_forward(params, x_sparse, x_dense, label)
    jax.block_until_ready(out["y_pred"])
    jax.block_until_ready(out["loss"])
    assert out["y_pred"].shape == (B, 1)
    assert out["loss"].shape == ()
    assert bool(jnp.all(jnp.isfinite(out["y_pred"])))
    assert bool(jnp.isfinite(out["loss"]))
    print("KERNEL_OK")
</pallas_src>

<mosaic_0001>
module attributes {stable_mosaic.version = 11 : i64} {
  func.func @wdl_kernel(%arg0: i32, %arg1: memref<512x128xbf16, #tpu.memory_space<vmem>>, %arg2: memref<1x128xf32, #tpu.memory_space<vmem>>, %arg3: memref<1x1xf32, #tpu.memory_space<vmem>>, %arg4: memref<512x128xbf16, #tpu.memory_space<vmem>>, %arg5: memref<128x128xbf16, #tpu.memory_space<vmem>>, %arg6: memref<1x128xf32, #tpu.memory_space<vmem>>, %arg7: memref<128x128xbf16, #tpu.memory_space<vmem>>, %arg8: memref<1x128xf32, #tpu.memory_space<vmem>>, %arg9: memref<128x128xbf16, #tpu.memory_space<vmem>>, %arg10: memref<1x128xf32, #tpu.memory_space<vmem>>, %arg11: memref<1x128xf32, #tpu.memory_space<vmem>>, %arg12: memref<1x1xf32, #tpu.memory_space<vmem>>, %arg13: memref<512x1xf32, #tpu.memory_space<vmem>>, %arg14: memref<512x1xf32, #tpu.memory_space<vmem>>, %arg15: memref<512x1xf32, #tpu.memory_space<vmem>>) attributes {dimension_semantics = [#tpu.dimension_semantics<parallel>], iteration_bounds = array<i64: 1>, scalar_prefetch = 0 : i64, scratch_operands = 0 : i64, tpu.core_type = #tpu.core_type<tc>, window_params = [{transform_indices = @transform_0, window_bounds = array<i64: 512, 128>}, {pipeline_mode = #tpu.pipeline_mode<synchronous>, transform_indices = @transform_1, window_bounds = array<i64: 1, 128>}, {pipeline_mode = #tpu.pipeline_mode<synchronous>, transform_indices = @transform_2, window_bounds = array<i64: 1, 1>}, {transform_indices = @transform_3, window_bounds = array<i64: 512, 128>}, {pipeline_mode = #tpu.pipeline_mode<synchronous>, transform_indices = @transform_4, window_bounds = array<i64: 128, 128>}, {pipeline_mode = #tpu.pipeline_mode<synchronous>, transform_indices = @transform_5, window_bounds = array<i64: 1, 128>}, {pipeline_mode = #tpu.pipeline_mode<synchronous>, transform_indices = @transform_6, window_bounds = array<i64: 128, 128>}, {pipeline_mode = #tpu.pipeline_mode<synchronous>, transform_indices = @transform_7, window_bounds = array<i64: 1, 128>}, {pipeline_mode = #tpu.pipeline_mode<synchronous>, transform_indices = @transform_8, window_bounds = array<i64: 128, 128>}, {pipeline_mode = #tpu.pipeline_mode<synchronous>, transform_indices = @transform_9, window_bounds = array<i64: 1, 128>}, {pipeline_mode = #tpu.pipeline_mode<synchronous>, transform_indices = @transform_10, window_bounds = array<i64: 1, 128>}, {pipeline_mode = #tpu.pipeline_mode<synchronous>, transform_indices = @transform_11, window_bounds = array<i64: 1, 1>}, {transform_indices = @transform_12, window_bounds = array<i64: 512, 1>}, {transform_indices = @transform_13, window_bounds = array<i64: 512, 1>}, {transform_indices = @transform_14, window_bounds = array<i64: 512, 1>}]} {
    %c0 = arith.constant 0 : index
    %c0_0 = arith.constant 0 : index
    %0 = vector.load %arg1[%c0, %c0_0] : memref<512x128xbf16, #tpu.memory_space<vmem>>, vector<512x128xbf16>
    %1 = arith.extf %0 : vector<512x128xbf16> to vector<512x128xf32>
    %c0_1 = arith.constant 0 : index
    %c0_2 = arith.constant 0 : index
    %2 = vector.load %arg2[%c0_1, %c0_2] : memref<1x128xf32, #tpu.memory_space<vmem>>, vector<1x128xf32>
    %3 = vector.broadcast %2 : vector<1x128xf32> to vector<512x128xf32>
    %4 = arith.mulf %1, %3 : vector<512x128xf32>
    %cst = arith.constant dense<0.000000e+00> : vector<512xf32>
    %5 = vector.multi_reduction <add>, %4, %cst [1] : vector<512x128xf32> to vector<512xf32>
    %6 = vector.shape_cast %5 : vector<512xf32> to vector<512x1xf32>
    %c0_3 = arith.constant 0 : index
    %c0_4 = arith.constant 0 : index
    %7 = vector.load %arg3[%c0_3, %c0_4] : memref<1x1xf32, #tpu.memory_space<vmem>>, vector<1x1xf32>
    %8 = vector.broadcast %7 : vector<1x1xf32> to vector<512x1xf32>
    %9 = arith.addf %6, %8 : vector<512x1xf32>
    %c0_5 = arith.constant 0 : index
    %c0_6 = arith.constant 0 : index
    %10 = vector.load %arg4[%c0_5, %c0_6] : memref<512x128xbf16, #tpu.memory_space<vmem>>, vector<512x128xbf16>
    %c0_7 = arith.constant 0 : index
    %c0_8 = arith.constant 0 : index
    %11 = vector.load %arg5[%c0_7, %c0_8] : memref<128x128xbf16, #tpu.memory_space<vmem>>, vector<128x128xbf16>
    %cst_9 = arith.constant dense<0.000000e+00> : vector<512x128xf32>
    %12 = tpu.matmul %10, %11, %cst_9 {dimension_numbers = #tpu.dot_dimension_numbers<[1], [0], [0], [1], [0, 0, 1, 1], [], []>} : vector<512x128xbf16>, vector<128x128xbf16>, vector<512x128xf32> -> vector<512x128xf32>
    %c0_10 = arith.constant 0 : index
    %c0_11 = arith.constant 0 : index
    %13 = vector.load %arg6[%c0_10, %c0_11] : memref<1x128xf32, #tpu.memory_space<vmem>>, vector<1x128xf32>
    %14 = vector.broadcast %13 : vector<1x128xf32> to vector<512x128xf32>
    %15 = arith.addf %12, %14 : vector<512x128xf32>
    %cst_12 = arith.constant 0.000000e+00 : f32
    %16 = vector.broadcast %cst_12 : f32 to vector<512x128xf32>
    %17 = arith.maximumf %15, %16 : vector<512x128xf32>
    %18 = arith.truncf %17 : vector<512x128xf32> to vector<512x128xbf16>
    %c0_13 = arith.constant 0 : index
    %c0_14 = arith.constant 0 : index
    %19 = vector.load %arg7[%c0_13, %c0_14] : memref<128x128xbf16, #tpu.memory_space<vmem>>, vector<128x128xbf16>
    %cst_15 = arith.constant dense<0.000000e+00> : vector<512x128xf32>
    %20 = tpu.matmul %18, %19, %cst_15 {dimension_numbers = #tpu.dot_dimension_numbers<[1], [0], [0], [1], [0, 0, 1, 1], [], []>} : vector<512x128xbf16>, vector<128x128xbf16>, vector<512x128xf32> -> vector<512x128xf32>
    %c0_16 = arith.constant 0 : index
    %c0_17 = arith.constant 0 : index
    %21 = vector.load %arg8[%c0_16, %c0_17] : memref<1x128xf32, #tpu.memory_space<vmem>>, vector<1x128xf32>
    %22 = vector.broadcast %21 : vector<1x128xf32> to vector<512x128xf32>
    %23 = arith.addf %20, %22 : vector<512x128xf32>
    %cst_18 = arith.constant 0.000000e+00 : f32
    %24 = vector.broadcast %cst_18 : f32 to vector<512x128xf32>
    %25 = arith.maximumf %23, %24 : vector<512x128xf32>
    %26 = arith.truncf %25 : vector<512x128xf32> to vector<512x128xbf16>
    %c0_19 = arith.constant 0 : index
    %c0_20 = arith.constant 0 : index
    %27 = vector.load %arg9[%c0_19, %c0_20] : memref<128x128xbf16, #tpu.memory_space<vmem>>, vector<128x128xbf16>
    %cst_21 = arith.constant dense<0.000000e+00> : vector<512x128xf32>
    %28 = tpu.matmul %26, %27, %cst_21 {dimension_numbers = #tpu.dot_dimension_numbers<[1], [0], [0], [1], [0, 0, 1, 1], [], []>} : vector<512x128xbf16>, vector<128x128xbf16>, vector<512x128xf32> -> vector<512x128xf32>
    %c0_22 = arith.constant 0 : index
    %c0_23 = arith.constant 0 : index
    %29 = vector.load %arg10[%c0_22, %c0_23] : memref<1x128xf32, #tpu.memory_space<vmem>>, vector<1x128xf32>
    %30 = vector.broadcast %29 : vector<1x128xf32> to vector<512x128xf32>
    %31 = arith.addf %28, %30 : vector<512x128xf32>
    %cst_24 = arith.constant 0.000000e+00 : f32
    %32 = vector.broadcast %cst_24 : f32 to vector<512x128xf32>
    %33 = arith.maximumf %31, %32 : vector<512x128xf32>
    %c0_25 = arith.constant 0 : index
    %c0_26 = arith.constant 0 : index
    %34 = vector.load %arg11[%c0_25, %c0_26] : memref<1x128xf32, #tpu.memory_space<vmem>>, vector<1x128xf32>
    %35 = vector.broadcast %34 : vector<1x128xf32> to vector<512x128xf32>
    %36 = arith.mulf %33, %35 : vector<512x128xf32>
    %cst_27 = arith.constant dense<0.000000e+00> : vector<512xf32>
    %37 = vector.multi_reduction <add>, %36, %cst_27 [1] : vector<512x128xf32> to vector<512xf32>
    %38 = vector.shape_cast %37 : vector<512xf32> to vector<512x1xf32>
    %c0_28 = arith.constant 0 : index
    %c0_29 = arith.constant 0 : index
    %39 = vector.load %arg12[%c0_28, %c0_29] : memref<1x1xf32, #tpu.memory_space<vmem>>, vector<1x1xf32>
    %40 = vector.broadcast %39 : vector<1x1xf32> to vector<512x1xf32>
    %41 = arith.addf %38, %40 : vector<512x1xf32>
    %42 = arith.negf %41 : vector<512x1xf32>
    %43 = math.exp %42 : vector<512x1xf32>
    %cst_30 = arith.constant 1.000000e+00 : f32
    %44 = vector.broadcast %cst_30 : f32 to vector<512x1xf32>
    %45 = arith.addf %44, %43 : vector<512x1xf32>
    %46 = arith.divf %44, %45 : vector<512x1xf32>
    %47 = arith.addf %9, %46 : vector<512x1xf32>
    %48 = arith.negf %47 : vector<512x1xf32>
    %49 = math.exp %48 : vector<512x1xf32>
    %cst_31 = arith.constant 1.000000e+00 : f32
    %50 = vector.broadcast %cst_31 : f32 to vector<512x1xf32>
    %51 = arith.addf %50, %49 : vector<512x1xf32>
    %52 = arith.divf %50, %51 : vector<512x1xf32>
    %c0_32 = arith.constant 0 : index
    %c0_33 = arith.constant 0 : index
    %53 = vector.load %arg14[%c0_32, %c0_33] : memref<512x1xf32, #tpu.memory_space<vmem>>, vector<512x1xf32>
    tpu.vector_store %arg14[%c0_32, %c0_33], %52 {strides = array<i32>} : memref<512x1xf32, #tpu.memory_space<vmem>>, vector<512x1xf32>,
    %c0_34 = arith.constant 0 : index
    %c0_35 = arith.constant 0 : index
    %54 = vector.load %arg13[%c0_34, %c0_35] : memref<512x1xf32, #tpu.memory_space<vmem>>, vector<512x1xf32>
    %55 = math.log %52 : vector<512x1xf32>
    %cst_36 = arith.constant -1.000000e+02 : f32
    %56 = vector.broadcast %cst_36 : f32 to vector<512x1xf32>
    %57 = arith.maximumf %55, %56 : vector<512x1xf32>
    %cst_37 = arith.constant 1.000000e+00 : f32
    %58 = vector.broadcast %cst_37 : f32 to vector<512x1xf32>
    %59 = arith.subf %58, %52 : vector<512x1xf32>
    %60 = math.log %59 : vector<512x1xf32>
    %cst_38 = arith.constant -1.000000e+02 : f32
    %61 = vector.broadcast %cst_38 : f32 to vector<512x1xf32>
    %62 = arith.maximumf %60, %61 : vector<512x1xf32>
    %63 = arith.mulf %54, %57 : vector<512x1xf32>
    %cst_39 = arith.constant 1.000000e+00 : f32
    %64 = vector.broadcast %cst_39 : f32 to vector<512x1xf32>
    %65 = arith.subf %64, %54 : vector<512x1xf32>
    %66 = arith.mulf %65, %62 : vector<512x1xf32>
    %67 = arith.addf %63, %66 : vector<512x1xf32>
    %cst_40 = arith.constant 0.000000e+00 : f32
    %68 = vector.broadcast %cst_40 : f32 to vector<512x1xf32>
    %69 = arith.subf %68, %67 : vector<512x1xf32>
    %c512_i32 = arith.constant 512 : i32
    %70 = arith.muli %arg0, %c512_i32 : i32
    %71 = tpu.iota {dimensions = array<i32: 0>} : vector<512x1xi32>
    %72 = vector.broadcast %70 : i32 to vector<512x1xi32>
    %73 = arith.addi %72, %71 : vector<512x1xi32>
    %c8_i32 = arith.constant 8 : i32
    %74 = vector.broadcast %c8_i32 : i32 to vector<512x1xi32>
    %75 = arith.cmpi slt, %73, %74 : vector<512x1xi32>
    %cst_41 = arith.constant 0.000000e+00 : f32
    %76 = vector.broadcast %cst_41 : f32 to vector<512x1xf32>
    %77 = arith.select %75, %69, %76 : vector<512x1xi1>, vector<512x1xf32>
    %c0_42 = arith.constant 0 : index
    %c0_43 = arith.constant 0 : index
    %78 = vector.load %arg15[%c0_42, %c0_43] : memref<512x1xf32, #tpu.memory_space<vmem>>, vector<512x1xf32>
    tpu.vector_store %arg15[%c0_42, %c0_43], %77 {strides = array<i32>} : memref<512x1xf32, #tpu.memory_space<vmem>>, vector<512x1xf32>,
    return
  }
  func.func @transform_0(%arg0: i32) -> (i32, i32) {
    %c0_i32 = arith.constant 0 : i32
    %c0_i32_0 = arith.constant 0 : i32
    return %arg0, %c0_i32 : i32, i32
  }
  func.func @transform_1(%arg0: i32) -> (i32, i32) {
    %c0_i32 = arith.constant 0 : i32
    %c0_i32_0 = arith.constant 0 : i32
    %c0_i32_1 = arith.constant 0 : i32
    return %c0_i32, %c0_i32_0 : i32, i32
  }
  func.func @transform_2(%arg0: i32) -> (i32, i32) {
    %c0_i32 = arith.constant 0 : i32
    %c0_i32_0 = arith.constant 0 : i32
    %c0_i32_1 = arith.constant 0 : i32
    return %c0_i32, %c0_i32_0 : i32, i32
  }
  func.func @transform_3(%arg0: i32) -> (i32, i32) {
    %c0_i32 = arith.constant 0 : i32
    %c0_i32_0 = arith.constant 0 : i32
    return %arg0, %c0_i32 : i32, i32
  }
  func.func @transform_4(%arg0: i32) -> (i32, i32) {
    %c0_i32 = arith.constant 0 : i32
    %c0_i32_0 = arith.constant 0 : i32
    %c0_i32_1 = arith.constant 0 : i32
    return %c0_i32, %c0_i32_0 : i32, i32
  }
  func.func @transform_5(%arg0: i32) -> (i32, i32) {
    %c0_i32 = arith.constant 0 : i32
    %c0_i32_0 = arith.constant 0 : i32
    %c0_i32_1 = arith.constant 0 : i32
    return %c0_i32, %c0_i32_0 : i32, i32
  }
  func.func @transform_6(%arg0: i32) -> (i32, i32) {
    %c0_i32 = arith.constant 0 : i32
    %c0_i32_0 = arith.constant 0 : i32
    %c0_i32_1 = arith.constant 0 : i32
    return %c0_i32, %c0_i32_0 : i32, i32
  }
  func.func @transform_7(%arg0: i32) -> (i32, i32) {
    %c0_i32 = arith.constant 0 : i32
    %c0_i32_0 = arith.constant 0 : i32
    %c0_i32_1 = arith.constant 0 : i32
    return %c0_i32, %c0_i32_0 : i32, i32
  }
  func.func @transform_8(%arg0: i32) -> (i32, i32) {
    %c0_i32 = arith.constant 0 : i32
    %c0_i32_0 = arith.constant 0 : i32
    %c0_i32_1 = arith.constant 0 : i32
    return %c0_i32, %c0_i32_0 : i32, i32
  }
  func.func @transform_9(%arg0: i32) -> (i32, i32) {
    %c0_i32 = arith.constant 0 : i32
    %c0_i32_0 = arith.constant 0 : i32
    %c0_i32_1 = arith.constant 0 : i32
    return %c0_i32, %c0_i32_0 : i32, i32
  }
  func.func @transform_10(%arg0: i32) -> (i32, i32) {
    %c0_i32 = arith.constant 0 : i32
    %c0_i32_0 = arith.constant 0 : i32
    %c0_i32_1 = arith.constant 0 : i32
    return %c0_i32, %c0_i32_0 : i32, i32
  }
  func.func @transform_11(%arg0: i32) -> (i32, i32) {
    %c0_i32 = arith.constant 0 : i32
    %c0_i32_0 = arith.constant 0 : i32
    %c0_i32_1 = arith.constant 0 : i32
    return %c0_i32, %c0_i32_0 : i32, i32
  }
  func.func @transform_12(%arg0: i32) -> (i32, i32) {
    %c0_i32 = arith.constant 0 : i32
    %c0_i32_0 = arith.constant 0 : i32
    return %arg0, %c0_i32 : i32, i32
  }
  func.func @transform_13(%arg0: i32) -> (i32, i32) {
    %c0_i32 = arith.constant 0 : i32
    %c0_i32_0 = arith.constant 0 : i32
    return %arg0, %c0_i32 : i32, i32
  }
  func.func @transform_14(%arg0: i32) -> (i32, i32) {
    %c0_i32 = arith.constant 0 : i32
    %c0_i32_0 = arith.constant 0 : i32
    return %arg0, %c0_i32 : i32, i32
  }
}

</mosaic_0001>

<bundles_post_ra>
// kernel: tpu_custom_call.1
= control target key start
LH: loop header
LB: loop body
LE: loop exit
PB: predicated region body
PF: predicated region fallthrough
CT: control target
= control target key end

     0   :  { %s7439_s0 = inlined_call_operand.vmem [shape: bf16[512,128], index: 0, kind: input, shape index: {}]   ;;  %s7440_s1 = inlined_call_operand.vmem [shape: f32[1,128], index: 1, kind: input, shape index: {}]   ;;  %s7441_s2 = inlined_call_operand.<no memory space> [shape: f32[1,1], index: 2, kind: input, shape index: {}]   ;;  %s7442_s3 = inlined_call_operand.vmem [shape: bf16[512,128], index: 3, kind: input, shape index: {}]   ;;  %s7443_s4 = inlined_call_operand.hbm [shape: bf16[128,128], index: 4, kind: input, shape index: {}]   ;;  %s7444_s5 = inlined_call_operand.vmem [shape: f32[1,128], index: 5, kind: input, shape index: {}]   ;;  %s7445_s6 = inlined_call_operand.hbm [shape: bf16[128,128], index: 6, kind: input, shape index: {}]   ;;  %s7446_s7 = inlined_call_operand.vmem [shape: f32[1,128], index: 7, kind: input, shape index: {}]   ;;  %s7447_s8 = inlined_call_operand.hbm [shape: bf16[128,128], index: 8, kind: input, shape index: {}]   ;;  %s7448_s9 = inlined_call_operand.vmem [shape: f32[1,128], index: 9, kind: input, shape index: {}]   ;;  %s7449_s10 = inlined_call_operand.vmem [shape: f32[1,128], index: 10, kind: input, shape index: {}]   ;;  %s7450_s12 = inlined_call_operand.vmem [shape: f32[512,1], index: 12, kind: input, shape index: {}]   ;;  %s7451_s13 = inlined_call_operand.vmem [shape: f32[512,1], index: 13, kind: output, shape index: {0}]   ;;  %s7452_s14 = inlined_call_operand.vmem [shape: f32[512,1], index: 14, kind: output, shape index: {1}]   ;;  %s7453_s11 = inlined_call_operand.<no memory space> [shape: f32[1,1], index: 11, kind: input, shape index: {}]  }
   0x1   :  { %v20_v0 = vstv %s7441_s2  ;;  %v22_v1 = vstv %s7453_s11 }
   0x2   :  { %21 = vst [vmem:[#allocation2] sm:$0x1] %v20_v0  ;;  %23 = vst [vmem:[#allocation3] sm:$0x1] %v22_v1 }
   0x3   :  { %24 = vsyncpa [#allocation5], 0 }
   0x4   :  { %25 = vsyncpa [#allocation7], 0  ;;  %s5791_s17 = smov [#allocation6]   ;;  %s5792_s19 = smov [#allocation4]  }
   0x5   :  { %s53_s18 = sshll.u32 %s5791_s17, 4  ;;  %s39_s20 = sshll.u32 %s5792_s19, 4  ;;  %s54_s18 = int_to_ptr.vmem [resolvable:$true] %s53_s18  ;;  %s5878_s20 = int_to_ptr.vmem [resolvable:$true] %s39_s20 }
   0x6   :  { %s5721_s23 = scalar_lea.hbm %s7445_s6, 1024 }
   0x7   :  { %p5722_p0 = scmp.ne.s32.totalorder %s7445_s6, %s5721_s23  ;;  %p5725_p1 = scmp.lt.u32.totalorder %s5721_s23, %s7445_s6 }
   0x9   :  { %p5727_p2 = pnand %p5725_p1, %p5722_p0 }
   0xb   :  { %5730 = shalt.err (!%p5727_p2)
}
   0xc   :  { %s5731_s26 = scalar_lea.vmem %s54_s18, 1024  ;;  %p5736_p4 = scmp.lt.s32.totalorder %s54_s18, %s54_s18 }
   0xd   :  { %p5732_p3 = scmp.ne.s32.totalorder %s54_s18, %s5731_s26  ;;  %p5737_p5 = scmp.lt.s32.totalorder %s5731_s26, %s5731_s26 }
   0xf   :  { %p5738_p6 = por %p5737_p5, %p5736_p4 }
  0x11   :  { %p5739_p7 = pnand %p5738_p6, %p5732_p3 }
  0x13   :  { %5742 = shalt.err (!%p5739_p7)
}
  0x14   :  { %s5793_s27 = smov 64   ;;  %s5794_s28 = smov 4  }
  0x15   :  { %59 = dma.hbm_to_vmem [thread:$0]  %s7445_s6, 1024, %s54_s18, [#allocation7], %s5793_s27, %s5793_s27, %s5794_s28  }
  0x16   :  { %s5743_s17 = scalar_lea.hbm %s7443_s4, 1024 }
  0x17   :  { %p5744_p8 = scmp.ne.s32.totalorder %s7443_s4, %s5743_s17  ;;  %p5747_p9 = scmp.lt.u32.totalorder %s5743_s17, %s7443_s4 }
  0x19   :  { %p5749_p10 = pnand %p5747_p9, %p5744_p8 }
  0x1b   :  { %5752 = shalt.err (!%p5749_p10)
}
  0x1c   :  { %s5753_s2 = scalar_lea.vmem %s5878_s20, 1024  ;;  %p5758_p12 = scmp.lt.s32.totalorder %s5878_s20, %s5878_s20 }
  0x1d   :  { %p5754_p11 = scmp.ne.s32.totalorder %s5878_s20, %s5753_s2  ;;  %p5759_p13 = scmp.lt.s32.totalorder %s5753_s2, %s5753_s2 }
  0x1f   :  { %p5760_p0 = por %p5759_p13, %p5758_p12 }
  0x21   :  { %p5761_p1 = pnand %p5760_p0, %p5754_p11 }
  0x23   :  { %5764 = shalt.err (!%p5761_p1)
}
  0x24   :  { %45 = dma.hbm_to_vmem [thread:$0]  %s7443_s4, 1024, %s5878_s20, [#allocation5], %s5793_s27, %s5793_s27, %s5794_s28  }
  0x25   :  { %s5795_s24 = smov [#allocation8]   ;;  %s5765_s29 = scalar_lea.hbm %s7447_s8, 1024 }
  0x26   :  { %s67_s11 = sshll.u32 %s5795_s24, 4  ;;  %p5766_p2 = scmp.ne.s32.totalorder %s7447_s8, %s5765_s29  ;;  %s68_s11 = int_to_ptr.vmem [resolvable:$true] %s67_s11 }
  0x27   :  { %p5769_p3 = scmp.lt.u32.totalorder %s5765_s29, %s7447_s8 }
  0x29   :  { %p5771_p4 = pnand %p5769_p3, %p5766_p2 }
  0x2b   :  { %5774 = shalt.err (!%p5771_p4)
}
  0x2c   :  { %s5775_s19 = scalar_lea.vmem %s68_s11, 1024  ;;  %p5780_p6 = scmp.lt.s32.totalorder %s68_s11, %s68_s11 }
  0x2d   :  { %p5776_p5 = scmp.ne.s32.totalorder %s68_s11, %s5775_s19  ;;  %p5781_p7 = scmp.lt.s32.totalorder %s5775_s19, %s5775_s19 }
  0x2f   :  { %p5782_p8 = por %p5781_p7, %p5780_p6 }
  0x31   :  { %p5783_p9 = pnand %p5782_p8, %p5776_p5 }
  0x33   :  { %5786 = shalt.err (!%p5783_p9)
}
  0x34   :  { %73 = dma.hbm_to_vmem [thread:$0]  %s7447_s8, 1024, %s68_s11, [#allocation7], %s5793_s27, %s5793_s27, %s5794_s28  }
  0x35   :  { %5787 = dma.done.wait [#allocation5], 1024  }
  0x36   :  { %5788 = vsyncadd [#allocation5], 4294966272 }
  0x37   :  { %5789 = dma.done.wait [#allocation7], 2048  }
  0x38   :  { %5790 = vsyncadd [#allocation7], 4294965248  ;;  %vm3184_vm0 = vcmask 7168   ;;  %v5796_v2 = vmov 0.0   ;;  %v5146_v3 = vld [vmem:[#allocation4] sm:$0xff]   ;;  %v5147_v4 = vld [vmem:[#allocation4 + $0x8] sm:$0xff]  }
  0x39   :  { %4341 = vst.msk [vmem:[%s7452_s14 + $0x8] sm:$0xff] %vm3184_vm0, %v5796_v2  ;;  %4342 = vst.msk [vmem:[%s7452_s14 + $0x10] sm:$0xff] %vm3184_vm0, %v5796_v2  ;;  %4884 = vmatprep.subr.bf16.mxu0 %v5146_v3  ;;  %5124 = vmatprep.subr.bf16.mxu1 %v5146_v3  ;;  %v5148_v5 = vld [vmem:[#allocation4 + $0x10] sm:$0xff]   ;;  %v5149_v6 = vld [vmem:[#allocation4 + $0x18] sm:$0xff]  }
  0x3a   :  { %4343 = vst.msk [vmem:[%s7452_s14 + $0x18] sm:$0xff] %vm3184_vm0, %v5796_v2  ;;  %4344 = vst.msk [vmem:[%s7452_s14 + $0x20] sm:$0xff] %vm3184_vm0, %v5796_v2  ;;  %4885 = vmatpush3.bf16.msra.mxu0 %v5146_v3  ;;  %5132 = vmatpush3.bf16.msra.mxu1 %v5146_v3  ;;  %v5154_v7 = vld [vmem:[%s7442_s3] sm:$0xff]   ;;  %v5151_v9 = vld [vmem:[#allocation4 + $0x28] sm:$0xff]  }
  0x3b   :  { %4345 = vst.msk [vmem:[%s7452_s14 + $0x28] sm:$0xff] %vm3184_vm0, %v5796_v2  ;;  %4346 = vst.msk [vmem:[%s7452_s14 + $0x30] sm:$0xff] %vm3184_vm0, %v5796_v2  ;;  %4886 = vmatprep.subr.bf16.mxu0 %v5147_v4  ;;  %5125 = vmatprep.subr.bf16.mxu1 %v5147_v4  ;;  %v5150_v8 = vld [vmem:[#allocation4 + $0x20] sm:$0xff]   ;;  %v5152_v10 = vld [vmem:[#allocation4 + $0x30] sm:$0xff]  }
  0x3c   :  { %4347 = vst.msk [vmem:[%s7452_s14 + $0x38] sm:$0xff] %vm3184_vm0, %v5796_v2  ;;  %4348 = vst.msk [vmem:[%s7452_s14 + $0x40] sm:$0xff] %vm3184_vm0, %v5796_v2  ;;  %4900 = vmatprep.mubr.bf16.mxu0 %v5154_v7  ;;  %v5153_v11 = vld [vmem:[#allocation4 + $0x38] sm:$0xff]   ;;  %v5155_v13 = vld [vmem:[%s7442_s3 + $0x8] sm:$0xff]  }
  0x3d   :  { %4349 = vst.msk [vmem:[%s7452_s14 + $0x48] sm:$0xff] %vm3184_vm0, %v5796_v2  ;;  %4350 = vst.msk [vmem:[%s7452_s14 + $0x50] sm:$0xff] %vm3184_vm0, %v5796_v2  ;;  %v5170_v12 = vld [vmem:[%s7442_s3 + $0x80] sm:$0xff]   ;;  %v5156_v14 = vld [vmem:[%s7442_s3 + $0x10] sm:$0xff]  }
  0x3e   :  { %4351 = vst.msk [vmem:[%s7452_s14 + $0x58] sm:$0xff] %vm3184_vm0, %v5796_v2  ;;  %4352 = vst.msk [vmem:[%s7452_s14 + $0x60] sm:$0xff] %vm3184_vm0, %v5796_v2  ;;  %4887 = vmatpush3.bf16.msra.mxu0 %v5147_v4  ;;  %5133 = vmatpush3.bf16.msra.mxu1 %v5147_v4  ;;  %v5171_v15 = vld [vmem:[%s7442_s3 + $0x88] sm:$0xff]   ;;  %v5172_v16 = vld [vmem:[%s7442_s3 + $0x90] sm:$0xff]  }
  0x3f   :  { %4353 = vst.msk [vmem:[%s7452_s14 + $0x68] sm:$0xff] %vm3184_vm0, %v5796_v2  ;;  %4354 = vst.msk [vmem:[%s7452_s14 + $0x70] sm:$0xff] %vm3184_vm0, %v5796_v2  ;;  %4888 = vmatprep.subr.bf16.mxu0 %v5148_v5  ;;  %5126 = vmatprep.subr.bf16.mxu1 %v5148_v5  ;;  %v5157_v17 = vld [vmem:[%s7442_s3 + $0x18] sm:$0xff]   ;;  %v5158_v18 = vld [vmem:[%s7442_s3 + $0x20] sm:$0xff]  }
  0x40   :  { %4355 = vst.msk [vmem:[%s7452_s14 + $0x78] sm:$0xff] %vm3184_vm0, %v5796_v2  ;;  %4356 = vst.msk [vmem:[%s7452_s14 + $0x80] sm:$0xff] %vm3184_vm0, %v5796_v2  ;;  %4932 = vmatprep.mubr.bf16.mxu1 %v5170_v12  ;;  %v5173_v19 = vld [vmem:[%s7442_s3 + $0x98] sm:$0xff]   ;;  %v5174_v20 = vld [vmem:[%s7442_s3 + $0xa0] sm:$0xff]  }
  0x41   :  { %4357 = vst.msk [vmem:[%s7452_s14 + $0x88] sm:$0xff] %vm3184_vm0, %v5796_v2  ;;  %4358 = vst.msk [vmem:[%s7452_s14 + $0x90] sm:$0xff] %vm3184_vm0, %v5796_v2  ;;  %v5186_v21 = vld [vmem:[#allocation6] sm:$0xff]   ;;  %v5187_v22 = vld [vmem:[#allocation6 + $0x8] sm:$0xff]  }
  0x42   :  { %4359 = vst.msk [vmem:[%s7452_s14 + $0x98] sm:$0xff] %vm3184_vm0, %v5796_v2  ;;  %4360 = vst.msk [vmem:[%s7452_s14 + $0xa0] sm:$0xff] %vm3184_vm0, %v5796_v2  ;;  %4889 = vmatpush3.bf16.msra.mxu0 %v5148_v5  ;;  %5134 = vmatpush3.bf16.msra.mxu1 %v5148_v5  ;;  %v5159_v23 = vld [vmem:[%s7442_s3 + $0x28] sm:$0xff]   ;;  %v5160_v25 = vld [vmem:[%s7442_s3 + $0x30] sm:$0xff]  }
  0x43   :  { %4361 = vst.msk [vmem:[%s7452_s14 + $0xa8] sm:$0xff] %vm3184_vm0, %v5796_v2  ;;  %4362 = vst.msk [vmem:[%s7452_s14 + $0xb0] sm:$0xff] %vm3184_vm0, %v5796_v2  ;;  %4890 = vmatprep.subr.bf16.mxu0 %v5149_v6  ;;  %5127 = vmatprep.subr.bf16.mxu1 %v5149_v6  ;;  %v5175_v24 = vld [vmem:[%s7442_s3 + $0xa8] sm:$0xff]   ;;  %v5176_v26 = vld [vmem:[%s7442_s3 + $0xb0] sm:$0xff]  }
  0x44   :  { %4363 = vst.msk [vmem:[%s7452_s14 + $0xb8] sm:$0xff] %vm3184_vm0, %v5796_v2  ;;  %4364 = vst.msk [vmem:[%s7452_s14 + $0xc0] sm:$0xff] %vm3184_vm0, %v5796_v2  ;;  %v5188_v27 = vld [vmem:[#allocation6 + $0x10] sm:$0xff]   ;;  %v5189_v28 = vld [vmem:[#allocation6 + $0x18] sm:$0xff]  }
  0x45   :  { %4365 = vst.msk [vmem:[%s7452_s14 + $0xc8] sm:$0xff] %vm3184_vm0, %v5796_v2  ;;  %4366 = vst.msk [vmem:[%s7452_s14 + $0xd0] sm:$0xff] %vm3184_vm0, %v5796_v2  ;;  %v5161_v29 = vld [vmem:[%s7442_s3 + $0x38] sm:$0xff]   ;;  %v5162_v31 = vld [vmem:[%s7442_s3 + $0x40] sm:$0xff]  }
  0x46   :  { %4367 = vst.msk [vmem:[%s7452_s14 + $0xd8] sm:$0xff] %vm3184_vm0, %v5796_v2  ;;  %4368 = vst.msk [vmem:[%s7452_s14 + $0xe0] sm:$0xff] %vm3184_vm0, %v5796_v2  ;;  %4891 = vmatpush3.bf16.msra.mxu0 %v5149_v6  ;;  %5135 = vmatpush3.bf16.msra.mxu1 %v5149_v6  ;;  %v5177_v30 = vld [vmem:[%s7442_s3 + $0xb8] sm:$0xff]   ;;  %v5178_v32 = vld [vmem:[%s7442_s3 + $0xc0] sm:$0xff]  }
  0x47   :  { %4369 = vst.msk [vmem:[%s7452_s14 + $0xe8] sm:$0xff] %vm3184_vm0, %v5796_v2  ;;  %4370 = vst.msk [vmem:[%s7452_s14 + $0xf0] sm:$0xff] %vm3184_vm0, %v5796_v2  ;;  %4892 = vmatprep.subr.bf16.mxu0 %v5150_v8  ;;  %5128 = vmatprep.subr.bf16.mxu1 %v5150_v8  ;;  %v5190_v33 = vld [vmem:[#allocation6 + $0x20] sm:$0xff]   ;;  %v5191_v34 = vld [vmem:[#allocation6 + $0x28] sm:$0xff]  }
  0x48   :  { %4371 = vst.msk [vmem:[%s7452_s14 + $0xf8] sm:$0xff] %vm3184_vm0, %v5796_v2  ;;  %4372 = vst.msk [vmem:[%s7452_s14 + $0x100] sm:$0xff] %vm3184_vm0, %v5796_v2  ;;  %v5163_v35 = vld [vmem:[%s7442_s3 + $0x48] sm:$0xff]   ;;  %v5164_v37 = vld [vmem:[%s7442_s3 + $0x50] sm:$0xff]  }
  0x49   :  { %4373 = vst.msk [vmem:[%s7452_s14 + $0x108] sm:$0xff] %vm3184_vm0, %v5796_v2  ;;  %4374 = vst.msk [vmem:[%s7452_s14 + $0x110] sm:$0xff] %vm3184_vm0, %v5796_v2  ;;  %v5179_v36 = vld [vmem:[%s7442_s3 + $0xc8] sm:$0xff]   ;;  %v5180_v38 = vld [vmem:[%s7442_s3 + $0xd0] sm:$0xff]  }
  0x4a   :  { %4375 = vst.msk [vmem:[%s7452_s14 + $0x118] sm:$0xff] %vm3184_vm0, %v5796_v2  ;;  %4376 = vst.msk [vmem:[%s7452_s14 + $0x120] sm:$0xff] %vm3184_vm0, %v5796_v2  ;;  %4893 = vmatpush3.bf16.msra.mxu0 %v5150_v8  ;;  %5136 = vmatpush3.bf16.msra.mxu1 %v5150_v8  ;;  %v5192_v39 = vld [vmem:[#allocation6 + $0x30] sm:$0xff]   ;;  %v5166_v42 = vld [vmem:[%s7442_s3 + $0x60] sm:$0xff]  }
  0x4b   :  { %4377 = vst.msk [vmem:[%s7452_s14 + $0x128] sm:$0xff] %vm3184_vm0, %v5796_v2  ;;  %4378 = vst.msk [vmem:[%s7452_s14 + $0x130] sm:$0xff] %vm3184_vm0, %v5796_v2  ;;  %4894 = vmatprep.subr.bf16.mxu0 %v5151_v9  ;;  %5129 = vmatprep.subr.bf16.mxu1 %v5151_v9  ;;  %v5165_v40 = vld [vmem:[%s7442_s3 + $0x58] sm:$0xff]   ;;  %v5182_v43 = vld [vmem:[%s7442_s3 + $0xe0] sm:$0xff]  }
  0x4c   :  { %4379 = vst.msk [vmem:[%s7452_s14 + $0x138] sm:$0xff] %vm3184_vm0, %v5796_v2  ;;  %4380 = vst.msk [vmem:[%s7452_s14 + $0x140] sm:$0xff] %vm3184_vm0, %v5796_v2  ;;  %v5181_v41 = vld [vmem:[%s7442_s3 + $0xd8] sm:$0xff]   ;;  %v5167_v44 = vld [vmem:[%s7442_s3 + $0x68] sm:$0xff]  }
  0x4d   :  { %4381 = vst.msk [vmem:[%s7452_s14 + $0x148] sm:$0xff] %vm3184_vm0, %v5796_v2  ;;  %4382 = vst.msk [vmem:[%s7452_s14 + $0x150] sm:$0xff] %vm3184_vm0, %v5796_v2  ;;  %v5183_v45 = vld [vmem:[%s7442_s3 + $0xe8] sm:$0xff]   ;;  %v5168_v46 = vld [vmem:[%s7442_s3 + $0x70] sm:$0xff]  }
  0x4e   :  { %4383 = vst.msk [vmem:[%s7452_s14 + $0x158] sm:$0xff] %vm3184_vm0, %v5796_v2  ;;  %4384 = vst.msk [vmem:[%s7452_s14 + $0x160] sm:$0xff] %vm3184_vm0, %v5796_v2  ;;  %4895 = vmatpush3.bf16.msra.mxu0 %v5151_v9  ;;  %5137 = vmatpush3.bf16.msra.mxu1 %v5151_v9  ;;  %v5184_v47 = vld [vmem:[%s7442_s3 + $0xf0] sm:$0xff]   ;;  %v5169_v48 = vld [vmem:[%s7442_s3 + $0x78] sm:$0xff]  }
  0x4f   :  { %4385 = vst.msk [vmem:[%s7452_s14 + $0x168] sm:$0xff] %vm3184_vm0, %v5796_v2  ;;  %4386 = vst.msk [vmem:[%s7452_s14 + $0x170] sm:$0xff] %vm3184_vm0, %v5796_v2  ;;  %4896 = vmatprep.subr.bf16.mxu0 %v5152_v10  ;;  %5130 = vmatprep.subr.bf16.mxu1 %v5152_v10  ;;  %v5185_v49 = vld [vmem:[%s7442_s3 + $0xf8] sm:$0xff]   ;;  %v6344_v51 = vld [vmem:[%s7444_s5] ss:$0 sm:$0xff] }
  0x50   :  { %4387 = vst.msk [vmem:[%s7452_s14 + $0x178] sm:$0xff] %vm3184_vm0, %v5796_v2  ;;  %4388 = vst.msk [vmem:[%s7452_s14 + $0x180] sm:$0xff] %vm3184_vm0, %v5796_v2  ;;  %v5193_v50 = vld [vmem:[#allocation6 + $0x38] sm:$0xff]   ;;  %v5194_v3 = vld [vmem:[#allocation8] sm:$0xff]  }
  0x51   :  { %4389 = vst.msk [vmem:[%s7452_s14 + $0x188] sm:$0xff] %vm3184_vm0, %v5796_v2  ;;  %4390 = vst.msk [vmem:[%s7452_s14 + $0x190] sm:$0xff] %vm3184_vm0, %v5796_v2  ;;  %v5195_v4 = vld [vmem:[#allocation8 + $0x8] sm:$0xff]  }
  0x52   :  { %4391 = vst.msk [vmem:[%s7452_s14 + $0x198] sm:$0xff] %vm3184_vm0, %v5796_v2  ;;  %4392 = vst.msk [vmem:[%s7452_s14 + $0x1a0] sm:$0xff] %vm3184_vm0, %v5796_v2  ;;  %4897 = vmatpush3.bf16.msra.mxu0 %v5152_v10  ;;  %5138 = vmatpush3.bf16.msra.mxu1 %v5152_v10 }
  0x53   :  { %4393 = vst.msk [vmem:[%s7452_s14 + $0x1a8] sm:$0xff] %vm3184_vm0, %v5796_v2  ;;  %4394 = vst.msk [vmem:[%s7452_s14 + $0x1b0] sm:$0xff] %vm3184_vm0, %v5796_v2  ;;  %4898 = vmatprep.subr.bf16.mxu0 %v5153_v11  ;;  %5131 = vmatprep.subr.bf16.mxu1 %v5153_v11 }
  0x54   :  { %4395 = vst.msk [vmem:[%s7452_s14 + $0x1b8] sm:$0xff] %vm3184_vm0, %v5796_v2  ;;  %4396 = vst.msk [vmem:[%s7452_s14 + $0x1c0] sm:$0xff] %vm3184_vm0, %v5796_v2 }
  0x55   :  { %4397 = vst.msk [vmem:[%s7452_s14 + $0x1c8] sm:$0xff] %vm3184_vm0, %v5796_v2  ;;  %4398 = vst.msk [vmem:[%s7452_s14 + $0x1d0] sm:$0xff] %vm3184_vm0, %v5796_v2 }
  0x56   :  { %4399 = vst.msk [vmem:[%s7452_s14 + $0x1d8] sm:$0xff] %vm3184_vm0, %v5796_v2  ;;  %4400 = vst.msk [vmem:[%s7452_s14 + $0x1e0] sm:$0xff] %vm3184_vm0, %v5796_v2  ;;  %4899 = vmatpush3.bf16.msra.mxu0 %v5153_v11  ;;  %5139 = vmatpush3.bf16.msra.mxu1 %v5153_v11 }
  0x57   :  { %4401 = vst.msk [vmem:[%s7452_s14 + $0x1e8] sm:$0xff] %vm3184_vm0, %v5796_v2  ;;  %4402 = vst.msk [vmem:[%s7452_s14 + $0x1f0] sm:$0xff] %vm3184_vm0, %v5796_v2  ;;  %4964 = vmatprep.subr.bf16.mxu1 %v5186_v21  ;;  %5044 = vmatprep.subr.bf16.mxu0 %v5194_v3 }
  0x58   :  { %4403 = vst.msk [vmem:[%s7452_s14 + $0x1f8] sm:$0xff] %vm3184_vm0, %v5796_v2 }
  0x59   :  { %4901 = vmatmul.mubr.bf16.vlgmr.msra.gmra.mrb[0].mxu0 %v5155_v13  ;;  %4933 = vmatmul.mubr.bf16.vlgmr.msra.gmra.mrb[0].mxu1 %v5171_v15 }
  0x5a   :  { %4904 = vmatprep.mubr.bf16.mxu0 %v5156_v14  ;;  %4936 = vmatprep.mubr.bf16.mxu1 %v5172_v16  ;;  %v5196_v16 = vld [vmem:[#allocation8 + $0x10] sm:$0xff]  }
  0x5b   :  { %4965 = vmatpush3.bf16.msra.mxu1 %v5186_v21  ;;  %5045 = vmatpush3.bf16.msra.mxu0 %v5194_v3 }
  0x5c   :  { %4966 = vmatprep.subr.bf16.mxu1 %v5187_v22  ;;  %5046 = vmatprep.subr.bf16.mxu0 %v5195_v4 }
  0x5f   :  { %4967 = vmatpush3.bf16.msra.mxu1 %v5187_v22  ;;  %5047 = vmatpush3.bf16.msra.mxu0 %v5195_v4 }
  0x60   :  { %4968 = vmatprep.subr.bf16.mxu1 %v5188_v27  ;;  %5048 = vmatprep.subr.bf16.mxu0 %v5196_v16 }
  0x61   :  { %4905 = vmatmul.mubr.bf16.gmra.mrb[4].mxu0 %v5157_v17  ;;  %4937 = vmatmul.mubr.bf16.gmra.mrb[4].mxu1 %v5173_v19 }
  0x62   :  { %4908 = vmatprep.mubr.bf16.mxu0 %v5158_v18  ;;  %4940 = vmatprep.mubr.bf16.mxu1 %v5174_v20 }
  0x63   :  { %4969 = vmatpush3.bf16.msra.mxu1 %v5188_v27  ;;  %5049 = vmatpush3.bf16.msra.mxu0 %v5196_v16 }
  0x64   :  { %4970 = vmatprep.subr.bf16.mxu1 %v5189_v28 }
  0x67   :  { %4971 = vmatpush3.bf16.msra.mxu1 %v5189_v28 }
  0x68   :  { %4972 = vmatprep.subr.bf16.mxu1 %v5190_v33 }
  0x69   :  { %4909 = vmatmul.mubr.bf16.gmra.mrb[8].mxu0 %v5159_v23  ;;  %4941 = vmatmul.mubr.bf16.gmra.mrb[8].mxu1 %v5175_v24 }
  0x6a   :  { %4912 = vmatprep.mubr.bf16.mxu0 %v5160_v25  ;;  %4944 = vmatprep.mubr.bf16.mxu1 %v5176_v26 }
  0x6b   :  { %4973 = vmatpush3.bf16.msra.mxu1 %v5190_v33 }
  0x6c   :  { %4974 = vmatprep.subr.bf16.mxu1 %v5191_v34 }
  0x6f   :  { %4975 = vmatpush3.bf16.msra.mxu1 %v5191_v34  ;;  %v5197_v34 = vld [vmem:[#allocation8 + $0x18] sm:$0xff]  }
  0x70   :  { %4976 = vmatprep.subr.bf16.mxu1 %v5192_v39  ;;  %5050 = vmatprep.subr.bf16.mxu0 %v5197_v34 }
  0x71   :  { %4913 = vmatmul.mubr.bf16.gmra.mrb[12].mxu0 %v5161_v29  ;;  %4945 = vmatmul.mubr.bf16.gmra.mrb[12].mxu1 %v5177_v30 }
  0x72   :  { %4916 = vmatprep.mubr.bf16.mxu0 %v5162_v31  ;;  %4948 = vmatprep.mubr.bf16.mxu1 %v5178_v32 }
  0x73   :  { %4977 = vmatpush3.bf16.msra.mxu1 %v5192_v39  ;;  %5051 = vmatpush3.bf16.msra.mxu0 %v5197_v34 }
  0x74   :  { %4978 = vmatprep.subr.bf16.mxu1 %v5193_v50 }
  0x77   :  { %4979 = vmatpush3.bf16.msra.mxu1 %v5193_v50 }
  0x79   :  { %4917 = vmatmul.mubr.bf16.gmra.mrb[16].mxu0 %v5163_v35  ;;  %4949 = vmatmul.mubr.bf16.gmra.mrb[16].mxu1 %v5179_v36 }
  0x7a   :  { %4920 = vmatprep.mubr.bf16.mxu0 %v5164_v37  ;;  %4952 = vmatprep.mubr.bf16.mxu1 %v5180_v38 }
  0x81   :  { %4921 = vmatmul.mubr.bf16.gmra.mrb[20].mxu0 %v5165_v40  ;;  %4953 = vmatmul.mubr.bf16.gmra.mrb[20].mxu1 %v5181_v41 }
  0x82   :  { %4924 = vmatprep.mubr.bf16.mxu0 %v5166_v42  ;;  %4956 = vmatprep.mubr.bf16.mxu1 %v5182_v43 }
  0x89   :  { %4925 = vmatmul.mubr.bf16.gmra.mrb[24].mxu0 %v5167_v44  ;;  %4957 = vmatmul.mubr.bf16.gmra.mrb[24].mxu1 %v5183_v45 }
  0x8a   :  { %4928 = vmatprep.mubr.bf16.mxu0 %v5168_v46  ;;  %4960 = vmatprep.mubr.bf16.mxu1 %v5184_v47  ;;  %v5198_v46 = vld [vmem:[#allocation8 + $0x20] sm:$0xff]  }
  0x8b   :  { %5052 = vmatprep.subr.bf16.mxu0 %v5198_v46 }
  0x8c   :  { %5053 = vmatpush3.bf16.msra.mxu0 %v5198_v46 }
  0x91   :  { %4929 = vmatmul.mubr.bf16.gmra.mrb[28].mxu0 %v5169_v48  ;;  %4961 = vmatmul.mubr.bf16.gmra.mrb[28].mxu1 %v5185_v49 }
 0x12c   :  { %v4902_v52 = vpop.f32.mrb[0].mxu0  ;;  %v4934_v53 = vpop.f32.mrb[0].mxu1 }
 0x12d   :  { %v860_v54 = vadd.f32 %v4902_v52, %v6344_v51  ;;  %v851_v55 = vpop.f32.mrb[1].mxu0  ;;  %v988_v56 = vadd.f32 %v4934_v53, %v6344_v51  ;;  %v979_v57 = vpop.f32.mrb[1].mxu1 }
 0x12e   :  { %v852_v58 = vadd.f32 %v6344_v51, %v851_v55  ;;  %v4903_v59 = vpop.f32.mrb[2].mxu0  ;;  %v980_v60 = vadd.f32 %v6344_v51, %v979_v57  ;;  %v4935_v61 = vpop.f32.mrb[2].mxu1 }
 0x12f   :  { %v863_v62 = vadd.f32 %v4903_v59, %v6344_v51  ;;  %v854_v63 = vpop.f32.mrb[3].mxu0  ;;  %v1140_v0 = vmax.f32 %v988_v56, 0.0  ;;  %v991_v1 = vadd.f32 %v4935_v61, %v6344_v51  ;;  %v982_v2 = vpop.f32.mrb[3].mxu1  ;;  %v1108_v8 = vmax.f32 %v860_v54, 0.0 }
 0x130   :  { %v855_v5 = vadd.f32 %v6344_v51, %v854_v63  ;;  %v1138_v6 = vmax.f32 %v980_v60, 0.0  ;;  %v983_v7 = vadd.f32 %v6344_v51, %v982_v2  ;;  %v1106_v11 = vmax.f32 %v852_v58, 0.0 }
 0x131   :  { %v1109_v9 = vmax.f32 %v863_v62, 0.0  ;;  %v1141_v10 = vmax.f32 %v991_v1, 0.0  ;;  %v5199_v1 = vld [vmem:[#allocation8 + $0x28] sm:$0xff]  }
 0x132   :  { %v1107_v12 = vmax.f32 %v855_v5, 0.0  ;;  %v1139_v13 = vmax.f32 %v983_v7, 0.0  ;;  %5054 = vmatprep.subr.bf16.mxu0 %v5199_v1 }
 0x133   :  { %v1171_v14 = vpack.c.bf16 %v1109_v9, %v1108_v8  ;;  %v6354_v15 = vpack.c.bf16 %v1141_v10, %v1140_v0  ;;  %5055 = vmatpush3.bf16.msra.mxu0 %v5199_v1 }
 0x134   :  { %v1170_v17 = vpack.c.bf16 %v1107_v12, %v1106_v11  ;;  %v4906_v18 = vpop.f32.mrb[4].mxu0  ;;  %v6356_v19 = vpack.c.bf16 %v1139_v13, %v1138_v6  ;;  %v4938_v20 = vpop.f32.mrb[4].mxu1  ;;  %v5200_v13 = vld [vmem:[#allocation8 + $0x30] sm:$0xff]  }
 0x135   :  { %v876_v21 = vadd.f32 %v4906_v18, %v6344_v51  ;;  %v867_v22 = vpop.f32.mrb[5].mxu0  ;;  %v1004_v23 = vadd.f32 %v4938_v20, %v6344_v51  ;;  %v995_v24 = vpop.f32.mrb[5].mxu1  ;;  %5056 = vmatprep.subr.bf16.mxu0 %v5200_v13 }
 0x136   :  { %v868_v25 = vadd.f32 %v6344_v51, %v867_v22  ;;  %v4907_v26 = vpop.f32.mrb[6].mxu0  ;;  %4980 = vmatprep.mubr.bf16.mxu1 %v1170_v17  ;;  %v996_v27 = vadd.f32 %v6344_v51, %v995_v24  ;;  %v4939_v28 = vpop.f32.mrb[6].mxu1 }
 0x137   :  { %v879_v29 = vadd.f32 %v4907_v26, %v6344_v51  ;;  %v870_v30 = vpop.f32.mrb[7].mxu0  ;;  %4981 = vmatmul.mubr.bf16.vlgmr.msra.gmra.mrb[32].mxu1 %v1171_v14  ;;  %v1144_v31 = vmax.f32 %v1004_v23, 0.0  ;;  %v1007_v32 = vadd.f32 %v4939_v28, %v6344_v51  ;;  %v998_v33 = vpop.f32.mrb[7].mxu1  ;;  %v1112_v38 = vmax.f32 %v876_v21, 0.0  ;;  %5057 = vmatpush3.bf16.msra.mxu0 %v5200_v13 }
 0x138   :  { %v871_v35 = vadd.f32 %v6344_v51, %v870_v30  ;;  %v1142_v36 = vmax.f32 %v996_v27, 0.0  ;;  %v999_v37 = vadd.f32 %v6344_v51, %v998_v33  ;;  %v1110_v41 = vmax.f32 %v868_v25, 0.0 }
 0x139   :  { %v1113_v39 = vmax.f32 %v879_v29, 0.0  ;;  %v1145_v40 = vmax.f32 %v1007_v32, 0.0 }
 0x13a   :  { %v1111_v42 = vmax.f32 %v871_v35, 0.0  ;;  %v1143_v43 = vmax.f32 %v999_v37, 0.0 }
 0x13b   :  { %v1173_v44 = vpack.c.bf16 %v1113_v39, %v1112_v38  ;;  %v6366_v45 = vpack.c.bf16 %v1145_v40, %v1144_v31 }
 0x13c   :  { %v1172_v47 = vpack.c.bf16 %v1111_v42, %v1110_v41  ;;  %v4910_v48 = vpop.f32.mrb[8].mxu0  ;;  %v6368_v49 = vpack.c.bf16 %v1143_v43, %v1142_v36  ;;  %v4942_v50 = vpop.f32.mrb[8].mxu1 }
 0x13d   :  { %v892_v52 = vadd.f32 %v4910_v48, %v6344_v51  ;;  %v883_v53 = vpop.f32.mrb[9].mxu0  ;;  %v1020_v54 = vadd.f32 %v4942_v50, %v6344_v51  ;;  %v1011_v55 = vpop.f32.mrb[9].mxu1 }
 0x13e   :  { %v884_v56 = vadd.f32 %v6344_v51, %v883_v53  ;;  %v4911_v57 = vpop.f32.mrb[10].mxu0  ;;  %4984 = vmatprep.mubr.bf16.mxu1 %v1172_v47  ;;  %v1012_v58 = vadd.f32 %v6344_v51, %v1011_v55  ;;  %v4943_v59 = vpop.f32.mrb[10].mxu1 }
 0x13f   :  { %v895_v60 = vadd.f32 %v4911_v57, %v6344_v51  ;;  %v886_v61 = vpop.f32.mrb[11].mxu0  ;;  %4985 = vmatmul.mubr.bf16.gmra.mrb[36].mxu1 %v1173_v44  ;;  %v1148_v62 = vmax.f32 %v1020_v54, 0.0  ;;  %v1023_v63 = vadd.f32 %v4943_v59, %v6344_v51  ;;  %v1014_v0 = vpop.f32.mrb[11].mxu1  ;;  %v1116_v5 = vmax.f32 %v892_v52, 0.0 }
 0x140   :  { %v887_v2 = vadd.f32 %v6344_v51, %v886_v61  ;;  %v1146_v3 = vmax.f32 %v1012_v58, 0.0  ;;  %v1015_v4 = vadd.f32 %v6344_v51, %v1014_v0  ;;  %v1114_v8 = vmax.f32 %v884_v56, 0.0 }
 0x141   :  { %v1117_v6 = vmax.f32 %v895_v60, 0.0  ;;  %v1149_v7 = vmax.f32 %v1023_v63, 0.0 }
 0x142   :  { %v1115_v9 = vmax.f32 %v887_v2, 0.0  ;;  %v1147_v10 = vmax.f32 %v1015_v4, 0.0 }
 0x143   :  { %v1175_v11 = vpack.c.bf16 %v1117_v6, %v1116_v5  ;;  %v6378_v12 = vpack.c.bf16 %v1149_v7, %v1148_v62 }
 0x144   :  { %v1174_v14 = vpack.c.bf16 %v1115_v9, %v1114_v8  ;;  %v4914_v16 = vpop.f32.mrb[12].mxu0  ;;  %v6380_v17 = vpack.c.bf16 %v1147_v10, %v1146_v3  ;;  %v4946_v18 = vpop.f32.mrb[12].mxu1 }
 0x145   :  { %v908_v20 = vadd.f32 %v4914_v16, %v6344_v51  ;;  %v899_v21 = vpop.f32.mrb[13].mxu0  ;;  %v1036_v22 = vadd.f32 %v4946_v18, %v6344_v51  ;;  %v1027_v23 = vpop.f32.mrb[13].mxu1 }
 0x146   :  { %v900_v24 = vadd.f32 %v6344_v51, %v899_v21  ;;  %v4915_v25 = vpop.f32.mrb[14].mxu0  ;;  %4988 = vmatprep.mubr.bf16.mxu1 %v1174_v14  ;;  %v1028_v26 = vadd.f32 %v6344_v51, %v1027_v23  ;;  %v4947_v27 = vpop.f32.mrb[14].mxu1 }
 0x147   :  { %v911_v28 = vadd.f32 %v4915_v25, %v6344_v51  ;;  %v902_v29 = vpop.f32.mrb[15].mxu0  ;;  %4989 = vmatmul.mubr.bf16.gmra.mrb[40].mxu1 %v1175_v11  ;;  %v1152_v30 = vmax.f32 %v1036_v22, 0.0  ;;  %v1039_v31 = vadd.f32 %v4947_v27, %v6344_v51  ;;  %v1030_v32 = vpop.f32.mrb[15].mxu1  ;;  %v1120_v36 = vmax.f32 %v908_v20, 0.0 }
 0x148   :  { %v903_v33 = vadd.f32 %v6344_v51, %v902_v29  ;;  %v1150_v34 = vmax.f32 %v1028_v26, 0.0  ;;  %v1031_v35 = vadd.f32 %v6344_v51, %v1030_v32  ;;  %v1118_v39 = vmax.f32 %v900_v24, 0.0 }
 0x149   :  { %v1121_v37 = vmax.f32 %v911_v28, 0.0  ;;  %v1153_v38 = vmax.f32 %v1039_v31, 0.0 }
 0x14a   :  { %v1119_v40 = vmax.f32 %v903_v33, 0.0  ;;  %v1151_v41 = vmax.f32 %v1031_v35, 0.0 }
 0x14b   :  { %v1177_v42 = vpack.c.bf16 %v1121_v37, %v1120_v36  ;;  %v6390_v43 = vpack.c.bf16 %v1153_v38, %v1152_v30 }
 0x14c   :  { %v1176_v44 = vpack.c.bf16 %v1119_v40, %v1118_v39  ;;  %v4918_v46 = vpop.f32.mrb[16].mxu0  ;;  %v6392_v47 = vpack.c.bf16 %v1151_v41, %v1150_v34  ;;  %v4950_v48 = vpop.f32.mrb[16].mxu1 }
 0x14d   :  { %v924_v50 = vadd.f32 %v4918_v46, %v6344_v51  ;;  %v915_v52 = vpop.f32.mrb[17].mxu0  ;;  %v1052_v53 = vadd.f32 %v4950_v48, %v6344_v51  ;;  %v1043_v54 = vpop.f32.mrb[17].mxu1 }
 0x14e   :  { %v916_v55 = vadd.f32 %v6344_v51, %v915_v52  ;;  %v4919_v56 = vpop.f32.mrb[18].mxu0  ;;  %4992 = vmatprep.mubr.bf16.mxu1 %v1176_v44  ;;  %v1044_v57 = vadd.f32 %v6344_v51, %v1043_v54  ;;  %v4951_v58 = vpop.f32.mrb[18].mxu1 }
 0x14f   :  { %v927_v59 = vadd.f32 %v4919_v56, %v6344_v51  ;;  %v918_v60 = vpop.f32.mrb[19].mxu0  ;;  %4993 = vmatmul.mubr.bf16.gmra.mrb[44].mxu1 %v1177_v42  ;;  %v1156_v61 = vmax.f32 %v1052_v53, 0.0  ;;  %v1055_v62 = vadd.f32 %v4951_v58, %v6344_v51  ;;  %v1046_v63 = vpop.f32.mrb[19].mxu1  ;;  %v1124_v3 = vmax.f32 %v924_v50, 0.0 }
 0x150   :  { %v919_v0 = vadd.f32 %v6344_v51, %v918_v60  ;;  %v1154_v1 = vmax.f32 %v1044_v57, 0.0  ;;  %v1047_v2 = vadd.f32 %v6344_v51, %v1046_v63  ;;  %v1122_v6 = vmax.f32 %v916_v55, 0.0 }
 0x151   :  { %v1125_v4 = vmax.f32 %v927_v59, 0.0  ;;  %v1157_v5 = vmax.f32 %v1055_v62, 0.0 }
 0x152   :  { %v1123_v7 = vmax.f32 %v919_v0, 0.0  ;;  %v1155_v8 = vmax.f32 %v1047_v2, 0.0 }
 0x153   :  { %v1179_v9 = vpack.c.bf16 %v1125_v4, %v1124_v3  ;;  %v6402_v10 = vpack.c.bf16 %v1157_v5, %v1156_v61 }
 0x154   :  { %v1178_v11 = vpack.c.bf16 %v1123_v7, %v1122_v6  ;;  %v4922_v13 = vpop.f32.mrb[20].mxu0  ;;  %v6404_v14 = vpack.c.bf16 %v1155_v8, %v1154_v1  ;;  %v4954_v16 = vpop.f32.mrb[20].mxu1 }
 0x155   :  { %v940_v18 = vadd.f32 %v4922_v13, %v6344_v51  ;;  %v931_v20 = vpop.f32.mrb[21].mxu0  ;;  %v1068_v21 = vadd.f32 %v4954_v16, %v6344_v51  ;;  %v1059_v22 = vpop.f32.mrb[21].mxu1 }
 0x156   :  { %v932_v23 = vadd.f32 %v6344_v51, %v931_v20  ;;  %v4923_v24 = vpop.f32.mrb[22].mxu0  ;;  %4996 = vmatprep.mubr.bf16.mxu1 %v1178_v11  ;;  %v1060_v25 = vadd.f32 %v6344_v51, %v1059_v22  ;;  %v4955_v26 = vpop.f32.mrb[22].mxu1 }
 0x157   :  { %v943_v27 = vadd.f32 %v4923_v24, %v6344_v51  ;;  %v934_v28 = vpop.f32.mrb[23].mxu0  ;;  %4997 = vmatmul.mubr.bf16.gmra.mrb[48].mxu1 %v1179_v9  ;;  %v1160_v29 = vmax.f32 %v1068_v21, 0.0  ;;  %v1071_v30 = vadd.f32 %v4955_v26, %v6344_v51  ;;  %v1062_v31 = vpop.f32.mrb[23].mxu1  ;;  %v1128_v35 = vmax.f32 %v940_v18, 0.0 }
 0x158   :  { %v935_v32 = vadd.f32 %v6344_v51, %v934_v28  ;;  %v1158_v33 = vmax.f32 %v1060_v25, 0.0  ;;  %v1063_v34 = vadd.f32 %v6344_v51, %v1062_v31  ;;  %v1126_v38 = vmax.f32 %v932_v23, 0.0 }
 0x159   :  { %v1129_v36 = vmax.f32 %v943_v27, 0.0  ;;  %v1161_v37 = vmax.f32 %v1071_v30, 0.0 }
 0x15a   :  { %v1127_v39 = vmax.f32 %v935_v32, 0.0  ;;  %v1159_v40 = vmax.f32 %v1063_v34, 0.0 }
 0x15b   :  { %v1181_v41 = vpack.c.bf16 %v1129_v36, %v1128_v35  ;;  %v6414_v42 = vpack.c.bf16 %v1161_v37, %v1160_v29 }
 0x15c   :  { %v1180_v44 = vpack.c.bf16 %v1127_v39, %v1126_v38  ;;  %v4926_v46 = vpop.f32.mrb[24].mxu0  ;;  %v6416_v48 = vpack.c.bf16 %v1159_v40, %v1158_v33  ;;  %v4958_v50 = vpop.f32.mrb[24].mxu1 }
 0x15d   :  { %v956_v52 = vadd.f32 %v4926_v46, %v6344_v51  ;;  %v947_v53 = vpop.f32.mrb[25].mxu0  ;;  %v1084_v54 = vadd.f32 %v4958_v50, %v6344_v51  ;;  %v1075_v55 = vpop.f32.mrb[25].mxu1 }
 0x15e   :  { %v948_v56 = vadd.f32 %v6344_v51, %v947_v53  ;;  %v4927_v57 = vpop.f32.mrb[26].mxu0  ;;  %5000 = vmatprep.mubr.bf16.mxu1 %v1180_v44  ;;  %v1076_v58 = vadd.f32 %v6344_v51, %v1075_v55  ;;  %v4959_v59 = vpop.f32.mrb[26].mxu1 }
 0x15f   :  { %v959_v60 = vadd.f32 %v4927_v57, %v6344_v51  ;;  %v950_v61 = vpop.f32.mrb[27].mxu0  ;;  %5001 = vmatmul.mubr.bf16.gmra.mrb[52].mxu1 %v1181_v41  ;;  %v1164_v62 = vmax.f32 %v1084_v54, 0.0  ;;  %v1087_v63 = vadd.f32 %v4959_v59, %v6344_v51  ;;  %v1078_v0 = vpop.f32.mrb[27].mxu1  ;;  %v1132_v4 = vmax.f32 %v956_v52, 0.0 }
 0x160   :  { %v951_v1 = vadd.f32 %v6344_v51, %v950_v61  ;;  %v1162_v2 = vmax.f32 %v1076_v58, 0.0  ;;  %v1079_v3 = vadd.f32 %v6344_v51, %v1078_v0  ;;  %v1130_v7 = vmax.f32 %v948_v56, 0.0  ;;  %v4735_v58 = vld [vmem:[%s7439_s0 + $0x18] sm:$0xff]  }
 0x161   :  { %v1133_v5 = vmax.f32 %v959_v60, 0.0  ;;  %v1165_v6 = vmax.f32 %v1087_v63, 0.0  ;;  %v4619_v60 = vunpack.c.l.bf16 %v4735_v58  ;;  %v4736_v63 = vld [vmem:[%s7439_s0 + $0x20] sm:$0xff]  }
 0x162   :  { %v1131_v8 = vmax.f32 %v951_v1, 0.0  ;;  %v1163_v9 = vmax.f32 %v1079_v3, 0.0  ;;  %v4623_v1 = vunpack.c.l.bf16 %v4736_v63  ;;  %v4624_v3 = vunpack.c.h.bf16 %v4736_v63 }
 0x163   :  { %v1183_v11 = vpack.c.bf16 %v1133_v5, %v1132_v4  ;;  %v1199_v13 = vpack.c.bf16 %v1165_v6, %v1164_v62  ;;  %v4620_v62 = vunpack.c.h.bf16 %v4735_v58  ;;  %v4737_v4 = vld [vmem:[%s7439_s0 + $0x28] sm:$0xff]  }
 0x164   :  { %v1182_v16 = vpack.c.bf16 %v1131_v8, %v1130_v7  ;;  %v4930_v18 = vpop.f32.mrb[28].mxu0  ;;  %v1198_v20 = vpack.c.bf16 %v1163_v9, %v1162_v2  ;;  %v4962_v21 = vpop.f32.mrb[28].mxu1  ;;  %v4627_v6 = vunpack.c.l.bf16 %v4737_v4  ;;  %v4628_v8 = vunpack.c.h.bf16 %v4737_v4  ;;  %v4738_v9 = vld [vmem:[%s7439_s0 + $0x30] sm:$0xff]  }
 0x165   :  { %v972_v22 = vadd.f32 %v4930_v18, %v6344_v51  ;;  %v963_v23 = vpop.f32.mrb[29].mxu0  ;;  %v1100_v24 = vadd.f32 %v4962_v21, %v6344_v51  ;;  %v1091_v25 = vpop.f32.mrb[29].mxu1  ;;  %v4632_v18 = vunpack.c.h.bf16 %v4738_v9  ;;  %v4739_v21 = vld [vmem:[%s7439_s0 + $0x38] sm:$0xff]  }
 0x166   :  { %v964_v26 = vadd.f32 %v6344_v51, %v963_v23  ;;  %v4931_v27 = vpop.f32.mrb[30].mxu0  ;;  %5004 = vmatprep.mubr.bf16.mxu1 %v1182_v16  ;;  %v1092_v28 = vadd.f32 %v6344_v51, %v1091_v25  ;;  %v4963_v29 = vpop.f32.mrb[30].mxu1  ;;  %v4635_v23 = vunpack.c.l.bf16 %v4739_v21 }
 0x167   :  { %v975_v30 = vadd.f32 %v4931_v27, %v6344_v51  ;;  %v966_v31 = vpop.f32.mrb[31].mxu0  ;;  %5005 = vmatmul.mubr.bf16.gmra.mrb[56].mxu1 %v1183_v11  ;;  %v1168_v32 = vmax.f32 %v1100_v24, 0.0  ;;  %v1103_v33 = vadd.f32 %v4963_v29, %v6344_v51  ;;  %v1094_v34 = vpop.f32.mrb[31].mxu1  ;;  %v1136_v38 = vmax.f32 %v972_v22, 0.0 }
 0x168   :  { %v967_v35 = vadd.f32 %v6344_v51, %v966_v31  ;;  %v1166_v36 = vmax.f32 %v1092_v28, 0.0  ;;  %v1095_v37 = vadd.f32 %v6344_v51, %v1094_v34  ;;  %v1134_v41 = vmax.f32 %v964_v26, 0.0  ;;  %v5201_v51 = vld [vmem:[#allocation8 + $0x38] sm:$0xff]  }
 0x169   :  { %v1137_v39 = vmax.f32 %v975_v30, 0.0  ;;  %v1169_v40 = vmax.f32 %v1103_v33, 0.0  ;;  %5058 = vmatprep.subr.bf16.mxu0 %v5201_v51  ;;  %v4636_v28 = vunpack.c.h.bf16 %v4739_v21  ;;  %v4740_v31 = vld [vmem:[%s7439_s0 + $0x40] sm:$0xff]  }
 0x16a   :  { %v1135_v44 = vmax.f32 %v967_v35, 0.0  ;;  %v1167_v46 = vmax.f32 %v1095_v37, 0.0  ;;  %5059 = vmatpush3.bf16.msra.mxu0 %v5201_v51  ;;  %v4639_v35 = vunpack.c.l.bf16 %v4740_v31 }
 0x16b   :  { %v1185_v50 = vpack.c.bf16 %v1137_v39, %v1136_v38  ;;  %v1201_v52 = vpack.c.bf16 %v1169_v40, %v1168_v32  ;;  %v4640_v38 = vunpack.c.h.bf16 %v4740_v31  ;;  %v4742_v40 = vld [vmem:[%s7439_s0 + $0x50] sm:$0xff]  }
 0x16c   :  { %v1184_v53 = vpack.c.bf16 %v1135_v44, %v1134_v41  ;;  %v1200_v54 = vpack.c.bf16 %v1167_v46, %v1166_v36  ;;  %v4741_v36 = vld [vmem:[%s7439_s0 + $0x48] sm:$0xff]  }
 0x16d   :  { %v4643_v39 = vunpack.c.l.bf16 %v4741_v36 }
 0x16e   :  { %5008 = vmatprep.mubr.bf16.mxu1 %v1184_v53 }
 0x16f   :  { %5009 = vmatmul.mubr.bf16.gmra.mrb[60].mxu1 %v1185_v50  ;;  %v4644_v50 = vunpack.c.h.bf16 %v4741_v36 }
 0x170   :  { %5012 = vmatprep.mubr.bf16.mxu1 %v6356_v19 }
 0x177   :  { %5013 = vmatmul.mubr.bf16.gmra.mrb[64].mxu1 %v6354_v15  ;;  %v4606_v15 = vld [vmem:[%s7439_s0] sm:$0xff]  }
 0x178   :  { %5016 = vmatprep.mubr.bf16.mxu1 %v6368_v49  ;;  %v4607_v19 = vunpack.c.l.bf16 %v4606_v15  ;;  %v4733_v49 = vld [vmem:[%s7439_s0 + $0x8] sm:$0xff]  }
 0x17f   :  { %5017 = vmatmul.mubr.bf16.gmra.mrb[68].mxu1 %v6366_v45  ;;  %v6452_v45 = vld [vmem:[%s7440_s1] ss:$0 sm:$0xff] }
 0x180   :  { %5020 = vmatprep.mubr.bf16.mxu1 %v6380_v17  ;;  %v4611_v17 = vunpack.c.l.bf16 %v4733_v49  ;;  %v233_v61 = vmul.f32 %v4619_v60, %v6452_v45  ;;  %v234_v0 = vmul.f32 %v4620_v62, %v6452_v45  ;;  %v235_v2 = vmul.f32 %v4623_v1, %v6452_v45  ;;  %v4744_v60 = vld [vmem:[%s7439_s0 + $0x60] sm:$0xff]  }
 0x181   :  { %v236_v5 = vmul.f32 %v4624_v3, %v6452_v45  ;;  %v237_v7 = vmul.f32 %v4627_v6, %v6452_v45  ;;  %v238_v11 = vmul.f32 %v4628_v8, %v6452_v45  ;;  %v240_v22 = vmul.f32 %v4632_v18, %v6452_v45  ;;  %v4745_v8 = vld [vmem:[%s7439_s0 + $0x68] sm:$0xff]  }
 0x182   :  { %v241_v27 = vmul.f32 %v4635_v23, %v6452_v45  ;;  %v242_v34 = vmul.f32 %v4636_v28, %v6452_v45  ;;  %v243_v46 = vmul.f32 %v4639_v35, %v6452_v45  ;;  %v4660_v31 = vunpack.c.h.bf16 %v4745_v8 }
 0x187   :  { %5021 = vmatmul.mubr.bf16.gmra.mrb[72].mxu1 %v6378_v12  ;;  %v227_v12 = vmul.f32 %v4607_v19, %v6452_v45  ;;  %v4647_v19 = vunpack.c.l.bf16 %v4742_v40 }
 0x188   :  { %5024 = vmatprep.mubr.bf16.mxu1 %v6392_v47  ;;  %v4608_v47 = vunpack.c.h.bf16 %v4606_v15  ;;  %v245_v15 = vmul.f32 %v4643_v39, %v6452_v45  ;;  %v4747_v39 = vld [vmem:[%s7439_s0 + $0x78] sm:$0xff]  }
 0x189   :  { %291 = vadd.xlane.f32.xlu0 %v227_v12 }
 0x18f   :  { %5025 = vmatmul.mubr.bf16.gmra.mrb[76].mxu1 %v6390_v43  ;;  %v229_v43 = vmul.f32 %v4611_v17, %v6452_v45  ;;  %v4743_v17 = vld [vmem:[%s7439_s0 + $0x58] sm:$0xff]  }
 0x190   :  { %5028 = vmatprep.mubr.bf16.mxu1 %v6404_v14  ;;  %v4612_v14 = vunpack.c.h.bf16 %v4733_v49  ;;  %v4651_v58 = vunpack.c.l.bf16 %v4743_v17 }
 0x191   :  { %295 = vadd.xlane.f32.xlu1 %v229_v43 }
 0x192   :  { %v249_v4 = vmul.f32 %v4651_v58, %v6452_v45  ;;  %v4749_v58 = vld [vmem:[%s7439_s0 + $0x88] sm:$0xff]  }
 0x197   :  { %5029 = vmatmul.mubr.bf16.gmra.mrb[80].mxu1 %v6402_v10  ;;  %v228_v10 = vmul.f32 %v4608_v47, %v6452_v45 }
 0x198   :  { %5032 = vmatprep.mubr.bf16.mxu1 %v6416_v48  ;;  %v230_v48 = vmul.f32 %v4612_v14, %v6452_v45  ;;  %v4648_v14 = vunpack.c.h.bf16 %v4742_v40 }
 0x199   :  { %293 = vadd.xlane.f32.xlu0 %v228_v10  ;;  %v246_v10 = vmul.f32 %v4644_v50, %v6452_v45 }
 0x19a   :  { %297 = vadd.xlane.f32.xlu1 %v230_v48  ;;  %v248_v63 = vmul.f32 %v4648_v14, %v6452_v45 }
 0x19f   :  { %5033 = vmatmul.mubr.bf16.gmra.mrb[84].mxu1 %v6414_v42  ;;  %v4734_v42 = vld [vmem:[%s7439_s0 + $0x10] sm:$0xff]  }
 0x1a0   :  { %5036 = vmatprep.mubr.bf16.mxu1 %v1198_v20  ;;  %v4615_v55 = vunpack.c.l.bf16 %v4734_v42  ;;  %v4616_v57 = vunpack.c.h.bf16 %v4734_v42  ;;  %v6488_v20 = vld [vmem:[%s7446_s7] ss:$0 sm:$0xff] }
 0x1a2   :  { %v231_v56 = vmul.f32 %v4615_v55, %v6452_v45  ;;  %v232_v59 = vmul.f32 %v4616_v57, %v6452_v45  ;;  %v247_v57 = vmul.f32 %v4647_v19, %v6452_v45 }
 0x1a4   :  { %299 = vadd.xlane.f32.xlu0 %v231_v56  ;;  %301 = vadd.xlane.f32.xlu1 %v232_v59 }
 0x1a7   :  { %5037 = vmatmul.mubr.bf16.gmra.mrb[88].mxu1 %v1199_v13  ;;  %v4631_v13 = vunpack.c.l.bf16 %v4738_v9 }
 0x1a8   :  { %5040 = vmatprep.mubr.bf16.mxu1 %v1200_v54  ;;  %303 = vadd.xlane.f32.xlu0 %v233_v61  ;;  %v244_v54 = vmul.f32 %v4640_v38, %v6452_v45 }
 0x1a9   :  { %305 = vadd.xlane.f32.xlu1 %v234_v0  ;;  %v239_v16 = vmul.f32 %v4631_v13, %v6452_v45  ;;  %v4652_v0 = vunpack.c.h.bf16 %v4743_v17 }
 0x1ab   :  { %v250_v13 = vmul.f32 %v4652_v0, %v6452_v45 }
 0x1ac   :  { %307 = vadd.xlane.f32.xlu0 %v235_v2 }
 0x1ad   :  { %309 = vadd.xlane.f32.xlu1 %v236_v5  ;;  %v4655_v5 = vunpack.c.l.bf16 %v4744_v60 }
 0x1af   :  { %5041 = vmatmul.mubr.bf16.gmra.mrb[92].mxu1 %v1201_v52 }
 0x1b0   :  { %311 = vadd.xlane.f32.xlu0 %v237_v7 }
 0x1b1   :  { %313 = vadd.xlane.f32.xlu1 %v238_v11 }
 0x1b4   :  { %315 = vadd.xlane.f32.xlu0 %v239_v16  ;;  %v4656_v16 = vunpack.c.h.bf16 %v4744_v60 }
 0x1b5   :  { %317 = vadd.xlane.f32.xlu1 %v240_v22 }
 0x1b8   :  { %319 = vadd.xlane.f32.xlu0 %v241_v27  ;;  %v4746_v27 = vld [vmem:[%s7439_s0 + $0x70] sm:$0xff]  }
 0x1b9   :  { %321 = vadd.xlane.f32.xlu1 %v242_v34  ;;  %v4663_v36 = vunpack.c.l.bf16 %v4746_v27 }
 0x1bc   :  { %323 = vadd.xlane.f32.xlu0 %v243_v46  ;;  %v4664_v46 = vunpack.c.h.bf16 %v4746_v27 }
 0x1bd   :  { %325 = vadd.xlane.f32.xlu1 %v244_v54 }
 0x1c0   :  { %327 = vadd.xlane.f32.xlu0 %v245_v15  ;;  %v4667_v15 = vunpack.c.l.bf16 %v4747_v39 }
 0x1c1   :  { %329 = vadd.xlane.f32.xlu1 %v246_v10 }
 0x1c4   :  { %331 = vadd.xlane.f32.xlu0 %v247_v57 }
 0x1c5   :  { %333 = vadd.xlane.f32.xlu1 %v248_v63 }
 0x1c8   :  { %335 = vadd.xlane.f32.xlu0 %v249_v4  ;;  %v4675_v4 = vunpack.c.l.bf16 %v4749_v58 }
 0x1c9   :  { %337 = vadd.xlane.f32.xlu1 %v250_v13 }
 0x20a   :  { %v4982_v24 = vpop.f32.mrb[32].mxu1 }
 0x20b   :  { %v1316_v25 = vadd.f32 %v4982_v24, %v6488_v20  ;;  %v1307_v26 = vpop.f32.mrb[33].mxu1  ;;  %v251_v24 = vmul.f32 %v4655_v5, %v6452_v45 }
 0x20c   :  { %v1308_v29 = vadd.f32 %v6488_v20, %v1307_v26  ;;  %v4983_v30 = vpop.f32.mrb[34].mxu1 }
 0x20d   :  { %v1319_v32 = vadd.f32 %v4983_v30, %v6488_v20  ;;  %v1310_v33 = vpop.f32.mrb[35].mxu1  ;;  %v1564_v41 = vmax.f32 %v1316_v25, 0.0  ;;  %v4659_v25 = vunpack.c.l.bf16 %v4745_v8  ;;  %v252_v30 = vmul.f32 %v4656_v16, %v6452_v45  ;;  %339 = vadd.xlane.f32.xlu0 %v251_v24 }
 0x20e   :  { %v1311_v37 = vadd.f32 %v6488_v20, %v1310_v33  ;;  %v1562_v52 = vmax.f32 %v1308_v29, 0.0 }
 0x20f   :  { %v1565_v44 = vmax.f32 %v1319_v32, 0.0  ;;  %v253_v35 = vmul.f32 %v4659_v25, %v6452_v45  ;;  %341 = vadd.xlane.f32.xlu1 %v252_v30  ;;  %v4751_v25 = vld [vmem:[%s7439_s0 + $0x98] sm:$0xff]  }
 0x210   :  { %v1563_v53 = vmax.f32 %v1311_v37, 0.0 }
 0x211   :  { %v1627_v51 = vpack.c.bf16 %v1565_v44, %v1564_v41  ;;  %v254_v44 = vmul.f32 %v4660_v31, %v6452_v45  ;;  %343 = vadd.xlane.f32.xlu0 %v253_v35  ;;  %v4683_v35 = vunpack.c.l.bf16 %v4751_v25 }
 0x212   :  { %v1626_v49 = vpack.c.bf16 %v1563_v53, %v1562_v52  ;;  %v4986_v12 = vpop.f32.mrb[36].mxu1 }
 0x213   :  { %v1332_v43 = vadd.f32 %v4986_v12, %v6488_v20  ;;  %v1323_v47 = vpop.f32.mrb[37].mxu1  ;;  %345 = vadd.xlane.f32.xlu1 %v254_v44 }
 0x214   :  { %v1324_v42 = vadd.f32 %v6488_v20, %v1323_v47  ;;  %v4987_v48 = vpop.f32.mrb[38].mxu1  ;;  %5060 = vmatprep.mubr.bf16.mxu0 %v1626_v49  ;;  %v4748_v49 = vld [vmem:[%s7439_s0 + $0x80] sm:$0xff]   ;;  %v4668_v47 = vunpack.c.h.bf16 %v4747_v39 }
 0x215   :  { %v1335_v55 = vadd.f32 %v4987_v48, %v6488_v20  ;;  %v1326_v56 = vpop.f32.mrb[39].mxu1  ;;  %5061 = vmatmul.mubr.bf16.vlgmr.msra.gmra.mrb[32].mxu0 %v1627_v51  ;;  %v1568_v61 = vmax.f32 %v1332_v43, 0.0  ;;  %v255_v51 = vmul.f32 %v4663_v36, %v6452_v45  ;;  %v256_v43 = vmul.f32 %v4664_v46, %v6452_v45 }
 0x216   :  { %v1327_v59 = vadd.f32 %v6488_v20, %v1326_v56  ;;  %v1566_v1 = vmax.f32 %v1324_v42, 0.0  ;;  %v257_v48 = vmul.f32 %v4667_v15, %v6452_v45  ;;  %v4753_v15 = vld [vmem:[%s7439_s0 + $0xa8] sm:$0xff]  }
 0x217   :  { %v1569_v62 = vmax.f32 %v1335_v55, 0.0  ;;  %347 = vadd.xlane.f32.xlu0 %v255_v51  ;;  %v4671_v55 = vunpack.c.l.bf16 %v4748_v49  ;;  %349 = vadd.xlane.f32.xlu1 %v256_v43 }
 0x218   :  { %v1567_v2 = vmax.f32 %v1327_v59, 0.0 }
 0x219   :  { %v1629_v3 = vpack.c.bf16 %v1569_v62, %v1568_v61  ;;  %v258_v61 = vmul.f32 %v4668_v47, %v6452_v45  ;;  %v4672_v62 = vunpack.c.h.bf16 %v4748_v49 }
 0x21a   :  { %v1628_v6 = vpack.c.bf16 %v1567_v2, %v1566_v1  ;;  %v4990_v7 = vpop.f32.mrb[40].mxu1 }
 0x21b   :  { %v1348_v9 = vadd.f32 %v4990_v7, %v6488_v20  ;;  %v1339_v11 = vpop.f32.mrb[41].mxu1  ;;  %351 = vadd.xlane.f32.xlu0 %v257_v48  ;;  %353 = vadd.xlane.f32.xlu1 %v258_v61  ;;  %v4691_v48 = vunpack.c.l.bf16 %v4753_v15 }
 0x21c   :  { %v1340_v18 = vadd.f32 %v6488_v20, %v1339_v11  ;;  %v4991_v21 = vpop.f32.mrb[42].mxu1  ;;  %5064 = vmatprep.mubr.bf16.mxu0 %v1628_v6  ;;  %v4750_v6 = vld [vmem:[%s7439_s0 + $0x90] sm:$0xff]   ;;  %v4676_v11 = vunpack.c.h.bf16 %v4749_v58 }
 0x21d   :  { %v1351_v22 = vadd.f32 %v4991_v21, %v6488_v20  ;;  %v1342_v23 = vpop.f32.mrb[43].mxu1  ;;  %5065 = vmatmul.mubr.bf16.gmra.mrb[36].mxu0 %v1629_v3  ;;  %v1572_v28 = vmax.f32 %v1348_v9, 0.0  ;;  %v259_v3 = vmul.f32 %v4671_v55, %v6452_v45  ;;  %v260_v9 = vmul.f32 %v4672_v62, %v6452_v45 }
 0x21e   :  { %v1343_v26 = vadd.f32 %v6488_v20, %v1342_v23  ;;  %v1570_v32 = vmax.f32 %v1340_v18, 0.0  ;;  %v261_v21 = vmul.f32 %v4675_v4, %v6452_v45  ;;  %v4755_v4 = vld [vmem:[%s7439_s0 + $0xb8] sm:$0xff]  }
 0x21f   :  { %v1573_v29 = vmax.f32 %v1351_v22, 0.0  ;;  %355 = vadd.xlane.f32.xlu0 %v259_v3  ;;  %v4679_v22 = vunpack.c.l.bf16 %v4750_v6  ;;  %357 = vadd.xlane.f32.xlu1 %v260_v9 }
 0x220   :  { %v1571_v33 = vmax.f32 %v1343_v26, 0.0 }
 0x221   :  { %v1631_v34 = vpack.c.bf16 %v1573_v29, %v1572_v28  ;;  %v262_v28 = vmul.f32 %v4676_v11, %v6452_v45  ;;  %v4680_v29 = vunpack.c.h.bf16 %v4750_v6 }
 0x222   :  { %v1630_v37 = vpack.c.bf16 %v1571_v33, %v1570_v32  ;;  %v4994_v38 = vpop.f32.mrb[44].mxu1 }
 0x223   :  { %v1364_v40 = vadd.f32 %v4994_v38, %v6488_v20  ;;  %v1355_v41 = vpop.f32.mrb[45].mxu1  ;;  %359 = vadd.xlane.f32.xlu0 %v261_v21  ;;  %361 = vadd.xlane.f32.xlu1 %v262_v28  ;;  %v4699_v21 = vunpack.c.l.bf16 %v4755_v4 }
 0x224   :  { %v1356_v50 = vadd.f32 %v6488_v20, %v1355_v41  ;;  %v4995_v52 = vpop.f32.mrb[46].mxu1  ;;  %5068 = vmatprep.mubr.bf16.mxu0 %v1630_v37  ;;  %v4752_v37 = vld [vmem:[%s7439_s0 + $0xa0] sm:$0xff]   ;;  %v4684_v41 = vunpack.c.h.bf16 %v4751_v25 }
 0x225   :  { %v1367_v53 = vadd.f32 %v4995_v52, %v6488_v20  ;;  %v1358_v54 = vpop.f32.mrb[47].mxu1  ;;  %5069 = vmatmul.mubr.bf16.gmra.mrb[40].mxu0 %v1631_v34  ;;  %v1576_v12 = vmax.f32 %v1364_v40, 0.0  ;;  %v263_v34 = vmul.f32 %v4679_v22, %v6452_v45  ;;  %v264_v40 = vmul.f32 %v4680_v29, %v6452_v45 }
 0x226   :  { %v1359_v19 = vadd.f32 %v6488_v20, %v1358_v54  ;;  %v1574_v10 = vmax.f32 %v1356_v50, 0.0  ;;  %v265_v52 = vmul.f32 %v4683_v35, %v6452_v45  ;;  %v4757_v35 = vld [vmem:[%s7439_s0 + $0xc8] sm:$0xff]  }
 0x227   :  { %v1577_v17 = vmax.f32 %v1367_v53, 0.0  ;;  %363 = vadd.xlane.f32.xlu0 %v263_v34  ;;  %v4687_v53 = vunpack.c.l.bf16 %v4752_v37  ;;  %365 = vadd.xlane.f32.xlu1 %v264_v40 }
 0x228   :  { %v1575_v14 = vmax.f32 %v1359_v19, 0.0 }
 0x229   :  { %v1633_v42 = vpack.c.bf16 %v1577_v17, %v1576_v12  ;;  %v266_v12 = vmul.f32 %v4684_v41, %v6452_v45  ;;  %v4688_v17 = vunpack.c.h.bf16 %v4752_v37 }
 0x22a   :  { %v1632_v56 = vpack.c.bf16 %v1575_v14, %v1574_v10  ;;  %v4998_v57 = vpop.f32.mrb[48].mxu1 }
 0x22b   :  { %v1380_v59 = vadd.f32 %v4998_v57, %v6488_v20  ;;  %v1371_v60 = vpop.f32.mrb[49].mxu1  ;;  %367 = vadd.xlane.f32.xlu0 %v265_v52  ;;  %369 = vadd.xlane.f32.xlu1 %v266_v12  ;;  %v4707_v52 = vunpack.c.l.bf16 %v4757_v35 }
 0x22c   :  { %v1372_v63 = vadd.f32 %v6488_v20, %v1371_v60  ;;  %v4999_v0 = vpop.f32.mrb[50].mxu1  ;;  %5072 = vmatprep.mubr.bf16.mxu0 %v1632_v56  ;;  %v4754_v56 = vld [vmem:[%s7439_s0 + $0xb0] sm:$0xff]   ;;  %v4692_v60 = vunpack.c.h.bf16 %v4753_v15 }
 0x22d   :  { %v1383_v1 = vadd.f32 %v4999_v0, %v6488_v20  ;;  %v1374_v2 = vpop.f32.mrb[51].mxu1  ;;  %5073 = vmatmul.mubr.bf16.gmra.mrb[44].mxu0 %v1633_v42  ;;  %v1580_v7 = vmax.f32 %v1380_v59, 0.0  ;;  %v267_v42 = vmul.f32 %v4687_v53, %v6452_v45  ;;  %v268_v59 = vmul.f32 %v4688_v17, %v6452_v45 }
 0x22e   :  { %v1375_v5 = vadd.f32 %v6488_v20, %v1374_v2  ;;  %v1578_v13 = vmax.f32 %v1372_v63, 0.0  ;;  %v269_v0 = vmul.f32 %v4691_v48, %v6452_v45 }
 0x22f   :  { %v1581_v8 = vmax.f32 %v1383_v1, 0.0  ;;  %371 = vadd.xlane.f32.xlu0 %v267_v42  ;;  %v4695_v1 = vunpack.c.l.bf16 %v4754_v56  ;;  %373 = vadd.xlane.f32.xlu1 %v268_v59 }
 0x230   :  { %v1579_v16 = vmax.f32 %v1375_v5, 0.0 }
 0x231   :  { %v1635_v18 = vpack.c.bf16 %v1581_v8, %v1580_v7  ;;  %v270_v7 = vmul.f32 %v4692_v60, %v6452_v45  ;;  %v4696_v8 = vunpack.c.h.bf16 %v4754_v56 }
 0x232   :  { %v1634_v23 = vpack.c.bf16 %v1579_v16, %v1578_v13  ;;  %v5002_v24 = vpop.f32.mrb[52].mxu1 }
 0x233   :  { %v1396_v26 = vadd.f32 %v5002_v24, %v6488_v20  ;;  %v1387_v27 = vpop.f32.mrb[53].mxu1  ;;  %375 = vadd.xlane.f32.xlu0 %v269_v0  ;;  %377 = vadd.xlane.f32.xlu1 %v270_v7 }
 0x234   :  { %v1388_v30 = vadd.f32 %v6488_v20, %v1387_v27  ;;  %v5003_v31 = vpop.f32.mrb[54].mxu1  ;;  %5076 = vmatprep.mubr.bf16.mxu0 %v1634_v23  ;;  %v4756_v23 = vld [vmem:[%s7439_s0 + $0xc0] sm:$0xff]   ;;  %v4700_v27 = vunpack.c.h.bf16 %v4755_v4 }
 0x235   :  { %v1399_v32 = vadd.f32 %v5003_v31, %v6488_v20  ;;  %v1390_v33 = vpop.f32.mrb[55].mxu1  ;;  %5077 = vmatmul.mubr.bf16.gmra.mrb[48].mxu0 %v1635_v18  ;;  %v1584_v38 = vmax.f32 %v1396_v26, 0.0  ;;  %v271_v18 = vmul.f32 %v4695_v1, %v6452_v45  ;;  %v272_v26 = vmul.f32 %v4696_v8, %v6452_v45 }
 0x236   :  { %v1391_v36 = vadd.f32 %v6488_v20, %v1390_v33  ;;  %v1582_v44 = vmax.f32 %v1388_v30, 0.0  ;;  %v273_v31 = vmul.f32 %v4699_v21, %v6452_v45 }
 0x237   :  { %v1585_v39 = vmax.f32 %v1399_v32, 0.0  ;;  %379 = vadd.xlane.f32.xlu0 %v271_v18  ;;  %v4703_v32 = vunpack.c.l.bf16 %v4756_v23  ;;  %381 = vadd.xlane.f32.xlu1 %v272_v26 }
 0x238   :  { %v1583_v46 = vmax.f32 %v1391_v36, 0.0 }
 0x239   :  { %v1637_v50 = vpack.c.bf16 %v1585_v39, %v1584_v38  ;;  %v274_v38 = vmul.f32 %v4700_v27, %v6452_v45  ;;  %v4704_v39 = vunpack.c.h.bf16 %v4756_v23 }
 0x23a   :  { %v1636_v54 = vpack.c.bf16 %v1583_v46, %v1582_v44  ;;  %v5006_v51 = vpop.f32.mrb[56].mxu1 }
 0x23b   :  { %v1412_v19 = vadd.f32 %v5006_v51, %v6488_v20  ;;  %v1403_v49 = vpop.f32.mrb[57].mxu1  ;;  %383 = vadd.xlane.f32.xlu0 %v273_v31  ;;  %385 = vadd.xlane.f32.xlu1 %v274_v38 }
 0x23c   :  { %v1404_v43 = vadd.f32 %v6488_v20, %v1403_v49  ;;  %v5007_v47 = vpop.f32.mrb[58].mxu1  ;;  %5080 = vmatprep.mubr.bf16.mxu0 %v1636_v54  ;;  %v4758_v54 = vld [vmem:[%s7439_s0 + $0xd0] sm:$0xff]   ;;  %v4708_v49 = vunpack.c.h.bf16 %v4757_v35 }
 0x23d   :  { %v1415_v10 = vadd.f32 %v5007_v47, %v6488_v20  ;;  %v1406_v14 = vpop.f32.mrb[59].mxu1  ;;  %5081 = vmatmul.mubr.bf16.gmra.mrb[52].mxu0 %v1637_v50  ;;  %v1588_v57 = vmax.f32 %v1412_v19, 0.0  ;;  %v275_v50 = vmul.f32 %v4703_v32, %v6452_v45  ;;  %v276_v19 = vmul.f32 %v4704_v39, %v6452_v45 }
 0x23e   :  { %v1407_v55 = vadd.f32 %v6488_v20, %v1406_v14  ;;  %v1586_v61 = vmax.f32 %v1404_v43, 0.0  ;;  %v4759_v43 = vld [vmem:[%s7439_s0 + $0xd8] sm:$0xff]   ;;  %v4711_v14 = vunpack.c.l.bf16 %v4758_v54  ;;  %v4712_v1 = vunpack.c.h.bf16 %v4758_v54 }
 0x23f   :  { %v1589_v58 = vmax.f32 %v1415_v10, 0.0  ;;  %387 = vadd.xlane.f32.xlu0 %v275_v50  ;;  %v277_v10 = vmul.f32 %v4707_v52, %v6452_v45  ;;  %389 = vadd.xlane.f32.xlu1 %v276_v19 }
 0x240   :  { %v1587_v62 = vmax.f32 %v1407_v55, 0.0  ;;  %v279_v0 = vmul.f32 %v4711_v14, %v6452_v45 }
 0x241   :  { %v1639_v63 = vpack.c.bf16 %v1589_v58, %v1588_v57  ;;  %v278_v57 = vmul.f32 %v4708_v49, %v6452_v45  ;;  %v4715_v58 = vunpack.c.l.bf16 %v4759_v43 }
 0x242   :  { %v1638_v2 = vpack.c.bf16 %v1587_v62, %v1586_v61  ;;  %v5010_v3 = vpop.f32.mrb[60].mxu1  ;;  %v4760_v61 = vld [vmem:[%s7439_s0 + $0xe0] sm:$0xff]  }
 0x243   :  { %v1428_v5 = vadd.f32 %v5010_v3, %v6488_v20  ;;  %v1419_v6 = vpop.f32.mrb[61].mxu1  ;;  %391 = vadd.xlane.f32.xlu0 %v277_v10  ;;  %393 = vadd.xlane.f32.xlu1 %v278_v57  ;;  %v4720_v32 = vunpack.c.h.bf16 %v4760_v61 }
 0x244   :  { %v1420_v9 = vadd.f32 %v6488_v20, %v1419_v6  ;;  %v5011_v11 = vpop.f32.mrb[62].mxu1  ;;  %5084 = vmatprep.mubr.bf16.mxu0 %v1638_v2  ;;  %v4719_v6 = vunpack.c.l.bf16 %v4760_v61 }
 0x245   :  { %v1431_v13 = vadd.f32 %v5011_v11, %v6488_v20  ;;  %v1422_v16 = vpop.f32.mrb[63].mxu1  ;;  %5085 = vmatmul.mubr.bf16.gmra.mrb[56].mxu0 %v1639_v63  ;;  %v1592_v24 = vmax.f32 %v1428_v5, 0.0  ;;  %v281_v5 = vmul.f32 %v4715_v58, %v6452_v45 }
 0x246   :  { %v1423_v22 = vadd.f32 %v6488_v20, %v1422_v16  ;;  %v1590_v28 = vmax.f32 %v1420_v9, 0.0  ;;  %v4761_v9 = vld [vmem:[%s7439_s0 + $0xe8] sm:$0xff]   ;;  %v4716_v16 = vunpack.c.h.bf16 %v4759_v43 }
 0x247   :  { %v1593_v25 = vmax.f32 %v1431_v13, 0.0  ;;  %395 = vadd.xlane.f32.xlu0 %v279_v0  ;;  %v280_v13 = vmul.f32 %v4712_v1, %v6452_v45  ;;  %399 = vadd.xlane.f32.xlu1 %v281_v5  ;;  %v4724_v49 = vunpack.c.h.bf16 %v4761_v9 }
 0x248   :  { %v1591_v29 = vmax.f32 %v1423_v22, 0.0  ;;  %v282_v31 = vmul.f32 %v4716_v16, %v6452_v45 }
 0x249   :  { %v1641_v30 = vpack.c.bf16 %v1593_v25, %v1592_v24  ;;  %v283_v24 = vmul.f32 %v4719_v6, %v6452_v45  ;;  %v4723_v25 = vunpack.c.l.bf16 %v4761_v9  ;;  %v286_v10 = vmul.f32 %v4724_v49, %v6452_v45 }
 0x24a   :  { %v1640_v33 = vpack.c.bf16 %v1591_v29, %v1590_v28  ;;  %v5014_v34 = vpop.f32.mrb[64].mxu1  ;;  %v4762_v28 = vld [vmem:[%s7439_s0 + $0xf0] sm:$0xff]  }
 0x24b   :  { %v1444_v36 = vadd.f32 %v5014_v34, %v6488_v20  ;;  %v1435_v37 = vpop.f32.mrb[65].mxu1  ;;  %397 = vadd.xlane.f32.xlu0 %v280_v13  ;;  %403 = vadd.xlane.f32.xlu1 %v283_v24  ;;  %v4728_v57 = vunpack.c.h.bf16 %v4762_v28 }
 0x24c   :  { %v1436_v40 = vadd.f32 %v6488_v20, %v1435_v37  ;;  %v5015_v41 = vpop.f32.mrb[66].mxu1  ;;  %5088 = vmatprep.mubr.bf16.mxu0 %v1640_v33  ;;  %v4727_v37 = vunpack.c.l.bf16 %v4762_v28 }
 0x24d   :  { %v1447_v44 = vadd.f32 %v5015_v41, %v6488_v20  ;;  %v1438_v46 = vpop.f32.mrb[67].mxu1  ;;  %5089 = vmatmul.mubr.bf16.gmra.mrb[60].mxu0 %v1641_v30  ;;  %v1596_v51 = vmax.f32 %v1444_v36, 0.0  ;;  %v285_v36 = vmul.f32 %v4723_v25, %v6452_v45  ;;  %v284_v41 = vmul.f32 %v4720_v32, %v6452_v45 }
 0x24e   :  { %v1439_v53 = vadd.f32 %v6488_v20, %v1438_v46  ;;  %v1594_v12 = vmax.f32 %v1436_v40, 0.0 }
 0x24f   :  { %v1597_v15 = vmax.f32 %v1447_v44, 0.0  ;;  %401 = vadd.xlane.f32.xlu0 %v282_v31  ;;  %407 = vadd.xlane.f32.xlu1 %v285_v36 }
 0x250   :  { %v1595_v17 = vmax.f32 %v1439_v53, 0.0  ;;  %v287_v53 = vmul.f32 %v4727_v37, %v6452_v45 }
 0x251   :  { %v1643_v47 = vpack.c.bf16 %v1597_v15, %v1596_v51 }
 0x252   :  { %v1642_v42 = vpack.c.bf16 %v1595_v17, %v1594_v12  ;;  %v5018_v48 = vpop.f32.mrb[68].mxu1  ;;  %v6660_v17 = vld [vmem:[%s7439_s0 + $0xf8] sm:$0xff]  }
 0x253   :  { %v1460_v55 = vadd.f32 %v5018_v48, %v6488_v20  ;;  %v1451_v56 = vpop.f32.mrb[69].mxu1  ;;  %405 = vadd.xlane.f32.xlu0 %v284_v41  ;;  %411 = vadd.xlane.f32.xlu1 %v287_v53  ;;  %v4731_v14 = vunpack.c.l.bf16 %v6660_v17 }
 0x254   :  { %v1452_v59 = vadd.f32 %v6488_v20, %v1451_v56  ;;  %v5019_v60 = vpop.f32.mrb[70].mxu1  ;;  %5092 = vmatprep.mubr.bf16.mxu0 %v1642_v42 }
 0x255   :  { %v1463_v62 = vadd.f32 %v5019_v60, %v6488_v20  ;;  %v1454_v63 = vpop.f32.mrb[71].mxu1  ;;  %5093 = vmatmul.mubr.bf16.gmra.mrb[64].mxu0 %v1643_v47  ;;  %v1600_v3 = vmax.f32 %v1460_v55, 0.0  ;;  %v289_v56 = vmul.f32 %v4731_v14, %v6452_v45 }
 0x256   :  { %v1455_v2 = vadd.f32 %v6488_v20, %v1454_v63  ;;  %v1598_v7 = vmax.f32 %v1452_v59, 0.0 }
 0x257   :  { %v1601_v4 = vmax.f32 %v1463_v62, 0.0  ;;  %409 = vadd.xlane.f32.xlu0 %v286_v10  ;;  %415 = vadd.xlane.f32.xlu1 %v289_v56  ;;  %v288_v62 = vmul.f32 %v4728_v57, %v6452_v45 }
 0x258   :  { %v1599_v8 = vmax.f32 %v1455_v2, 0.0 }
 0x259   :  { %v1645_v11 = vpack.c.bf16 %v1601_v4, %v1600_v3 }
 0x25a   :  { %v1644_v18 = vpack.c.bf16 %v1599_v8, %v1598_v7  ;;  %v5022_v21 = vpop.f32.mrb[72].mxu1 }
 0x25b   :  { %v1476_v22 = vadd.f32 %v5022_v21, %v6488_v20  ;;  %v1467_v23 = vpop.f32.mrb[73].mxu1  ;;  %413 = vadd.xlane.f32.xlu0 %v288_v62 }
 0x25c   :  { %v1468_v26 = vadd.f32 %v6488_v20, %v1467_v23  ;;  %v5023_v27 = vpop.f32.mrb[74].mxu1  ;;  %5096 = vmatprep.mubr.bf16.mxu0 %v1644_v18 }
 0x25d   :  { %v1479_v29 = vadd.f32 %v5023_v27, %v6488_v20  ;;  %v1470_v30 = vpop.f32.mrb[75].mxu1  ;;  %5097 = vmatmul.mubr.bf16.gmra.mrb[68].mxu0 %v1645_v11  ;;  %v1604_v34 = vmax.f32 %v1476_v22, 0.0 }
 0x25e   :  { %v1471_v33 = vadd.f32 %v6488_v20, %v1470_v30  ;;  %v1602_v38 = vmax.f32 %v1468_v26, 0.0 }
 0x25f   :  { %v1605_v35 = vmax.f32 %v1479_v29, 0.0 }
 0x260   :  { %v1603_v39 = vmax.f32 %v1471_v33, 0.0 }
 0x261   :  { %v1647_v40 = vpack.c.bf16 %v1605_v35, %v1604_v34 }
 0x262   :  { %v1646_v44 = vpack.c.bf16 %v1603_v39, %v1602_v38  ;;  %v5026_v46 = vpop.f32.mrb[76].mxu1 }
 0x263   :  { %v1492_v50 = vadd.f32 %v5026_v46, %v6488_v20  ;;  %v1483_v52 = vpop.f32.mrb[77].mxu1 }
 0x264   :  { %v1484_v54 = vadd.f32 %v6488_v20, %v1483_v52  ;;  %v5027_v51 = vpop.f32.mrb[78].mxu1  ;;  %5100 = vmatprep.mubr.bf16.mxu0 %v1646_v44 }
 0x265   :  { %v1495_v15 = vadd.f32 %v5027_v51, %v6488_v20  ;;  %v1486_v19 = vpop.f32.mrb[79].mxu1  ;;  %5101 = vmatmul.mubr.bf16.gmra.mrb[72].mxu0 %v1647_v40  ;;  %v1608_v43 = vmax.f32 %v1492_v50, 0.0 }
 0x266   :  { %v1487_v12 = vadd.f32 %v6488_v20, %v1486_v19  ;;  %v1606_v42 = vmax.f32 %v1484_v54, 0.0 }
 0x267   :  { %v1609_v47 = vmax.f32 %v1495_v15, 0.0 }
 0x268   :  { %v1607_v48 = vmax.f32 %v1487_v12, 0.0 }
 0x269   :  { %v1649_v55 = vpack.c.bf16 %v1609_v47, %v1608_v43 }
 0x26a   :  { %v1648_v58 = vpack.c.bf16 %v1607_v48, %v1606_v42  ;;  %v5030_v59 = vpop.f32.mrb[80].mxu1  ;;  %v6682_v48 = vpop.xlane.xlu0 %291 }
 0x26b   :  { %v1508_v60 = vadd.f32 %v5030_v59, %v6488_v20  ;;  %v1499_v61 = vpop.f32.mrb[81].mxu1 }
 0x26c   :  { %v1500_v63 = vadd.f32 %v6488_v20, %v1499_v61  ;;  %v5031_v0 = vpop.f32.mrb[82].mxu1  ;;  %5104 = vmatprep.mubr.bf16.mxu0 %v1648_v58 }
 0x26d   :  { %v1511_v1 = vadd.f32 %v5031_v0, %v6488_v20  ;;  %v1502_v2 = vpop.f32.mrb[83].mxu1  ;;  %5105 = vmatmul.mubr.bf16.gmra.mrb[76].mxu0 %v1649_v55  ;;  %v1612_v4 = vmax.f32 %v1508_v60, 0.0  ;;  %v6684_v55 = vpop.xlane.xlu1 %295 }
 0x26e   :  { %v1503_v3 = vadd.f32 %v6488_v20, %v1502_v2  ;;  %v1610_v6 = vmax.f32 %v1500_v63, 0.0  ;;  %v6686_v56 = vpop.xlane.xlu0 %293  ;;  %v6711_v2 = vld [vmem:[%s7448_s9] ss:$0 sm:$0xff] }
 0x26f   :  { %v1613_v5 = vmax.f32 %v1511_v1, 0.0 }
 0x270   :  { %v1611_v7 = vmax.f32 %v1503_v3, 0.0 }
 0x271   :  { %v1651_v8 = vpack.c.bf16 %v1613_v5, %v1612_v4  ;;  %v6688_v57 = vpop.xlane.xlu1 %297 }
 0x272   :  { %v1650_v9 = vpack.c.bf16 %v1611_v7, %v1610_v6  ;;  %v5034_v11 = vpop.f32.mrb[84].mxu1  ;;  %v6690_v58 = vpop.xlane.xlu0 %299 }
 0x273   :  { %v1524_v45 = vadd.f32 %v5034_v11, %v6488_v20  ;;  %v1515_v13 = vpop.f32.mrb[85].mxu1  ;;  %v6722_v11 = vld [vmem:[%s7449_s10] ss:$0 sm:$0xff] }
 0x274   :  { %v1516_v16 = vadd.f32 %v6488_v20, %v1515_v13  ;;  %v5035_v18 = vpop.f32.mrb[86].mxu1  ;;  %5108 = vmatprep.mubr.bf16.mxu0 %v1650_v9 }
 0x275   :  { %v1527_v21 = vadd.f32 %v5035_v18, %v6488_v20  ;;  %v1518_v22 = vpop.f32.mrb[87].mxu1  ;;  %5109 = vmatmul.mubr.bf16.gmra.mrb[80].mxu0 %v1651_v8  ;;  %v1616_v24 = vmax.f32 %v1524_v45, 0.0  ;;  %v6692_v59 = vpop.xlane.xlu1 %301 }
 0x276   :  { %v1519_v23 = vadd.f32 %v6488_v20, %v1518_v22  ;;  %v1614_v26 = vmax.f32 %v1516_v16, 0.0 }
 0x277   :  { %v1617_v25 = vmax.f32 %v1527_v21, 0.0 }
 0x278   :  { %v1615_v27 = vmax.f32 %v1519_v23, 0.0 }
 0x279   :  { %v1653_v28 = vpack.c.bf16 %v1617_v25, %v1616_v24  ;;  %v6696_v60 = vpop.xlane.xlu1 %305 }
 0x27a   :  { %v1652_v29 = vpack.c.bf16 %v1615_v27, %v1614_v26  ;;  %v5038_v30 = vpop.f32.mrb[88].mxu1 }
 0x27b   :  { %v1540_v31 = vadd.f32 %v5038_v30, %v6488_v20  ;;  %v1531_v32 = vpop.f32.mrb[89].mxu1 }
 0x27c   :  { %v1532_v33 = vadd.f32 %v6488_v20, %v1531_v32  ;;  %v5039_v34 = vpop.f32.mrb[90].mxu1  ;;  %5112 = vmatprep.mubr.bf16.mxu0 %v1652_v29 }
 0x27d   :  { %v1543_v35 = vadd.f32 %v5039_v34, %v6488_v20  ;;  %v1534_v36 = vpop.f32.mrb[91].mxu1  ;;  %5113 = vmatmul.mubr.bf16.gmra.mrb[84].mxu0 %v1653_v28  ;;  %v1620_v38 = vmax.f32 %v1540_v31, 0.0  ;;  %v6700_v62 = vpop.xlane.xlu1 %309 }
 0x27e   :  { %v1535_v37 = vadd.f32 %v6488_v20, %v1534_v36  ;;  %v1618_v40 = vmax.f32 %v1532_v33, 0.0 }
 0x27f   :  { %v1621_v39 = vmax.f32 %v1543_v35, 0.0 }
 0x280   :  { %v1619_v41 = vmax.f32 %v1535_v37, 0.0 }
 0x281   :  { %v1655_v44 = vpack.c.bf16 %v1621_v39, %v1620_v38  ;;  %v6704_v0 = vpop.xlane.xlu1 %313 }
 0x282   :  { %v1654_v46 = vpack.c.bf16 %v1619_v41, %v1618_v40  ;;  %v5042_v50 = vpop.f32.mrb[92].mxu1 }
 0x283   :  { %v1556_v52 = vadd.f32 %v5042_v50, %v6488_v20  ;;  %v1547_v53 = vpop.f32.mrb[93].mxu1 }
 0x284   :  { %v1548_v54 = vadd.f32 %v6488_v20, %v1547_v53  ;;  %v5043_v51 = vpop.f32.mrb[94].mxu1  ;;  %5116 = vmatprep.mubr.bf16.mxu0 %v1654_v46 }
 0x285   :  { %v1559_v15 = vadd.f32 %v5043_v51, %v6488_v20  ;;  %v1550_v19 = vpop.f32.mrb[95].mxu1  ;;  %5117 = vmatmul.mubr.bf16.gmra.mrb[88].mxu0 %v1655_v44  ;;  %v1624_v12 = vmax.f32 %v1556_v52, 0.0  ;;  %v6713_v3 = vpop.xlane.xlu1 %317 }
 0x286   :  { %v1551_v49 = vadd.f32 %v6488_v20, %v1550_v19  ;;  %v1622_v47 = vmax.f32 %v1548_v54, 0.0  ;;  %v6694_v20 = vpop.xlane.xlu0 %303 }
 0x287   :  { %v1625_v43 = vmax.f32 %v1559_v15, 0.0 }
 0x288   :  { %v1623_v10 = vmax.f32 %v1551_v49, 0.0 }
 0x289   :  { %v1657_v14 = vpack.c.bf16 %v1625_v43, %v1624_v12  ;;  %v6726_v21 = vpop.xlane.xlu1 %321 }
 0x28a   :  { %v1656_v42 = vpack.c.bf16 %v1623_v10, %v1622_v47  ;;  %v6698_v61 = vpop.xlane.xlu0 %307 }
 0x28c   :  { %5120 = vmatprep.mubr.bf16.mxu0 %v1656_v42 }
 0x28d   :  { %5121 = vmatmul.mubr.bf16.gmra.mrb[92].mxu0 %v1657_v14  ;;  %v6735_v34 = vpop.xlane.xlu1 %325 }
 0x28e   :  { %v6702_v63 = vpop.xlane.xlu0 %311 }
 0x291   :  { %v6744_v54 = vpop.xlane.xlu1 %329 }
 0x292   :  { %v6706_v1 = vpop.xlane.xlu0 %315 }
 0x296   :  { %v6715_v5 = vpop.xlane.xlu0 %319 }
 0x29a   :  { %v6729_v25 = vpop.xlane.xlu0 %323 }
 0x29e   :  { %v6740_v40 = vpop.xlane.xlu0 %327 }
 0x2a2   :  { %v6749_v43 = vpop.xlane.xlu0 %331 }
 0x2e8   :  { %v5062_v4 = vpop.f32.mrb[32].mxu0 }
 0x2e9   :  { %v1772_v6 = vadd.f32 %v5062_v4, %v6711_v2  ;;  %v1763_v7 = vpop.f32.mrb[33].mxu0 }
 0x2ea   :  { %v1764_v8 = vadd.f32 %v6711_v2, %v1763_v7  ;;  %v5063_v9 = vpop.f32.mrb[34].mxu0 }
 0x2eb   :  { %v2020_v45 = vmax.f32 %v1772_v6, 0.0  ;;  %v1775_v13 = vadd.f32 %v5063_v9, %v6711_v2  ;;  %v1766_v16 = vpop.f32.mrb[35].mxu0  ;;  %v6755_v9 = vpop.xlane.xlu1 %333 }
 0x2ec   :  { %v1767_v18 = vadd.f32 %v6711_v2, %v1766_v16  ;;  %v2018_v22 = vmax.f32 %v1764_v8, 0.0 }
 0x2ed   :  { %v2021_v23 = vmax.f32 %v1775_v13, 0.0  ;;  %v2091_v24 = vmul.f32 %v6722_v11, %v2020_v45 }
 0x2ee   :  { %v2019_v26 = vmax.f32 %v1767_v18, 0.0  ;;  %v2089_v31 = vmul.f32 %v6722_v11, %v2018_v22  ;;  %v6758_v18 = vpop.xlane.xlu0 %335 }
 0x2ef   :  { %2157 = vadd.xlane.f32.xlu1 %v2091_v24  ;;  %v2092_v27 = vmul.f32 %v6722_v11, %v2021_v23 }
 0x2f0   :  { %v5066_v28 = vpop.f32.mrb[36].mxu0  ;;  %v2090_v38 = vmul.f32 %v6722_v11, %v2019_v26 }
 0x2f1   :  { %v1788_v29 = vadd.f32 %v5066_v28, %v6711_v2  ;;  %v1779_v30 = vpop.f32.mrb[37].mxu0  ;;  %2159 = vadd.xlane.f32.xlu0 %v2092_v27 }
 0x2f2   :  { %v1780_v32 = vadd.f32 %v6711_v2, %v1779_v30  ;;  %v5067_v33 = vpop.f32.mrb[38].mxu0 }
 0x2f3   :  { %v2024_v35 = vmax.f32 %v1788_v29, 0.0  ;;  %v1791_v36 = vadd.f32 %v5067_v33, %v6711_v2  ;;  %v1782_v37 = vpop.f32.mrb[39].mxu0  ;;  %2153 = vadd.xlane.f32.xlu1 %v2089_v31  ;;  %v6766_v33 = vpop.xlane.xlu1 %337 }
 0x2f4   :  { %v1783_v39 = vadd.f32 %v6711_v2, %v1782_v37  ;;  %v2022_v41 = vmax.f32 %v1780_v32, 0.0 }
 0x2f5   :  { %v2025_v44 = vmax.f32 %v1791_v36, 0.0  ;;  %2155 = vadd.xlane.f32.xlu0 %v2090_v38  ;;  %v2095_v46 = vmul.f32 %v6722_v11, %v2024_v35  ;;  %v6769_v38 = vpop.xlane.xlu0 %339 }
 0x2f6   :  { %v2023_v50 = vmax.f32 %v1783_v39, 0.0  ;;  %v2093_v19 = vmul.f32 %v6722_v11, %v2022_v41 }
 0x2f7   :  { %2165 = vadd.xlane.f32.xlu1 %v2095_v46  ;;  %v2096_v52 = vmul.f32 %v6722_v11, %v2025_v44 }
 0x2f8   :  { %v5070_v53 = vpop.f32.mrb[40].mxu0  ;;  %v2094_v42 = vmul.f32 %v6722_v11, %v2023_v50 }
 0x2f9   :  { %v1804_v51 = vadd.f32 %v5070_v53, %v6711_v2  ;;  %v1795_v15 = vpop.f32.mrb[41].mxu0  ;;  %2167 = vadd.xlane.f32.xlu0 %v2096_v52 }
 0x2fa   :  { %v1796_v49 = vadd.f32 %v6711_v2, %v1795_v15  ;;  %v5071_v12 = vpop.f32.mrb[42].mxu0  ;;  %v6775_v15 = vpop.xlane.xlu1 %341 }
 0x2fb   :  { %v2028_v47 = vmax.f32 %v1804_v51, 0.0  ;;  %v1807_v10 = vadd.f32 %v5071_v12, %v6711_v2  ;;  %v1798_v14 = vpop.f32.mrb[43].mxu0  ;;  %2161 = vadd.xlane.f32.xlu1 %v2093_v19 }
 0x2fc   :  { %v1799_v4 = vadd.f32 %v6711_v2, %v1798_v14  ;;  %v2026_v6 = vmax.f32 %v1796_v49, 0.0  ;;  %v6780_v14 = vpop.xlane.xlu0 %343 }
 0x2fd   :  { %v2029_v7 = vmax.f32 %v1807_v10, 0.0  ;;  %2163 = vadd.xlane.f32.xlu0 %v2094_v42  ;;  %v2099_v8 = vmul.f32 %v6722_v11, %v2028_v47 }
 0x2fe   :  { %v2027_v45 = vmax.f32 %v1799_v4, 0.0  ;;  %v2097_v24 = vmul.f32 %v6722_v11, %v2026_v6 }
 0x2ff   :  { %2173 = vadd.xlane.f32.xlu1 %v2099_v8  ;;  %v2100_v13 = vmul.f32 %v6722_v11, %v2029_v7 }
 0x300   :  { %v5074_v16 = vpop.f32.mrb[44].mxu0  ;;  %v2098_v31 = vmul.f32 %v6722_v11, %v2027_v45 }
 0x301   :  { %v1820_v22 = vadd.f32 %v5074_v16, %v6711_v2  ;;  %v1811_v23 = vpop.f32.mrb[45].mxu0  ;;  %2175 = vadd.xlane.f32.xlu0 %v2100_v13  ;;  %v6784_v13 = vpop.xlane.xlu1 %345 }
 0x302   :  { %v1812_v26 = vadd.f32 %v6711_v2, %v1811_v23  ;;  %v5075_v27 = vpop.f32.mrb[46].mxu0 }
 0x303   :  { %v2032_v28 = vmax.f32 %v1820_v22, 0.0  ;;  %v1823_v29 = vadd.f32 %v5075_v27, %v6711_v2  ;;  %v1814_v30 = vpop.f32.mrb[47].mxu0  ;;  %2169 = vadd.xlane.f32.xlu1 %v2097_v24  ;;  %v6789_v27 = vpop.xlane.xlu0 %347 }
 0x304   :  { %v1815_v32 = vadd.f32 %v6711_v2, %v1814_v30  ;;  %v2030_v35 = vmax.f32 %v1812_v26, 0.0 }
 0x305   :  { %v2033_v36 = vmax.f32 %v1823_v29, 0.0  ;;  %2171 = vadd.xlane.f32.xlu0 %v2098_v31  ;;  %v2103_v37 = vmul.f32 %v6722_v11, %v2032_v28 }
 0x306   :  { %v2031_v39 = vmax.f32 %v1815_v32, 0.0  ;;  %v2101_v52 = vmul.f32 %v6722_v11, %v2030_v35 }
 0x307   :  { %2181 = vadd.xlane.f32.xlu1 %v2103_v37  ;;  %v2104_v41 = vmul.f32 %v6722_v11, %v2033_v36 }
 0x308   :  { %v5078_v44 = vpop.f32.mrb[48].mxu0  ;;  %v2102_v47 = vmul.f32 %v6722_v11, %v2031_v39  ;;  %v6795_v39 = vpop.xlane.xlu1 %349 }
 0x309   :  { %v1836_v46 = vadd.f32 %v5078_v44, %v6711_v2  ;;  %v1827_v50 = vpop.f32.mrb[49].mxu0  ;;  %2183 = vadd.xlane.f32.xlu0 %v2104_v41 }
 0x30a   :  { %v1828_v53 = vadd.f32 %v6711_v2, %v1827_v50  ;;  %v5079_v51 = vpop.f32.mrb[50].mxu0  ;;  %v6798_v50 = vpop.xlane.xlu0 %351 }
 0x30b   :  { %v2036_v19 = vmax.f32 %v1836_v46, 0.0  ;;  %v1839_v49 = vadd.f32 %v5079_v51, %v6711_v2  ;;  %v1830_v12 = vpop.f32.mrb[51].mxu0  ;;  %2177 = vadd.xlane.f32.xlu1 %v2101_v52 }
 0x30c   :  { %v1831_v10 = vadd.f32 %v6711_v2, %v1830_v12  ;;  %v2034_v42 = vmax.f32 %v1828_v53, 0.0 }
 0x30d   :  { %v2037_v4 = vmax.f32 %v1839_v49, 0.0  ;;  %2179 = vadd.xlane.f32.xlu0 %v2102_v47  ;;  %v2107_v6 = vmul.f32 %v6722_v11, %v2036_v19 }
 0x30e   :  { %v2035_v7 = vmax.f32 %v1831_v10, 0.0  ;;  %v2105_v23 = vmul.f32 %v6722_v11, %v2034_v42 }
 0x30f   :  { %2189 = vadd.xlane.f32.xlu1 %v2107_v6  ;;  %v2108_v8 = vmul.f32 %v6722_v11, %v2037_v4  ;;  %v6806_v6 = vpop.xlane.xlu1 %353 }
 0x310   :  { %v5082_v45 = vpop.f32.mrb[52].mxu0  ;;  %v2106_v31 = vmul.f32 %v6722_v11, %v2035_v7 }
 0x311   :  { %v1852_v16 = vadd.f32 %v5082_v45, %v6711_v2  ;;  %v1843_v22 = vpop.f32.mrb[53].mxu0  ;;  %2191 = vadd.xlane.f32.xlu0 %v2108_v8 }
 0x312   :  { %v1844_v24 = vadd.f32 %v6711_v2, %v1843_v22  ;;  %v5083_v26 = vpop.f32.mrb[54].mxu0 }
 0x313   :  { %v2040_v28 = vmax.f32 %v1852_v16, 0.0  ;;  %v1855_v29 = vadd.f32 %v5083_v26, %v6711_v2  ;;  %v1846_v30 = vpop.f32.mrb[55].mxu0  ;;  %2185 = vadd.xlane.f32.xlu1 %v2105_v23  ;;  %v6809_v16 = vpop.xlane.xlu0 %355 }
 0x314   :  { %v1847_v32 = vadd.f32 %v6711_v2, %v1846_v30  ;;  %v2038_v35 = vmax.f32 %v1844_v24, 0.0 }
 0x315   :  { %v2041_v36 = vmax.f32 %v1855_v29, 0.0  ;;  %2187 = vadd.xlane.f32.xlu0 %v2106_v31  ;;  %v2111_v37 = vmul.f32 %v6722_v11, %v2040_v28 }
 0x316   :  { %v2039_v41 = vmax.f32 %v1847_v32, 0.0  ;;  %v2109_v51 = vmul.f32 %v6722_v11, %v2038_v35  ;;  %v6815_v32 = vpop.xlane.xlu1 %357 }
 0x317   :  { %2197 = vadd.xlane.f32.xlu1 %v2111_v37  ;;  %v2112_v44 = vmul.f32 %v6722_v11, %v2041_v36 }
 0x318   :  { %v5086_v46 = vpop.f32.mrb[56].mxu0  ;;  %v2110_v42 = vmul.f32 %v6722_v11, %v2039_v41 }
 0x319   :  { %v1868_v52 = vadd.f32 %v5086_v46, %v6711_v2  ;;  %v1859_v53 = vpop.f32.mrb[57].mxu0  ;;  %2199 = vadd.xlane.f32.xlu0 %v2112_v44  ;;  %v6820_v46 = vpop.xlane.xlu0 %359 }
 0x31a   :  { %v1860_v19 = vadd.f32 %v6711_v2, %v1859_v53  ;;  %v5087_v49 = vpop.f32.mrb[58].mxu0 }
 0x31b   :  { %v2044_v12 = vmax.f32 %v1868_v52, 0.0  ;;  %v1871_v47 = vadd.f32 %v5087_v49, %v6711_v2  ;;  %v1862_v10 = vpop.f32.mrb[59].mxu0  ;;  %2193 = vadd.xlane.f32.xlu1 %v2109_v51 }
 0x31c   :  { %v1863_v4 = vadd.f32 %v6711_v2, %v1862_v10  ;;  %v2042_v7 = vmax.f32 %v1860_v19, 0.0 }
 0x31d   :  { %v2045_v8 = vmax.f32 %v1871_v47, 0.0  ;;  %2195 = vadd.xlane.f32.xlu0 %v2110_v42  ;;  %v2115_v45 = vmul.f32 %v6722_v11, %v2044_v12  ;;  %v6824_v47 = vpop.xlane.xlu1 %361 }
 0x31e   :  { %v2043_v22 = vmax.f32 %v1863_v4, 0.0  ;;  %v2113_v29 = vmul.f32 %v6722_v11, %v2042_v7 }
 0x31f   :  { %2205 = vadd.xlane.f32.xlu1 %v2115_v45  ;;  %v2116_v23 = vmul.f32 %v6722_v11, %v2045_v8  ;;  %v6829_v45 = vpop.xlane.xlu0 %363 }
 0x320   :  { %v5090_v24 = vpop.f32.mrb[60].mxu0  ;;  %v2114_v41 = vmul.f32 %v6722_v11, %v2043_v22 }
 0x321   :  { %v1884_v26 = vadd.f32 %v5090_v24, %v6711_v2  ;;  %v1875_v28 = vpop.f32.mrb[61].mxu0  ;;  %2207 = vadd.xlane.f32.xlu0 %v2116_v23 }
 0x322   :  { %v1876_v30 = vadd.f32 %v6711_v2, %v1875_v28  ;;  %v5091_v31 = vpop.f32.mrb[62].mxu0 }
 0x323   :  { %v2048_v35 = vmax.f32 %v1884_v26, 0.0  ;;  %v1887_v36 = vadd.f32 %v5091_v31, %v6711_v2  ;;  %v1878_v37 = vpop.f32.mrb[63].mxu0  ;;  %2201 = vadd.xlane.f32.xlu1 %v2113_v29 }
 0x324   :  { %v1879_v44 = vadd.f32 %v6711_v2, %v1878_v37  ;;  %v2046_v52 = vmax.f32 %v1876_v30, 0.0 }
 0x325   :  { %v2049_v53 = vmax.f32 %v1887_v36, 0.0  ;;  %2203 = vadd.xlane.f32.xlu0 %v2114_v41  ;;  %v2119_v51 = vmul.f32 %v6722_v11, %v2048_v35  ;;  %v6835_v35 = vpop.xlane.xlu1 %365 }
 0x326   :  { %v2047_v19 = vmax.f32 %v1879_v44, 0.0  ;;  %v2117_v4 = vmul.f32 %v6722_v11, %v2046_v52  ;;  %v6838_v44 = vpop.xlane.xlu0 %367 }
 0x327   :  { %2213 = vadd.xlane.f32.xlu1 %v2119_v51  ;;  %v2120_v49 = vmul.f32 %v6722_v11, %v2049_v53 }
 0x328   :  { %v5094_v12 = vpop.f32.mrb[64].mxu0  ;;  %v2118_v26 = vmul.f32 %v6722_v11, %v2047_v19 }
 0x329   :  { %v1900_v10 = vadd.f32 %v5094_v12, %v6711_v2  ;;  %v1891_v42 = vpop.f32.mrb[65].mxu0  ;;  %2215 = vadd.xlane.f32.xlu0 %v2120_v49 }
 0x32a   :  { %v1892_v7 = vadd.f32 %v6711_v2, %v1891_v42  ;;  %v5095_v8 = vpop.f32.mrb[66].mxu0 }
 0x32b   :  { %v2052_v22 = vmax.f32 %v1900_v10, 0.0  ;;  %v1903_v23 = vadd.f32 %v5095_v8, %v6711_v2  ;;  %v1894_v24 = vpop.f32.mrb[67].mxu0  ;;  %2209 = vadd.xlane.f32.xlu1 %v2117_v4  ;;  %v6846_v8 = vpop.xlane.xlu1 %369 }
 0x32c   :  { %v1895_v28 = vadd.f32 %v6711_v2, %v1894_v24  ;;  %v2050_v29 = vmax.f32 %v1892_v7, 0.0 }
 0x32d   :  { %v2053_v30 = vmax.f32 %v1903_v23, 0.0  ;;  %2211 = vadd.xlane.f32.xlu0 %v2118_v26  ;;  %v2123_v31 = vmul.f32 %v6722_v11, %v2052_v22  ;;  %v6849_v26 = vpop.xlane.xlu0 %371 }
 0x32e   :  { %v2051_v36 = vmax.f32 %v1895_v28, 0.0  ;;  %v2121_v51 = vmul.f32 %v6722_v11, %v2050_v29 }
 0x32f   :  { %2221 = vadd.xlane.f32.xlu1 %v2123_v31  ;;  %v2124_v37 = vmul.f32 %v6722_v11, %v2053_v30 }
 0x330   :  { %v5098_v41 = vpop.f32.mrb[68].mxu0  ;;  %v2122_v12 = vmul.f32 %v6722_v11, %v2051_v36 }
 0x331   :  { %v1916_v52 = vadd.f32 %v5098_v41, %v6711_v2  ;;  %v1907_v53 = vpop.f32.mrb[69].mxu0  ;;  %2223 = vadd.xlane.f32.xlu0 %v2124_v37 }
 0x332   :  { %v1908_v19 = vadd.f32 %v6711_v2, %v1907_v53  ;;  %v5099_v49 = vpop.f32.mrb[70].mxu0  ;;  %v6855_v53 = vpop.xlane.xlu1 %373 }
 0x333   :  { %v2056_v10 = vmax.f32 %v1916_v52, 0.0  ;;  %v1919_v42 = vadd.f32 %v5099_v49, %v6711_v2  ;;  %v1910_v4 = vpop.f32.mrb[71].mxu0  ;;  %2217 = vadd.xlane.f32.xlu1 %v2121_v51 }
 0x334   :  { %v1911_v7 = vadd.f32 %v6711_v2, %v1910_v4  ;;  %v2054_v23 = vmax.f32 %v1908_v19, 0.0 }
 0x335   :  { %v2127_v22 = vmul.f32 %v6722_v11, %v2056_v10  ;;  %v2057_v24 = vmax.f32 %v1919_v42, 0.0  ;;  %2219 = vadd.xlane.f32.xlu0 %v2122_v12  ;;  %v6860_v42 = vpop.xlane.xlu0 %375 }
 0x336   :  { %v2055_v29 = vmax.f32 %v1911_v7, 0.0  ;;  %v2125_v31 = vmul.f32 %v6722_v11, %v2054_v23 }
 0x337   :  { %v2128_v28 = vmul.f32 %v6722_v11, %v2057_v24  ;;  %2229 = vadd.xlane.f32.xlu1 %v2127_v22 }
 0x338   :  { %v5102_v30 = vpop.f32.mrb[72].mxu0  ;;  %v2126_v51 = vmul.f32 %v6722_v11, %v2055_v29  ;;  %v6864_v29 = vpop.xlane.xlu1 %377 }
 0x339   :  { %v1932_v36 = vadd.f32 %v5102_v30, %v6711_v2  ;;  %v1923_v37 = vpop.f32.mrb[73].mxu0  ;;  %2231 = vadd.xlane.f32.xlu0 %v2128_v28 }
 0x33a   :  { %v1924_v41 = vadd.f32 %v6711_v2, %v1923_v37  ;;  %v5103_v52 = vpop.f32.mrb[74].mxu0 }
 0x33b   :  { %v2060_v19 = vmax.f32 %v1932_v36, 0.0  ;;  %v1935_v49 = vadd.f32 %v5103_v52, %v6711_v2  ;;  %v1926_v12 = vpop.f32.mrb[75].mxu0  ;;  %2225 = vadd.xlane.f32.xlu1 %v2125_v31 }
 0x33c   :  { %v1927_v10 = vadd.f32 %v6711_v2, %v1926_v12  ;;  %v2058_v7 = vmax.f32 %v1924_v41, 0.0 }
 0x33d   :  { %v2131_v4 = vmul.f32 %v6722_v11, %v2060_v19  ;;  %v2061_v22 = vmax.f32 %v1935_v49, 0.0  ;;  %2227 = vadd.xlane.f32.xlu0 %v2126_v51  ;;  %v6869_v19 = vpop.xlane.xlu0 %379 }
 0x33e   :  { %v2059_v24 = vmax.f32 %v1927_v10, 0.0  ;;  %v2129_v30 = vmul.f32 %v6722_v11, %v2058_v7  ;;  %7454 = vst [vmem:[#allocation11_spill] sm:$0xff] %v6869_v19 }
 0x33f   :  { %v2132_v23 = vmul.f32 %v6722_v11, %v2061_v22  ;;  %2237 = vadd.xlane.f32.xlu1 %v2131_v4 }
 0x340   :  { %v5106_v28 = vpop.f32.mrb[76].mxu0  ;;  %v2130_v41 = vmul.f32 %v6722_v11, %v2059_v24 }
 0x341   :  { %v1948_v31 = vadd.f32 %v5106_v28, %v6711_v2  ;;  %v1939_v36 = vpop.f32.mrb[77].mxu0  ;;  %2239 = vadd.xlane.f32.xlu0 %v2132_v23  ;;  %v6875_v23 = vpop.xlane.xlu1 %381 }
 0x342   :  { %v1940_v37 = vadd.f32 %v6711_v2, %v1939_v36  ;;  %v5107_v52 = vpop.f32.mrb[78].mxu0  ;;  %7455 = vst [vmem:[#allocation12_spill] sm:$0xff] %v6875_v23  ;;  %v6878_v24 = vpop.xlane.xlu0 %383 }
 0x343   :  { %v2064_v51 = vmax.f32 %v1948_v31, 0.0  ;;  %v1951_v49 = vadd.f32 %v5107_v52, %v6711_v2  ;;  %v1942_v12 = vpop.f32.mrb[79].mxu0  ;;  %2233 = vadd.xlane.f32.xlu1 %v2129_v30  ;;  %7456 = vst [vmem:[#allocation13_spill] sm:$0xff] %v6878_v24 }
 0x344   :  { %v1943_v10 = vadd.f32 %v6711_v2, %v1942_v12  ;;  %v2062_v7 = vmax.f32 %v1940_v37, 0.0 }
 0x345   :  { %v2135_v4 = vmul.f32 %v6722_v11, %v2064_v51  ;;  %v2065_v22 = vmax.f32 %v1951_v49, 0.0  ;;  %2235 = vadd.xlane.f32.xlu0 %v2130_v41 }
 0x346   :  { %v2063_v36 = vmax.f32 %v1943_v10, 0.0  ;;  %v2133_v31 = vmul.f32 %v6722_v11, %v2062_v7 }
 0x347   :  { %v2136_v28 = vmul.f32 %v6722_v11, %v2065_v22  ;;  %2245 = vadd.xlane.f32.xlu1 %v2135_v4  ;;  %v6886_v4 = vpop.xlane.xlu1 %385 }
 0x348   :  { %v5110_v19 = vpop.f32.mrb[80].mxu0  ;;  %v2134_v41 = vmul.f32 %v6722_v11, %v2063_v36  ;;  %7457 = vst [vmem:[#allocation14_spill] sm:$0xff] %v6886_v4 }
 0x349   :  { %v1964_v30 = vadd.f32 %v5110_v19, %v6711_v2  ;;  %v1955_v52 = vpop.f32.mrb[81].mxu0  ;;  %2247 = vadd.xlane.f32.xlu0 %v2136_v28  ;;  %v6889_v28 = vpop.xlane.xlu0 %387 }
 0x34a   :  { %v1956_v51 = vadd.f32 %v6711_v2, %v1955_v52  ;;  %v5111_v37 = vpop.f32.mrb[82].mxu0  ;;  %7458 = vst [vmem:[#allocation15_spill] sm:$0xff] %v6889_v28 }
 0x34b   :  { %v2068_v49 = vmax.f32 %v1964_v30, 0.0  ;;  %v1967_v12 = vadd.f32 %v5111_v37, %v6711_v2  ;;  %v1958_v22 = vpop.f32.mrb[83].mxu0  ;;  %2241 = vadd.xlane.f32.xlu1 %v2133_v31 }
 0x34c   :  { %v1959_v10 = vadd.f32 %v6711_v2, %v1958_v22  ;;  %v2066_v23 = vmax.f32 %v1956_v51, 0.0 }
 0x34d   :  { %v2139_v7 = vmul.f32 %v6722_v11, %v2068_v49  ;;  %v2069_v19 = vmax.f32 %v1967_v12, 0.0  ;;  %2243 = vadd.xlane.f32.xlu0 %v2134_v41  ;;  %v6895_v49 = vpop.xlane.xlu1 %389 }
 0x34e   :  { %v2067_v24 = vmax.f32 %v1959_v10, 0.0  ;;  %v2137_v30 = vmul.f32 %v6722_v11, %v2066_v23  ;;  %7459 = vst [vmem:[#allocation16_spill] sm:$0xff] %v6895_v49 }
 0x34f   :  { %v2140_v52 = vmul.f32 %v6722_v11, %v2069_v19  ;;  %2253 = vadd.xlane.f32.xlu1 %v2139_v7  ;;  %v6900_v7 = vpop.xlane.xlu0 %391 }
 0x350   :  { %v5114_v36 = vpop.f32.mrb[84].mxu0  ;;  %v2138_v51 = vmul.f32 %v6722_v11, %v2067_v24  ;;  %7460 = vst [vmem:[#allocation17_spill] sm:$0xff] %v6900_v7 }
 0x351   :  { %v1980_v31 = vadd.f32 %v5114_v36, %v6711_v2  ;;  %v1971_v37 = vpop.f32.mrb[85].mxu0  ;;  %2255 = vadd.xlane.f32.xlu0 %v2140_v52  ;;  %v6904_v24 = vpop.xlane.xlu1 %393 }
 0x352   :  { %v1972_v22 = vadd.f32 %v6711_v2, %v1971_v37  ;;  %v5115_v4 = vpop.f32.mrb[86].mxu0  ;;  %7461 = vst [vmem:[#allocation18_spill] sm:$0xff] %v6904_v24 }
 0x353   :  { %v2072_v41 = vmax.f32 %v1980_v31, 0.0  ;;  %v1983_v12 = vadd.f32 %v5115_v4, %v6711_v2  ;;  %v1974_v19 = vpop.f32.mrb[87].mxu0  ;;  %2249 = vadd.xlane.f32.xlu1 %v2137_v30 }
 0x354   :  { %v1975_v10 = vadd.f32 %v6711_v2, %v1974_v19  ;;  %v2070_v36 = vmax.f32 %v1972_v22, 0.0 }
 0x355   :  { %v2143_v23 = vmul.f32 %v6722_v11, %v2072_v41  ;;  %v2073_v52 = vmax.f32 %v1983_v12, 0.0  ;;  %2251 = vadd.xlane.f32.xlu0 %v2138_v51  ;;  %v6909_v41 = vpop.xlane.xlu0 %395 }
 0x356   :  { %v2071_v28 = vmax.f32 %v1975_v10, 0.0  ;;  %v2141_v4 = vmul.f32 %v6722_v11, %v2070_v36  ;;  %7462 = vst [vmem:[#allocation19_spill] sm:$0xff] %v6909_v41 }
 0x357   :  { %v2144_v37 = vmul.f32 %v6722_v11, %v2073_v52  ;;  %2261 = vadd.xlane.f32.xlu1 %v2143_v23 }
 0x358   :  { %v5118_v49 = vpop.f32.mrb[88].mxu0  ;;  %v2142_v22 = vmul.f32 %v6722_v11, %v2071_v28 }
 0x359   :  { %v1996_v30 = vadd.f32 %v5118_v49, %v6711_v2  ;;  %v1987_v31 = vpop.f32.mrb[89].mxu0  ;;  %2263 = vadd.xlane.f32.xlu0 %v2144_v37  ;;  %v6915_v37 = vpop.xlane.xlu1 %399 }
 0x35a   :  { %v1988_v19 = vadd.f32 %v6711_v2, %v1987_v31  ;;  %v5119_v7 = vpop.f32.mrb[90].mxu0  ;;  %7463 = vst [vmem:[#allocation20_spill] sm:$0xff] %v6915_v37  ;;  %v6918_v28 = vpop.xlane.xlu0 %397 }
 0x35b   :  { %v2076_v51 = vmax.f32 %v1996_v30, 0.0  ;;  %v1999_v12 = vadd.f32 %v5119_v7, %v6711_v2  ;;  %v1990_v10 = vpop.f32.mrb[91].mxu0  ;;  %2257 = vadd.xlane.f32.xlu1 %v2141_v4  ;;  %7464 = vst [vmem:[#allocation21_spill] sm:$0xff] %v6918_v28 }
 0x35c   :  { %v1991_v23 = vadd.f32 %v6711_v2, %v1990_v10  ;;  %v2074_v52 = vmax.f32 %v1988_v19, 0.0 }
 0x35d   :  { %v2147_v36 = vmul.f32 %v6722_v11, %v2076_v51  ;;  %v2077_v49 = vmax.f32 %v1999_v12, 0.0  ;;  %2259 = vadd.xlane.f32.xlu0 %v2142_v22 }
 0x35e   :  { %v2075_v24 = vmax.f32 %v1991_v23, 0.0  ;;  %v2145_v7 = vmul.f32 %v6722_v11, %v2074_v52 }
 0x35f   :  { %v2148_v31 = vmul.f32 %v6722_v11, %v2077_v49  ;;  %2269 = vadd.xlane.f32.xlu1 %v2147_v36  ;;  %v6926_v49 = vpop.xlane.xlu1 %403 }
 0x360   :  { %v5122_v41 = vpop.f32.mrb[92].mxu0  ;;  %v2146_v22 = vmul.f32 %v6722_v11, %v2075_v24  ;;  %7465 = vst [vmem:[#allocation22_spill] sm:$0xff] %v6926_v49 }
 0x361   :  { %v2003_v30 = vpop.f32.mrb[93].mxu0  ;;  %2271 = vadd.xlane.f32.xlu0 %v2148_v31  ;;  %v2012_v4 = vadd.f32 %v5122_v41, %v6711_v2  ;;  %v6929_v41 = vpop.xlane.xlu0 %401 }
 0x362   :  { %v2004_v51 = vadd.f32 %v6711_v2, %v2003_v30  ;;  %v5123_v19 = vpop.f32.mrb[94].mxu0  ;;  %v4732_v30 = vunpack.c.h.bf16 %v6660_v17 }
 0x363   :  { %v2006_v12 = vpop.f32.mrb[95].mxu0  ;;  %2265 = vadd.xlane.f32.xlu1 %v2145_v7  ;;  %v2015_v23 = vadd.f32 %v5123_v19, %v6711_v2  ;;  %v2080_v52 = vmax.f32 %v2012_v4, 0.0  ;;  %v5718_v19 = vld [vmem:[%s7440_s1] ss:$0 sm:$0xff] }
 0x364   :  { %v2078_v10 = vmax.f32 %v2004_v51, 0.0  ;;  %v2007_v36 = vadd.f32 %v6711_v2, %v2006_v12  ;;  %v6934_v51 = vpop.xlane.xlu1 %407 }
 0x365   :  { %2267 = vadd.xlane.f32.xlu0 %v2146_v22  ;;  %v2081_v37 = vmax.f32 %v2015_v23, 0.0  ;;  %v2151_v7 = vmul.f32 %v6722_v11, %v2080_v52  ;;  %7466 = vst [vmem:[#allocation23_spill] sm:$0xff] %v6934_v51  ;;  %v6937_v4 = vpop.xlane.xlu0 %405  ;;  %v290_v22 = vmul.f32 %v5718_v19, %v4732_v30  ;;  %v6950_v23 = vld [vmem:[#allocation3] ss:$0 sm:$0xff] }
 0x366   :  { %v2149_v31 = vmul.f32 %v6722_v11, %v2078_v10  ;;  %v2079_v28 = vmax.f32 %v2007_v36, 0.0  ;;  %7467 = vst [vmem:[#allocation24_spill] sm:$0xff] %v6937_v4 }
 0x367   :  { %v2152_v2 = vmul.f32 %v6722_v11, %v2081_v37 }
 0x368   :  { %v2150_v24 = vmul.f32 %v6722_v11, %v2079_v28  ;;  %2273 = vadd.xlane.f32.xlu1 %v2149_v31  ;;  %v6942_v17 = vpop.xlane.xlu1 %411 }
 0x369   :  { %7468 = vst [vmem:[#allocation25_spill] sm:$0xff] %v6942_v17  ;;  %v6944_v28 = vpop.xlane.xlu0 %409 }
 0x36a   :  { %2275 = vadd.xlane.f32.xlu0 %v2150_v24  ;;  %7469 = vst [vmem:[#allocation26_spill] sm:$0xff] %v6944_v28 }
 0x36c   :  { %2277 = vadd.xlane.f32.xlu1 %v2151_v7  ;;  %v6946_v12 = vpop.xlane.xlu1 %415 }
 0x36d   :  { %7470 = vst [vmem:[#allocation27_spill] sm:$0xff] %v6946_v12  ;;  %v6948_v10 = vpop.xlane.xlu0 %413 }
 0x36e   :  { %2279 = vadd.xlane.f32.xlu0 %v2152_v2  ;;  %7471 = vst [vmem:[#allocation28_spill] sm:$0xff] %v6948_v10 }
 0x370   :  { %417 = vadd.xlane.f32.xlu1 %v290_v22 }
 0x37c   :  { %v2158_v11 = vpop.xlane.xlu1 %2157 }
 0x37d   :  { %v2290_v37 = vadd.f32 %v6950_v23, %v2158_v11 }
 0x37e   :  { %v2160_v36 = vpop.xlane.xlu0 %2159 }
 0x37f   :  { %v4479_v52 = vmul.f32 -1.442695, %v2290_v37  ;;  %v2291_v31 = vadd.f32 %v6950_v23, %v2160_v36 }
 0x380   :  { %v2154_v30 = vpop.xlane.xlu1 %2153 }
 0x381   :  { %5202 = vpow2.f32 %v4479_v52  ;;  %v4480_v24 = vmul.f32 -1.442695, %v2291_v31  ;;  %v2288_v7 = vadd.f32 %v6950_v23, %v2154_v30 }
 0x382   :  { %v2156_v2 = vpop.xlane.xlu0 %2155 }
 0x383   :  { %5204 = vpow2.f32 %v4480_v24  ;;  %v4477_v19 = vmul.f32 -1.442695, %v2288_v7  ;;  %v2289_v22 = vadd.f32 %v6950_v23, %v2156_v2 }
 0x384   :  { %v2166_v12 = vpop.xlane.xlu1 %2165 }
 0x385   :  { %5206 = vpow2.f32 %v4477_v19  ;;  %v4478_v10 = vmul.f32 -1.442695, %v2289_v22  ;;  %v2294_v17 = vadd.f32 %v6950_v23, %v2166_v12 }
 0x386   :  { %v2168_v11 = vpop.xlane.xlu0 %2167 }
 0x387   :  { %5208 = vpow2.f32 %v4478_v10  ;;  %v4483_v37 = vmul.f32 -1.442695, %v2294_v17  ;;  %v2295_v36 = vadd.f32 %v6950_v23, %v2168_v11 }
 0x388   :  { %v2162_v4 = vpop.xlane.xlu1 %2161 }
 0x389   :  { %5210 = vpow2.f32 %v4483_v37  ;;  %v4484_v52 = vmul.f32 -1.442695, %v2295_v36  ;;  %v2292_v31 = vadd.f32 %v6950_v23, %v2162_v4 }
 0x38a   :  { %v2164_v30 = vpop.xlane.xlu0 %2163 }
 0x38b   :  { %v5203_v24 = vpop.eup %5202  ;;  %5212 = vpow2.f32 %v4484_v52  ;;  %v4481_v7 = vmul.f32 -1.442695, %v2292_v31  ;;  %v2293_v2 = vadd.f32 %v6950_v23, %v2164_v30 }
 0x38c   :  { %v2546_v19 = vadd.f32 1.0, %v5203_v24  ;;  %v2174_v22 = vpop.xlane.xlu1 %2173 }
 0x38d   :  { %v5205_v49 = vpop.eup %5204  ;;  %5214 = vpow2.f32 %v4481_v7  ;;  %v4482_v12 = vmul.f32 -1.442695, %v2293_v2  ;;  %v2298_v17 = vadd.f32 %v6950_v23, %v2174_v22 }
 0x38e   :  { %5216 = vrcp.f32 %v2546_v19  ;;  %v2547_v10 = vadd.f32 1.0, %v5205_v49  ;;  %v2176_v11 = vpop.xlane.xlu0 %2175 }
 0x38f   :  { %v5207_v37 = vpop.eup %5206  ;;  %5218 = vpow2.f32 %v4482_v12  ;;  %v4487_v36 = vmul.f32 -1.442695, %v2298_v17  ;;  %v2299_v4 = vadd.f32 %v6950_v23, %v2176_v11 }
 0x390   :  { %5220 = vrcp.f32 %v2547_v10  ;;  %v2544_v52 = vadd.f32 1.0, %v5207_v37  ;;  %v2170_v31 = vpop.xlane.xlu1 %2169 }
 0x391   :  { %v5209_v28 = vpop.eup %5208  ;;  %5222 = vpow2.f32 %v4487_v36  ;;  %v4488_v30 = vmul.f32 -1.442695, %v2299_v4  ;;  %v2296_v24 = vadd.f32 %v6950_v23, %v2170_v31  ;;  %v6965_v36 = vld [vmem:[#allocation2] ss:$0 sm:$0xff] }
 0x392   :  { %5224 = vrcp.f32 %v2544_v52  ;;  %v2545_v7 = vadd.f32 1.0, %v5209_v28  ;;  %v2172_v2 = vpop.xlane.xlu0 %2171  ;;  %v428_v31 = vadd.f32 %v6965_v36, %v6684_v55  ;;  %v426_v55 = vadd.f32 %v6965_v36, %v6682_v48 }
 0x393   :  { %v5211_v22 = vpop.eup %5210  ;;  %5226 = vpow2.f32 %v4488_v30  ;;  %v4485_v49 = vmul.f32 -1.442695, %v2296_v24  ;;  %v2297_v19 = vadd.f32 %v6950_v23, %v2172_v2  ;;  %v432_v48 = vadd.f32 %v6965_v36, %v6694_v20 }
 0x394   :  { %5228 = vrcp.f32 %v2545_v7  ;;  %v2550_v12 = vadd.f32 1.0, %v5211_v22  ;;  %v2182_v17 = vpop.xlane.xlu1 %2181  ;;  %v430_v20 = vadd.f32 %v6965_v36, %v6690_v58  ;;  %v436_v58 = vadd.f32 %v6965_v36, %v6702_v63 }
 0x395   :  { %v5213_v11 = vpop.eup %5212  ;;  %5230 = vpow2.f32 %v4485_v49  ;;  %v4486_v10 = vmul.f32 -1.442695, %v2297_v19  ;;  %v2302_v37 = vadd.f32 %v6950_v23, %v2182_v17  ;;  %v429_v49 = vadd.f32 %v6965_v36, %v6688_v57 }
 0x396   :  { %5232 = vrcp.f32 %v2550_v12  ;;  %v2551_v4 = vadd.f32 1.0, %v5213_v11  ;;  %v2184_v52 = vpop.xlane.xlu0 %2183  ;;  %v427_v57 = vadd.f32 %v6965_v36, %v6686_v56  ;;  %v433_v56 = vadd.f32 %v6965_v36, %v6696_v60 }
 0x397   :  { %v5215_v28 = vpop.eup %5214  ;;  %5234 = vpow2.f32 %v4486_v10  ;;  %v4491_v30 = vmul.f32 -1.442695, %v2302_v37  ;;  %v2303_v24 = vadd.f32 %v6950_v23, %v2184_v52  ;;  %v431_v60 = vadd.f32 %v6965_v36, %v6692_v59 }
 0x398   :  { %v5217_v7 = vpop.eup %5216  ;;  %5236 = vrcp.f32 %v2551_v4  ;;  %v2548_v2 = vadd.f32 1.0, %v5215_v28  ;;  %v434_v63 = vadd.f32 %v6965_v36, %v6698_v61 }
 0x399   :  { %v5219_v22 = vpop.eup %5218  ;;  %v2738_v19 = vadd.f32 %v5217_v7, %v428_v31  ;;  %5238 = vpow2.f32 %v4491_v30  ;;  %v4492_v12 = vmul.f32 -1.442695, %v2303_v24 }
 0x39a   :  { %v5221_v17 = vpop.eup %5220  ;;  %5240 = vrcp.f32 %v2548_v2  ;;  %v2549_v11 = vadd.f32 1.0, %v5219_v22 }
 0x39b   :  { %v5223_v51 = vpop.eup %5222  ;;  %v4543_v10 = vmul.f32 -1.442695, %v2738_v19  ;;  %v2739_v37 = vadd.f32 %v5221_v17, %v429_v49  ;;  %5242 = vpow2.f32 %v4492_v12 }
 0x39c   :  { %v5225_v52 = vpop.eup %5224  ;;  %5244 = vrcp.f32 %v2549_v11  ;;  %v2554_v4 = vadd.f32 1.0, %v5223_v51 }
 0x39d   :  { %v5227_v28 = vpop.eup %5226  ;;  %5246 = vpow2.f32 %v4543_v10  ;;  %v4544_v31 = vmul.f32 -1.442695, %v2739_v37  ;;  %v2736_v30 = vadd.f32 %v5225_v52, %v426_v55  ;;  %v6980_v37 = vpop.xlane.xlu1 %2177 }
 0x39e   :  { %v5229_v24 = vpop.eup %5228  ;;  %5248 = vrcp.f32 %v2554_v4  ;;  %v2555_v7 = vadd.f32 1.0, %v5227_v28 }
 0x39f   :  { %v5231_v2 = vpop.eup %5230  ;;  %5250 = vpow2.f32 %v4544_v31  ;;  %v4541_v22 = vmul.f32 -1.442695, %v2736_v30  ;;  %v2737_v49 = vadd.f32 %v5229_v24, %v427_v57 }
 0x3a0   :  { %v5233_v19 = vpop.eup %5232  ;;  %5252 = vrcp.f32 %v2555_v7  ;;  %v2552_v51 = vadd.f32 1.0, %v5231_v2 }
 0x3a1   :  { %v5235_v12 = vpop.eup %5234  ;;  %5254 = vpow2.f32 %v4541_v22  ;;  %v4542_v17 = vmul.f32 -1.442695, %v2737_v49  ;;  %v2742_v11 = vadd.f32 %v5233_v19, %v432_v48  ;;  %v6986_v22 = vpop.xlane.xlu0 %2179 }
 0x3a2   :  { %v5237_v55 = vpop.eup %5236  ;;  %5256 = vrcp.f32 %v2552_v51  ;;  %v2553_v10 = vadd.f32 1.0, %v5235_v12 }
 0x3a3   :  { %v5239_v52 = vpop.eup %5238  ;;  %5258 = vpow2.f32 %v4542_v17  ;;  %v4547_v4 = vmul.f32 -1.442695, %v2742_v11  ;;  %v2743_v28 = vadd.f32 %v5237_v55, %v433_v56  ;;  %v6990_v17 = vpop.xlane.xlu1 %2189  ;;  %v437_v11 = vadd.f32 %v6965_v36, %v6704_v0 }
 0x3a4   :  { %v5241_v57 = vpop.eup %5240  ;;  %5260 = vrcp.f32 %v2553_v10  ;;  %v2558_v31 = vadd.f32 1.0, %v5239_v52  ;;  %v435_v0 = vadd.f32 %v6965_v36, %v6700_v62  ;;  %v441_v62 = vadd.f32 %v6965_v36, %v6726_v21 }
 0x3a5   :  { %v5243_v30 = vpop.eup %5242  ;;  %5262 = vpow2.f32 %v4547_v4  ;;  %v4548_v24 = vmul.f32 -1.442695, %v2743_v28  ;;  %v2740_v7 = vadd.f32 %v5241_v57, %v430_v20 }
 0x3a6   :  { %v5245_v2 = vpop.eup %5244  ;;  %5264 = vrcp.f32 %v2558_v31  ;;  %v2559_v48 = vadd.f32 1.0, %v5243_v30 }
 0x3a7   :  { %v5247_v49 = vpop.eup %5246  ;;  %5266 = vpow2.f32 %v4548_v24  ;;  %v4545_v19 = vmul.f32 -1.442695, %v2740_v7  ;;  %v2741_v51 = vadd.f32 %v5245_v2, %v431_v60  ;;  %v6996_v60 = vpop.xlane.xlu0 %2191 }
 0x3a8   :  { %v5249_v12 = vpop.eup %5248  ;;  %v2994_v56 = vadd.f32 1.0, %v5247_v49  ;;  %5268 = vrcp.f32 %v2559_v48 }
 0x3a9   :  { %v5251_v59 = vpop.eup %5250  ;;  %5270 = vpow2.f32 %v4545_v19  ;;  %v4546_v55 = vmul.f32 -1.442695, %v2741_v51  ;;  %v2746_v10 = vadd.f32 %v5249_v12, %v436_v58  ;;  %v7000_v58 = vpop.xlane.xlu1 %2185  ;;  %v440_v19 = vadd.f32 %v6965_v36, %v6715_v5 }
 0x3aa   :  { %v5253_v52 = vpop.eup %5252  ;;  %5272 = vrcp.f32 %v2994_v56  ;;  %v2995_v20 = vadd.f32 1.0, %v5251_v59 }
 0x3ab   :  { %v5255_v4 = vpop.eup %5254  ;;  %5274 = vpow2.f32 %v4546_v55  ;;  %v4551_v28 = vmul.f32 -1.442695, %v2746_v10  ;;  %v2747_v57 = vadd.f32 %v5253_v52, %v437_v11 }
 0x3ac   :  { %v5257_v31 = vpop.eup %5256  ;;  %5276 = vrcp.f32 %v2995_v20  ;;  %v2992_v30 = vadd.f32 1.0, %v5255_v4  ;;  %v2188_v4 = vpop.xlane.xlu0 %2187 }
 0x3ad   :  { %v5259_v24 = vpop.eup %5258  ;;  %5278 = vpow2.f32 %v4551_v28  ;;  %v4552_v7 = vmul.f32 -1.442695, %v2747_v57  ;;  %v2744_v2 = vadd.f32 %v5257_v31, %v434_v63 }
 0x3ae   :  { %v5261_v48 = vpop.eup %5260  ;;  %5280 = vrcp.f32 %v2992_v30  ;;  %v2993_v49 = vadd.f32 1.0, %v5259_v24  ;;  %v2198_v30 = vpop.xlane.xlu1 %2197 }
 0x3af   :  { %v5263_v61 = vpop.eup %5262  ;;  %5282 = vpow2.f32 %v4552_v7  ;;  %v4549_v51 = vmul.f32 -1.442695, %v2744_v2  ;;  %v2745_v12 = vadd.f32 %v5261_v48, %v435_v0  ;;  %v2300_v0 = vadd.f32 %v6950_v23, %v6980_v37 }
 0x3b0   :  { %v5265_v56 = vpop.eup %5264  ;;  %5284 = vrcp.f32 %v2993_v49  ;;  %v2998_v59 = vadd.f32 1.0, %v5263_v61  ;;  %v2301_v49 = vadd.f32 %v6950_v23, %v6986_v22 }
 0x3b1   :  { %v5267_v11 = vpop.eup %5266  ;;  %5286 = vpow2.f32 %v4549_v51  ;;  %v4550_v55 = vmul.f32 -1.442695, %v2745_v12  ;;  %v2750_v10 = vadd.f32 %v5265_v56, %v440_v19  ;;  %v2200_v51 = vpop.xlane.xlu0 %2199  ;;  %v4489_v56 = vmul.f32 -1.442695, %v2300_v0 }
 0x3b2   :  { %v5269_v52 = vpop.eup %5268  ;;  %5288 = vrcp.f32 %v2998_v59  ;;  %v2999_v20 = vadd.f32 1.0, %v5267_v11  ;;  %v2306_v59 = vadd.f32 %v6950_v23, %v6990_v17  ;;  %v2194_v22 = vpop.xlane.xlu1 %2193 }
 0x3b3   :  { %v5271_v63 = vpop.eup %5270  ;;  %5290 = vpow2.f32 %v4550_v55  ;;  %v4555_v5 = vmul.f32 -1.442695, %v2750_v10  ;;  %v2751_v28 = vadd.f32 %v5269_v52, %v441_v62  ;;  %v4490_v10 = vmul.f32 -1.442695, %v2301_v49 }
 0x3b4   :  { %v5273_v57 = vpop.eup %5272  ;;  %5292 = vrcp.f32 %v2999_v20  ;;  %v2996_v31 = vadd.f32 1.0, %v5271_v63  ;;  %v2307_v52 = vadd.f32 %v6950_v23, %v6996_v60  ;;  %v4495_v17 = vmul.f32 -1.442695, %v2306_v59 }
 0x3b5   :  { %v5275_v24 = vpop.eup %5274  ;;  %3187 = vst.msk [vmem:[%s7451_s13 + $0x10] sm:$0xff] %vm3184_vm0, %v5273_v57  ;;  %5294 = vpow2.f32 %v4555_v5  ;;  %v4556_v21 = vmul.f32 -1.442695, %v2751_v28  ;;  %v2304_v28 = vadd.f32 %v6950_v23, %v7000_v58  ;;  %v2196_v60 = vpop.xlane.xlu0 %2195  ;;  %v2311_v58 = vadd.f32 %v6950_v23, %v2200_v51  ;;  %v3249_v51 = vld [vmem:[%s7450_s12] sm:$0xff] }
 0x3b6   :  { %v5277_v7 = vpop.eup %5276  ;;  %5296 = vrcp.f32 %v2996_v31  ;;  %v2997_v2 = vadd.f32 1.0, %v5275_v24  ;;  %v2305_v24 = vadd.f32 %v6950_v23, %v2188_v4  ;;  %v4496_v0 = vmul.f32 -1.442695, %v2307_v52  ;;  %v2206_v49 = vpop.xlane.xlu1 %2205 }
 0x3b7   :  { %v5279_v48 = vpop.eup %5278  ;;  %3188 = vst.msk [vmem:[%s7451_s13 + $0x18] sm:$0xff] %vm3184_vm0, %v5277_v7  ;;  %5298 = vpow2.f32 %v4556_v21  ;;  %v2310_v7 = vadd.f32 %v6950_v23, %v2198_v30  ;;  %v4493_v4 = vmul.f32 -1.442695, %v2304_v28 }
 0x3b8   :  { %v5281_v61 = vpop.eup %5280  ;;  %5300 = vrcp.f32 %v2997_v2  ;;  %v3002_v19 = vadd.f32 1.0, %v5279_v48  ;;  %v4494_v30 = vmul.f32 -1.442695, %v2305_v24 }
 0x3b9   :  { %v5283_v12 = vpop.eup %5282  ;;  %3185 = vst.msk [vmem:[%s7451_s13] sm:$0xff] %vm3184_vm0, %v5281_v61  ;;  %5302 = vlog2.f32 %v5281_v61  ;;  %v3505_v37 = vsub.f32 1.0, %v5281_v61  ;;  %v4499_v59 = vmul.f32 -1.442695, %v2310_v7 }
 0x3ba   :  { %v5285_v11 = vpop.eup %5284  ;;  %5304 = vrcp.f32 %v3002_v19  ;;  %v3003_v62 = vadd.f32 1.0, %v5283_v12  ;;  %v2308_v19 = vadd.f32 %v6950_v23, %v2194_v22 }
 0x3bb   :  { %v5287_v55 = vpop.eup %5286  ;;  %5306 = vlog2.f32 %v3505_v37  ;;  %3186 = vst.msk [vmem:[%s7451_s13 + $0x8] sm:$0xff] %vm3184_vm0, %v5285_v11  ;;  %v2309_v11 = vadd.f32 %v6950_v23, %v2196_v60 }
 0x3bc   :  { %v5289_v20 = vpop.eup %5288  ;;  %5308 = vrcp.f32 %v3003_v62  ;;  %v3000_v63 = vadd.f32 1.0, %v5287_v55  ;;  %v4500_v55 = vmul.f32 -1.442695, %v2311_v58 }
 0x3bd   :  { %v5291_v5 = vpop.eup %5290  ;;  %3191 = vst.msk [vmem:[%s7451_s13 + $0x30] sm:$0xff] %vm3184_vm0, %v5289_v20  ;;  %5310 = vpow2.f32 %v4489_v56  ;;  %v4497_v20 = vmul.f32 -1.442695, %v2308_v19  ;;  %v4498_v60 = vmul.f32 -1.442695, %v2309_v11 }
 0x3be   :  { %v5293_v57 = vpop.eup %5292  ;;  %5312 = vrcp.f32 %v3000_v63  ;;  %v3001_v31 = vadd.f32 1.0, %v5291_v5  ;;  %v2314_v63 = vadd.f32 %v6950_v23, %v2206_v49 }
 0x3bf   :  { %v5295_v21 = vpop.eup %5294  ;;  %3192 = vst.msk [vmem:[%s7451_s13 + $0x38] sm:$0xff] %vm3184_vm0, %v5293_v57  ;;  %5314 = vpow2.f32 %v4490_v10  ;;  %v2208_v10 = vpop.xlane.xlu0 %2207 }
 0x3c0   :  { %v5297_v2 = vpop.eup %5296  ;;  %5316 = vrcp.f32 %v3001_v31  ;;  %v3006_v48 = vadd.f32 1.0, %v5295_v21  ;;  %v2202_v31 = vpop.xlane.xlu1 %2201  ;;  %v2315_v21 = vadd.f32 %v6950_v23, %v2208_v10  ;;  %v4503_v58 = vmul.f32 -1.442695, %v2314_v63 }
 0x3c1   :  { %v5299_v61 = vpop.eup %5298  ;;  %3189 = vst.msk [vmem:[%s7451_s13 + $0x20] sm:$0xff] %vm3184_vm0, %v5297_v2  ;;  %5318 = vpow2.f32 %v4495_v17  ;;  %v3825_v17 = vsub.f32 1.0, %v3249_v51  ;;  %v2312_v49 = vadd.f32 %v6950_v23, %v2202_v31 }
 0x3c2   :  { %v5301_v12 = vpop.eup %5300  ;;  %5320 = vrcp.f32 %v3006_v48  ;;  %v3007_v37 = vadd.f32 1.0, %v5299_v61 }
 0x3c3   :  { %v5303_v56 = vpop.eup %5302  ;;  %3190 = vst.msk [vmem:[%s7451_s13 + $0x28] sm:$0xff] %vm3184_vm0, %v5301_v12  ;;  %5322 = vpow2.f32 %v4496_v0 }
 0x3c4   :  { %v5305_v62 = vpop.eup %5304  ;;  %v3314_v22 = vmul.f32 0.6931472, %v5303_v56  ;;  %5324 = vrcp.f32 %v3007_v37 }
 0x3c5   :  { %v5307_v52 = vpop.eup %5306  ;;  %3195 = vst.msk [vmem:[%s7451_s13 + $0x50] sm:$0xff] %vm3184_vm0, %v5305_v62  ;;  %5326 = vpow2.f32 %v4493_v4  ;;  %v2204_v62 = vpop.xlane.xlu0 %2203 }
 0x3c6   :  { %v5309_v5 = vpop.eup %5308  ;;  %v3441_v28 = vmax.f32 %v3314_v22, -100.0  ;;  %v3570_v57 = vmul.f32 0.6931472, %v5307_v52  ;;  %5328 = vpow2.f32 %v4494_v30  ;;  %v4504_v30 = vmul.f32 -1.442695, %v2315_v21 }
 0x3c7   :  { %v5311_v24 = vpop.eup %5310  ;;  %3196 = vst.msk [vmem:[%s7451_s13 + $0x58] sm:$0xff] %vm3184_vm0, %v5309_v5  ;;  %5330 = vpow2.f32 %v4499_v59  ;;  %v2313_v63 = vadd.f32 %v6950_v23, %v2204_v62  ;;  %v438_v21 = vadd.f32 %v6965_v36, %v6706_v1  ;;  %v444_v1 = vadd.f32 %v6965_v36, %v6740_v40 }
 0x3c8   :  { %v5313_v0 = vpop.eup %5312  ;;  %v3697_v7 = vmax.f32 %v3570_v57, -100.0  ;;  %v2556_v2 = vadd.f32 1.0, %v5311_v24  ;;  %5332 = vpow2.f32 %v4500_v55  ;;  %v3761_v4 = vmul.f32 %v3441_v28, %v3249_v51 }
 0x3c9   :  { %v5315_v48 = vpop.eup %5314  ;;  %3193 = vst.msk [vmem:[%s7451_s13 + $0x40] sm:$0xff] %vm3184_vm0, %v5313_v0  ;;  %5334 = vpow2.f32 %v4497_v20  ;;  %v4501_v51 = vmul.f32 -1.442695, %v2312_v49  ;;  %v439_v49 = vadd.f32 %v6965_v36, %v6713_v3  ;;  %v445_v3 = vadd.f32 %v6965_v36, %v6744_v54 }
 0x3ca   :  { %v5317_v61 = vpop.eup %5316  ;;  %v3889_v19 = vmul.f32 %v3825_v17, %v3697_v7  ;;  %5336 = vrcp.f32 %v2556_v2  ;;  %v2557_v12 = vadd.f32 1.0, %v5315_v48  ;;  %v4502_v7 = vmul.f32 -1.442695, %v2313_v63 }
 0x3cb   :  { %v5319_v37 = vpop.eup %5318  ;;  %3194 = vst.msk [vmem:[%s7451_s13 + $0x48] sm:$0xff] %vm3184_vm0, %v5317_v61  ;;  %5338 = vpow2.f32 %v4498_v60  ;;  %v442_v40 = vadd.f32 %v6965_v36, %v6729_v25  ;;  %v449_v25 = vadd.f32 %v6965_v36, %v6766_v33  ;;  %v447_v33 = vadd.f32 %v6965_v36, %v6755_v9 }
 0x3cc   :  { %v5321_v56 = vpop.eup %5320  ;;  %v3953_v59 = vadd.f32 %v3889_v19, %v3761_v4  ;;  %5340 = vrcp.f32 %v2557_v12  ;;  %v2562_v11 = vadd.f32 1.0, %v5319_v37  ;;  %v2214_v4 = vpop.xlane.xlu1 %2213  ;;  %v453_v9 = vadd.f32 %v6965_v36, %v6784_v13 }
 0x3cd   :  { %v5323_v22 = vpop.eup %5322  ;;  %3199 = vst.msk [vmem:[%s7451_s13 + $0x70] sm:$0xff] %vm3184_vm0, %v5321_v56  ;;  %5342 = vpow2.f32 %v4503_v58  ;;  %v2318_v62 = vadd.f32 %v6950_v23, %v2214_v4 }
 0x3ce   :  { %v5325_v55 = vpop.eup %5324  ;;  %v4017_v10 = vsub.f32 0.0, %v3953_v59  ;;  %5344 = vrcp.f32 %v2562_v11  ;;  %v2563_v52 = vadd.f32 1.0, %v5323_v22 }
 0x3cf   :  { %v5327_v20 = vpop.eup %5326  ;;  %3200 = vst.msk [vmem:[%s7451_s13 + $0x78] sm:$0xff] %vm3184_vm0, %v5325_v55  ;;  %5346 = vpow2.f32 %v4504_v30  ;;  %v4507_v54 = vmul.f32 -1.442695, %v2318_v62 }
 0x3d0   :  { %v5329_v5 = vpop.eup %5328  ;;  %4340 = vst.msk [vmem:[%s7452_s14] sm:$0xff] %vm3184_vm0, %v4017_v10  ;;  %5348 = vrcp.f32 %v2563_v52  ;;  %v2560_v17 = vadd.f32 1.0, %v5327_v20 }
 0x3d1   :  { %v5331_v28 = vpop.eup %5330  ;;  %v2561_v57 = vadd.f32 1.0, %v5329_v5  ;;  %5350 = vpow2.f32 %v4501_v51 }
 0x3d2   :  { %v5333_v31 = vpop.eup %5332  ;;  %5352 = vrcp.f32 %v2560_v17  ;;  %v2566_v24 = vadd.f32 1.0, %v5331_v28  ;;  %v443_v28 = vadd.f32 %v6965_v36, %v6735_v34  ;;  %v446_v34 = vadd.f32 %v6965_v36, %v6749_v43 }
 0x3d3   :  { %v5335_v60 = vpop.eup %5334  ;;  %5354 = vrcp.f32 %v2561_v57  ;;  %v2567_v0 = vadd.f32 1.0, %v5333_v31 }
 0x3d4   :  { %v5337_v2 = vpop.eup %5336  ;;  %5356 = vrcp.f32 %v2566_v24  ;;  %v2564_v48 = vadd.f32 1.0, %v5335_v60  ;;  %v448_v24 = vadd.f32 %v6965_v36, %v6758_v18 }
 0x3d5   :  { %v5339_v58 = vpop.eup %5338  ;;  %v2748_v61 = vadd.f32 %v5337_v2, %v438_v21  ;;  %5358 = vrcp.f32 %v2567_v0  ;;  %v7105_v2 = vpop.xlane.xlu0 %2215 }
 0x3d6   :  { %v5341_v19 = vpop.eup %5340  ;;  %5360 = vrcp.f32 %v2564_v48  ;;  %v2565_v12 = vadd.f32 1.0, %v5339_v58 }
 0x3d7   :  { %v5343_v37 = vpop.eup %5342  ;;  %v4553_v30 = vmul.f32 -1.442695, %v2748_v61  ;;  %v2749_v56 = vadd.f32 %v5341_v19, %v439_v49  ;;  %5362 = vpow2.f32 %v4502_v7  ;;  %v7109_v19 = vpop.xlane.xlu1 %2209 }
 0x3d8   :  { %v5345_v59 = vpop.eup %5344  ;;  %5364 = vrcp.f32 %v2565_v12  ;;  %v2570_v11 = vadd.f32 1.0, %v5343_v37 }
 0x3d9   :  { %v5347_v22 = vpop.eup %5346  ;;  %5366 = vpow2.f32 %v4553_v30  ;;  %v4554_v51 = vmul.f32 -1.442695, %v2749_v56  ;;  %v2754_v55 = vadd.f32 %v5345_v59, %v444_v1  ;;  %v452_v59 = vadd.f32 %v6965_v36, %v6780_v14 }
 0x3da   :  { %v5349_v10 = vpop.eup %5348  ;;  %5368 = vrcp.f32 %v2570_v11  ;;  %v2571_v52 = vadd.f32 1.0, %v5347_v22  ;;  %v450_v14 = vadd.f32 %v6965_v36, %v6769_v38 }
 0x3db   :  { %v5351_v20 = vpop.eup %5350  ;;  %5370 = vpow2.f32 %v4554_v51  ;;  %v4559_v63 = vmul.f32 -1.442695, %v2754_v55  ;;  %v2755_v5 = vadd.f32 %v5349_v10, %v445_v3  ;;  %v2212_v51 = vpop.xlane.xlu0 %2211 }
 0x3dc   :  { %v5353_v17 = vpop.eup %5352  ;;  %5372 = vrcp.f32 %v2571_v52  ;;  %v2568_v57 = vadd.f32 1.0, %v5351_v20 }
 0x3dd   :  { %v5355_v31 = vpop.eup %5354  ;;  %5374 = vpow2.f32 %v4559_v63  ;;  %v4560_v60 = vmul.f32 -1.442695, %v2755_v5  ;;  %v2752_v21 = vadd.f32 %v5353_v17, %v442_v40  ;;  %v2222_v63 = vpop.xlane.xlu1 %2221 }
 0x3de   :  { %v5357_v0 = vpop.eup %5356  ;;  %v2753_v7 = vadd.f32 %v5355_v31, %v443_v28  ;;  %5376 = vrcp.f32 %v2568_v57 }
 0x3df   :  { %v5359_v48 = vpop.eup %5358  ;;  %5378 = vpow2.f32 %v4560_v60  ;;  %v4557_v58 = vmul.f32 -1.442695, %v2752_v21  ;;  %v2758_v49 = vadd.f32 %v5357_v0, %v448_v24  ;;  %v2224_v0 = vpop.xlane.xlu0 %2223 }
 0x3e0   :  { %v5361_v61 = vpop.eup %5360  ;;  %v4558_v18 = vmul.f32 -1.442695, %v2753_v7  ;;  %v2759_v4 = vadd.f32 %v5359_v48, %v449_v25  ;;  %5380 = vpow2.f32 %v4507_v54 }
 0x3e1   :  { %v5363_v12 = vpop.eup %5362  ;;  %5382 = vpow2.f32 %v4557_v58  ;;  %v4563_v37 = vmul.f32 -1.442695, %v2758_v49  ;;  %v2756_v1 = vadd.f32 %v5361_v61, %v446_v34  ;;  %v2218_v34 = vpop.xlane.xlu1 %2217 }
 0x3e2   :  { %v5365_v30 = vpop.eup %5364  ;;  %5384 = vpow2.f32 %v4558_v18  ;;  %v4564_v56 = vmul.f32 -1.442695, %v2759_v4 }
 0x3e3   :  { %v5367_v43 = vpop.eup %5366  ;;  %5386 = vpow2.f32 %v4563_v37  ;;  %v4561_v11 = vmul.f32 -1.442695, %v2756_v1  ;;  %v2757_v62 = vadd.f32 %v5365_v30, %v447_v33  ;;  %v2569_v37 = vadd.f32 1.0, %v5363_v12 }
 0x3e4   :  { %v5369_v22 = vpop.eup %5368  ;;  %v3004_v3 = vadd.f32 1.0, %v5367_v43  ;;  %5388 = vpow2.f32 %v4564_v56  ;;  %v2319_v1 = vadd.f32 %v6950_v23, %v7105_v2  ;;  %v2220_v43 = vpop.xlane.xlu0 %2219 }
 0x3e5   :  { %v5371_v55 = vpop.eup %5370  ;;  %5390 = vpow2.f32 %v4561_v11  ;;  %v4562_v10 = vmul.f32 -1.442695, %v2757_v62  ;;  %v2762_v52 = vadd.f32 %v5369_v22, %v452_v59  ;;  %v2316_v62 = vadd.f32 %v6950_v23, %v7109_v19 }
 0x3e6   :  { %v5373_v20 = vpop.eup %5372  ;;  %5392 = vrcp.f32 %v3004_v3  ;;  %v3005_v40 = vadd.f32 1.0, %v5371_v55  ;;  %v2230_v3 = vpop.xlane.xlu1 %2229  ;;  %v4508_v55 = vmul.f32 -1.442695, %v2319_v1 }
 0x3e7   :  { %v5375_v5 = vpop.eup %5374  ;;  %5394 = vpow2.f32 %v4562_v10  ;;  %v4567_v17 = vmul.f32 -1.442695, %v2762_v52  ;;  %v2763_v28 = vadd.f32 %v5373_v20, %v453_v9  ;;  %v2317_v9 = vadd.f32 %v6950_v23, %v2212_v51 }
 0x3e8   :  { %v5377_v57 = vpop.eup %5376  ;;  %5396 = vrcp.f32 %v3005_v40  ;;  %v3010_v54 = vadd.f32 1.0, %v5375_v5  ;;  %v2322_v20 = vadd.f32 %v6950_v23, %v2222_v63  ;;  %v4505_v40 = vmul.f32 -1.442695, %v2316_v62 }
 0x3e9   :  { %v5379_v31 = vpop.eup %5378  ;;  %5398 = vpow2.f32 %v4567_v17  ;;  %v4568_v13 = vmul.f32 -1.442695, %v2763_v28  ;;  %v2760_v24 = vadd.f32 %v5377_v57, %v450_v14  ;;  %v2323_v5 = vadd.f32 %v6950_v23, %v2224_v0  ;;  %v2232_v28 = vpop.xlane.xlu0 %2231 }
 0x3ea   :  { %v5381_v60 = vpop.eup %5380  ;;  %5400 = vrcp.f32 %v3010_v54  ;;  %v3011_v21 = vadd.f32 1.0, %v5379_v31  ;;  %v2320_v51 = vadd.f32 %v6950_v23, %v2218_v34  ;;  %v4506_v63 = vmul.f32 -1.442695, %v2317_v9 }
 0x3eb   :  { %v5383_v25 = vpop.eup %5382  ;;  %5402 = vpow2.f32 %v4568_v13  ;;  %v4565_v7 = vmul.f32 -1.442695, %v2760_v24  ;;  %v2574_v11 = vadd.f32 1.0, %v5381_v60  ;;  %v2321_v54 = vadd.f32 %v6950_v23, %v2220_v43 }
 0x3ec   :  { %v5385_v48 = vpop.eup %5384  ;;  %5404 = vrcp.f32 %v3011_v21  ;;  %v3008_v38 = vadd.f32 1.0, %v5383_v25  ;;  %v4511_v24 = vmul.f32 -1.442695, %v2322_v20  ;;  %v2326_v60 = vadd.f32 %v6950_v23, %v2230_v3  ;;  %v2226_v21 = vpop.xlane.xlu1 %2225 }
 0x3ed   :  { %v5387_v58 = vpop.eup %5386  ;;  %v3009_v49 = vadd.f32 1.0, %v5385_v48  ;;  %5406 = vpow2.f32 %v4565_v7  ;;  %v4512_v25 = vmul.f32 -1.442695, %v2323_v5  ;;  %v2327_v7 = vadd.f32 %v6950_v23, %v2232_v28 }
 0x3ee   :  { %v5389_v61 = vpop.eup %5388  ;;  %5408 = vrcp.f32 %v3008_v38  ;;  %v3014_v18 = vadd.f32 1.0, %v5387_v58  ;;  %v4509_v38 = vmul.f32 -1.442695, %v2320_v51  ;;  %v4510_v58 = vmul.f32 -1.442695, %v2321_v54 }
 0x3ef   :  { %v5391_v4 = vpop.eup %5390  ;;  %5410 = vrcp.f32 %v3009_v49  ;;  %v3015_v33 = vadd.f32 1.0, %v5389_v61  ;;  %v2324_v49 = vadd.f32 %v6950_v23, %v2226_v21  ;;  %v4516_v23 = vmul.f32 -1.442695, %v2327_v7 }
 0x3f0   :  { %v5393_v30 = vpop.eup %5392  ;;  %5412 = vrcp.f32 %v3014_v18  ;;  %v3012_v56 = vadd.f32 1.0, %v5391_v4  ;;  %v451_v18 = vadd.f32 %v6965_v36, %v6775_v15  ;;  %v4515_v4 = vmul.f32 -1.442695, %v2326_v60 }
 0x3f1   :  { %v5395_v59 = vpop.eup %5394  ;;  %3197 = vst.msk [vmem:[%s7451_s13 + $0x60] sm:$0xff] %vm3184_vm0, %v5393_v30  ;;  %5414 = vrcp.f32 %v3015_v33  ;;  %v2228_v33 = vpop.xlane.xlu0 %2227  ;;  %v456_v15 = vadd.f32 %v6965_v36, %v6798_v50  ;;  %v4513_v43 = vmul.f32 -1.442695, %v2324_v49 }
 0x3f2   :  { %v5397_v22 = vpop.eup %5396  ;;  %5416 = vrcp.f32 %v3012_v56  ;;  %v3013_v12 = vadd.f32 1.0, %v5395_v59  ;;  %v7175_v59 = vld [vmem:[#allocation3] ss:$0 sm:$0xff] }
 0x3f3   :  { %v5399_v2 = vpop.eup %5398  ;;  %3198 = vst.msk [vmem:[%s7451_s13 + $0x68] sm:$0xff] %vm3184_vm0, %v5397_v22  ;;  %5418 = vrcp.f32 %v2569_v37 }
 0x3f4   :  { %v5401_v10 = vpop.eup %5400  ;;  %5420 = vrcp.f32 %v3013_v12  ;;  %v3018_v52 = vadd.f32 1.0, %v5399_v2 }
 0x3f5   :  { %v5403_v19 = vpop.eup %5402  ;;  %3203 = vst.msk [vmem:[%s7451_s13 + $0x90] sm:$0xff] %vm3184_vm0, %v5401_v10  ;;  %5422 = vrcp.f32 %v2574_v11  ;;  %v2325_v11 = vadd.f32 %v7175_v59, %v2228_v33 }
 0x3f6   :  { %v5405_v14 = vpop.eup %5404  ;;  %5424 = vrcp.f32 %v3018_v52  ;;  %v3019_v17 = vadd.f32 1.0, %v5403_v19 }
 0x3f7   :  { %v5407_v57 = vpop.eup %5406  ;;  %3204 = vst.msk [vmem:[%s7451_s13 + $0x98] sm:$0xff] %vm3184_vm0, %v5405_v14  ;;  %5426 = vpow2.f32 %v4508_v55  ;;  %v4514_v9 = vmul.f32 -1.442695, %v2325_v11 }
 0x3f8   :  { %v5409_v31 = vpop.eup %5408  ;;  %5428 = vrcp.f32 %v3019_v17  ;;  %v3016_v13 = vadd.f32 1.0, %v5407_v57  ;;  %v2238_v17 = vpop.xlane.xlu1 %2237 }
 0x3f9   :  { %v5411_v0 = vpop.eup %5410  ;;  %3201 = vst.msk [vmem:[%s7451_s13 + $0x80] sm:$0xff] %vm3184_vm0, %v5409_v31  ;;  %5430 = vpow2.f32 %v4505_v40  ;;  %v2240_v57 = vpop.xlane.xlu0 %2239 }
 0x3fa   :  { %v5413_v48 = vpop.eup %5412  ;;  %3202 = vst.msk [vmem:[%s7451_s13 + $0x88] sm:$0xff] %vm3184_vm0, %v5411_v0  ;;  %5432 = vrcp.f32 %v3016_v13  ;;  %v2331_v0 = vadd.f32 %v7175_v59, %v2240_v57 }
 0x3fb   :  { %v5415_v34 = vpop.eup %5414  ;;  %3207 = vst.msk [vmem:[%s7451_s13 + $0xb0] sm:$0xff] %vm3184_vm0, %v5413_v48  ;;  %5434 = vpow2.f32 %v4506_v63 }
 0x3fc   :  { %v5417_v61 = vpop.eup %5416  ;;  %3208 = vst.msk [vmem:[%s7451_s13 + $0xb8] sm:$0xff] %vm3184_vm0, %v5415_v34  ;;  %5436 = vpow2.f32 %v4511_v24  ;;  %v2330_v24 = vadd.f32 %v7175_v59, %v2238_v17 }
 0x3fd   :  { %v5419_v37 = vpop.eup %5418  ;;  %3205 = vst.msk [vmem:[%s7451_s13 + $0xa0] sm:$0xff] %vm3184_vm0, %v5417_v61  ;;  %5438 = vpow2.f32 %v4512_v25 }
 0x3fe   :  { %v5421_v1 = vpop.eup %5420  ;;  %v2761_v30 = vadd.f32 %v5419_v37, %v451_v18  ;;  %5440 = vpow2.f32 %v4509_v38  ;;  %v4519_v18 = vmul.f32 -1.442695, %v2330_v24 }
 0x3ff   :  { %v5423_v56 = vpop.eup %5422  ;;  %3206 = vst.msk [vmem:[%s7451_s13 + $0xa8] sm:$0xff] %vm3184_vm0, %v5421_v1  ;;  %5442 = vpow2.f32 %v4510_v58  ;;  %v7192_v58 = vld [vmem:[#allocation2] ss:$0 sm:$0xff] }
 0x400   :  { %v5425_v62 = vpop.eup %5424  ;;  %v4566_v22 = vmul.f32 -1.442695, %v2761_v30  ;;  %v2766_v12 = vadd.f32 %v5423_v56, %v456_v15  ;;  %5444 = vpow2.f32 %v4515_v4  ;;  %v457_v49 = vadd.f32 %v7192_v58, %v6806_v6  ;;  %v2234_v6 = vpop.xlane.xlu1 %2233 }
 0x401   :  { %v5427_v3 = vpop.eup %5426  ;;  %3211 = vst.msk [vmem:[%s7451_s13 + $0xd0] sm:$0xff] %vm3184_vm0, %v5425_v62  ;;  %5446 = vpow2.f32 %v4516_v23  ;;  %v454_v33 = vadd.f32 %v7192_v58, %v6789_v27  ;;  %v4520_v23 = vmul.f32 -1.442695, %v2331_v0  ;;  %v455_v56 = vadd.f32 %v7192_v58, %v6795_v39 }
 0x402   :  { %v5429_v50 = vpop.eup %5428  ;;  %5448 = vpow2.f32 %v4566_v22  ;;  %v4571_v36 = vmul.f32 -1.442695, %v2766_v12  ;;  %v2575_v2 = vadd.f32 1.0, %v5427_v3  ;;  %v460_v62 = vadd.f32 %v7192_v58, %v6820_v46 }
 0x403   :  { %v5431_v55 = vpop.eup %5430  ;;  %3212 = vst.msk [vmem:[%s7451_s13 + $0xd8] sm:$0xff] %vm3184_vm0, %v5429_v50  ;;  %5450 = vpow2.f32 %v4513_v43  ;;  %v461_v3 = vadd.f32 %v7192_v58, %v6824_v47  ;;  %v458_v39 = vadd.f32 %v7192_v58, %v6809_v16 }
 0x404   :  { %v5433_v10 = vpop.eup %5432  ;;  %5452 = vpow2.f32 %v4571_v36  ;;  %v2572_v52 = vadd.f32 1.0, %v5431_v55  ;;  %v459_v55 = vadd.f32 %v7192_v58, %v6815_v32  ;;  %v465_v32 = vadd.f32 %v7192_v58, %v6846_v8 }
 0x405   :  { %v5435_v20 = vpop.eup %5434  ;;  %3209 = vst.msk [vmem:[%s7451_s13 + $0xc0] sm:$0xff] %vm3184_vm0, %v5433_v10  ;;  %5454 = vrcp.f32 %v2575_v2  ;;  %v464_v10 = vadd.f32 %v7192_v58, %v6838_v44 }
 0x406   :  { %v5437_v19 = vpop.eup %5436  ;;  %5456 = vrcp.f32 %v2572_v52  ;;  %v2573_v40 = vadd.f32 1.0, %v5435_v20 }
 0x407   :  { %v5439_v5 = vpop.eup %5438  ;;  %v2578_v14 = vadd.f32 1.0, %v5437_v19  ;;  %5458 = vpow2.f32 %v4514_v9 }
 0x408   :  { %v5441_v51 = vpop.eup %5440  ;;  %5460 = vrcp.f32 %v2573_v40  ;;  %v2579_v28 = vadd.f32 1.0, %v5439_v5  ;;  %v2328_v5 = vadd.f32 %v7175_v59, %v2234_v6 }
 0x409   :  { %v5443_v63 = vpop.eup %5442  ;;  %5462 = vrcp.f32 %v2578_v14  ;;  %v2576_v54 = vadd.f32 1.0, %v5441_v51  ;;  %v7211_v14 = vpop.xlane.xlu0 %2235 }
 0x40a   :  { %v5445_v31 = vpop.eup %5444  ;;  %5464 = vrcp.f32 %v2579_v28  ;;  %v2577_v13 = vadd.f32 1.0, %v5443_v63  ;;  %v7215_v28 = vpop.xlane.xlu1 %2245 }
 0x40b   :  { %v5447_v60 = vpop.eup %5446  ;;  %5466 = vrcp.f32 %v2576_v54  ;;  %v2582_v21 = vadd.f32 1.0, %v5445_v31  ;;  %v462_v31 = vadd.f32 %v7192_v58, %v6829_v45 }
 0x40c   :  { %v5449_v25 = vpop.eup %5448  ;;  %5468 = vrcp.f32 %v2577_v13  ;;  %v2583_v7 = vadd.f32 1.0, %v5447_v60 }
 0x40d   :  { %v5451_v48 = vpop.eup %5450  ;;  %v3017_v38 = vadd.f32 1.0, %v5449_v25  ;;  %5470 = vrcp.f32 %v2582_v21  ;;  %v4517_v21 = vmul.f32 -1.442695, %v2328_v5  ;;  %v2248_v45 = vpop.xlane.xlu0 %2247 }
 0x40e   :  { %v5453_v34 = vpop.eup %5452  ;;  %5472 = vrcp.f32 %v2583_v7  ;;  %v2580_v61 = vadd.f32 1.0, %v5451_v48 }
 0x40f   :  { %v5455_v4 = vpop.eup %5454  ;;  %5474 = vrcp.f32 %v3017_v38  ;;  %v3022_v37 = vadd.f32 1.0, %v5453_v34 }
 0x410   :  { %v5457_v1 = vpop.eup %5456  ;;  %v2767_v15 = vadd.f32 %v5455_v4, %v457_v49  ;;  %5476 = vrcp.f32 %v2580_v61  ;;  %v2242_v61 = vpop.xlane.xlu1 %2241 }
 0x411   :  { %v5459_v30 = vpop.eup %5458  ;;  %5478 = vrcp.f32 %v3022_v37  ;;  %v2764_v43 = vadd.f32 %v5457_v1, %v454_v33  ;;  %v2244_v6 = vpop.xlane.xlu0 %2243 }
 0x412   :  { %v5461_v11 = vpop.eup %5460  ;;  %v4572_v22 = vmul.f32 -1.442695, %v2767_v15  ;;  %v2581_v12 = vadd.f32 1.0, %v5459_v30  ;;  %5480 = vpow2.f32 %v4519_v18  ;;  %v463_v30 = vadd.f32 %v7192_v58, %v6835_v35 }
 0x413   :  { %v5463_v27 = vpop.eup %5462  ;;  %v4569_v50 = vmul.f32 -1.442695, %v2764_v43  ;;  %v2765_v36 = vadd.f32 %v5461_v11, %v455_v56  ;;  %5482 = vpow2.f32 %v4520_v23  ;;  %v2329_v35 = vadd.f32 %v7175_v59, %v7211_v14 }
 0x414   :  { %v5465_v2 = vpop.eup %5464  ;;  %5484 = vpow2.f32 %v4572_v22  ;;  %v2770_v9 = vadd.f32 %v5463_v27, %v460_v62 }
 0x415   :  { %v5467_v46 = vpop.eup %5466  ;;  %5486 = vpow2.f32 %v4569_v50  ;;  %v4570_v52 = vmul.f32 -1.442695, %v2765_v36  ;;  %v2771_v20 = vadd.f32 %v5465_v2, %v461_v3 }
 0x416   :  { %v5469_v47 = vpop.eup %5468  ;;  %v4575_v19 = vmul.f32 -1.442695, %v2770_v9  ;;  %v2768_v40 = vadd.f32 %v5467_v46, %v458_v39  ;;  %5488 = vrcp.f32 %v2581_v12  ;;  %v2254_v12 = vpop.xlane.xlu1 %2253 }
 0x417   :  { %v5471_v16 = vpop.eup %5470  ;;  %5490 = vpow2.f32 %v4570_v52  ;;  %v4576_v17 = vmul.f32 -1.442695, %v2771_v20  ;;  %v2769_v51 = vadd.f32 %v5469_v47, %v459_v55  ;;  %v2334_v20 = vadd.f32 %v7175_v59, %v7215_v28  ;;  %v2256_v47 = vpop.xlane.xlu0 %2255 }
 0x418   :  { %v5473_v44 = vpop.eup %5472  ;;  %5492 = vpow2.f32 %v4575_v19  ;;  %v4573_v57 = vmul.f32 -1.442695, %v2768_v40  ;;  %v2774_v63 = vadd.f32 %v5471_v16, %v464_v10  ;;  %v468_v40 = vadd.f32 %v7192_v58, %v6860_v42 }
 0x419   :  { %v5475_v54 = vpop.eup %5474  ;;  %5494 = vpow2.f32 %v4576_v17  ;;  %v4574_v13 = vmul.f32 -1.442695, %v2769_v51  ;;  %v2775_v24 = vadd.f32 %v5473_v44, %v465_v32  ;;  %v2335_v16 = vadd.f32 %v7175_v59, %v2248_v45 }
 0x41a   :  { %v5477_v60 = vpop.eup %5476  ;;  %3210 = vst.msk [vmem:[%s7451_s13 + $0xc8] sm:$0xff] %vm3184_vm0, %v5475_v54  ;;  %5496 = vpow2.f32 %v4573_v57  ;;  %v4579_v8 = vmul.f32 -1.442695, %v2774_v63  ;;  %v2250_v14 = vpop.xlane.xlu1 %2249  ;;  %v4518_v51 = vmul.f32 -1.442695, %v2329_v35  ;;  %v2332_v63 = vadd.f32 %v7175_v59, %v2242_v61 }
 0x41b   :  { %v5479_v0 = vpop.eup %5478  ;;  %5498 = vpow2.f32 %v4574_v13  ;;  %v4580_v25 = vmul.f32 -1.442695, %v2775_v24  ;;  %v2772_v7 = vadd.f32 %v5477_v60, %v462_v31  ;;  %v469_v54 = vadd.f32 %v7192_v58, %v6864_v29 }
 0x41c   :  { %v5481_v48 = vpop.eup %5480  ;;  %3215 = vst.msk [vmem:[%s7451_s13 + $0xf0] sm:$0xff] %vm3184_vm0, %v5479_v0  ;;  %5500 = vpow2.f32 %v4579_v8  ;;  %v4523_v42 = vmul.f32 -1.442695, %v2334_v20  ;;  %v2333_v31 = vadd.f32 %v7175_v59, %v2244_v6  ;;  %v4524_v60 = vmul.f32 -1.442695, %v2335_v16 }
 0x41d   :  { %v5483_v38 = vpop.eup %5482  ;;  %5502 = vpow2.f32 %v4580_v25  ;;  %v4577_v34 = vmul.f32 -1.442695, %v2772_v7  ;;  %v2586_v49 = vadd.f32 1.0, %v5481_v48  ;;  %v2338_v29 = vadd.f32 %v7175_v59, %v2254_v12  ;;  %v2252_v25 = vpop.xlane.xlu0 %2251 }
 0x41e   :  { %v5485_v18 = vpop.eup %5484  ;;  %5504 = vpow2.f32 %v4517_v21  ;;  %v2587_v37 = vadd.f32 1.0, %v5483_v38  ;;  %v2339_v0 = vadd.f32 %v7175_v59, %v2256_v47  ;;  %v4521_v48 = vmul.f32 -1.442695, %v2332_v63  ;;  %v2262_v38 = vpop.xlane.xlu1 %2261 }
 0x41f   :  { %v5487_v4 = vpop.eup %5486  ;;  %v3023_v33 = vadd.f32 1.0, %v5485_v18  ;;  %5506 = vpow2.f32 %v4577_v34  ;;  %v2336_v45 = vadd.f32 %v7175_v59, %v2250_v14  ;;  %v4522_v61 = vmul.f32 -1.442695, %v2333_v31 }
 0x420   :  { %v5489_v23 = vpop.eup %5488  ;;  %v3020_v1 = vadd.f32 1.0, %v5487_v4  ;;  %5508 = vrcp.f32 %v2586_v49  ;;  %v4527_v4 = vmul.f32 -1.442695, %v2338_v29 }
 0x421   :  { %v5491_v15 = vpop.eup %5490  ;;  %5510 = vrcp.f32 %v3023_v33  ;;  %v2773_v22 = vadd.f32 %v5489_v23, %v463_v30  ;;  %v2337_v33 = vadd.f32 %v7175_v59, %v2252_v25  ;;  %v4528_v23 = vmul.f32 -1.442695, %v2339_v0 }
 0x422   :  { %v5493_v56 = vpop.eup %5492  ;;  %5512 = vrcp.f32 %v3020_v1  ;;  %v3021_v43 = vadd.f32 1.0, %v5491_v15  ;;  %v2342_v1 = vadd.f32 %v7175_v59, %v2262_v38  ;;  %v4525_v30 = vmul.f32 -1.442695, %v2336_v45 }
 0x423   :  { %v5495_v11 = vpop.eup %5494  ;;  %v3026_v62 = vadd.f32 1.0, %v5493_v56  ;;  %5514 = vrcp.f32 %v2587_v37  ;;  %v4578_v46 = vmul.f32 -1.442695, %v2773_v22  ;;  %v4526_v6 = vmul.f32 -1.442695, %v2337_v33 }
 0x424   :  { %v5497_v27 = vpop.eup %5496  ;;  %5516 = vrcp.f32 %v3021_v43  ;;  %v3027_v3 = vadd.f32 1.0, %v5495_v11  ;;  %v4531_v12 = vmul.f32 -1.442695, %v2342_v1 }
 0x425   :  { %v5499_v50 = vpop.eup %5498  ;;  %5518 = vrcp.f32 %v3026_v62  ;;  %v3024_v36 = vadd.f32 1.0, %v5497_v27  ;;  %v466_v62 = vadd.f32 %v7192_v58, %v6849_v26 }
 0x426   :  { %v5501_v2 = vpop.eup %5500  ;;  %5520 = vrcp.f32 %v3027_v3  ;;  %v3025_v39 = vadd.f32 1.0, %v5499_v50 }
 0x427   :  { %v5503_v55 = vpop.eup %5502  ;;  %5522 = vrcp.f32 %v3024_v36  ;;  %v3030_v9 = vadd.f32 1.0, %v5501_v2 }
 0x428   :  { %v5505_v10 = vpop.eup %5504  ;;  %5524 = vrcp.f32 %v3025_v39  ;;  %v3031_v52 = vadd.f32 1.0, %v5503_v55 }
 0x429   :  { %v5507_v19 = vpop.eup %5506  ;;  %5526 = vrcp.f32 %v3030_v9  ;;  %v2584_v5 = vadd.f32 1.0, %v5505_v10 }
 0x42a   :  { %v5509_v32 = vpop.eup %5508  ;;  %5528 = vrcp.f32 %v3031_v52  ;;  %v3028_v17 = vadd.f32 1.0, %v5507_v19  ;;  %v2258_v19 = vpop.xlane.xlu1 %2257 }
 0x42b   :  { %v5511_v44 = vpop.eup %5510  ;;  %5530 = vpow2.f32 %v4578_v46  ;;  %v2778_v57 = vadd.f32 %v5509_v32, %v468_v40  ;;  %v2264_v46 = vpop.xlane.xlu0 %2263  ;;  %v2340_v63 = vadd.f32 %v7175_v59, %v2258_v19 }
 0x42c   :  { %v5513_v28 = vpop.eup %5512  ;;  %3216 = vst.msk [vmem:[%s7451_s13 + $0xf8] sm:$0xff] %vm3184_vm0, %v5511_v44  ;;  %5532 = vrcp.f32 %v3028_v17 }
 0x42d   :  { %v5515_v13 = vpop.eup %5514  ;;  %3213 = vst.msk [vmem:[%s7451_s13 + $0xe0] sm:$0xff] %vm3184_vm0, %v5513_v28  ;;  %v4583_v24 = vmul.f32 -1.442695, %v2778_v57  ;;  %5534 = vrcp.f32 %v2584_v5 }
 0x42e   :  { %v5517_v8 = vpop.eup %5516  ;;  %v2779_v21 = vadd.f32 %v5515_v13, %v469_v54  ;;  %5536 = vpow2.f32 %v4518_v51  ;;  %v2343_v51 = vadd.f32 %v7175_v59, %v2264_v46  ;;  %v467_v13 = vadd.f32 %v7192_v58, %v6855_v53 }
 0x42f   :  { %v5519_v7 = vpop.eup %5518  ;;  %3214 = vst.msk [vmem:[%s7451_s13 + $0xe8] sm:$0xff] %vm3184_vm0, %v5517_v8  ;;  %5538 = vpow2.f32 %v4583_v24  ;;  %v2260_v28 = vpop.xlane.xlu0 %2259 }
 0x430   :  { %v5521_v34 = vpop.eup %5520  ;;  %3219 = vst.msk [vmem:[%s7451_s13 + $0x110] sm:$0xff] %vm3184_vm0, %v5519_v7  ;;  %v4584_v49 = vmul.f32 -1.442695, %v2779_v21  ;;  %5540 = vpow2.f32 %v4523_v42  ;;  %v2270_v24 = vpop.xlane.xlu1 %2269  ;;  %v4532_v8 = vmul.f32 -1.442695, %v2343_v51  ;;  %v2341_v21 = vadd.f32 %v7175_v59, %v2260_v28 }
 0x431   :  { %v5523_v18 = vpop.eup %5522  ;;  %3220 = vst.msk [vmem:[%s7451_s13 + $0x118] sm:$0xff] %vm3184_vm0, %v5521_v34  ;;  %5542 = vpow2.f32 %v4524_v60  ;;  %v4529_v7 = vmul.f32 -1.442695, %v2340_v63  ;;  %v2346_v53 = vadd.f32 %v7175_v59, %v2270_v24  ;;  %v7472_v34 = vld [vmem:[#allocation13_spill] sm:$0xff] }
 0x432   :  { %v5525_v37 = vpop.eup %5524  ;;  %3217 = vst.msk [vmem:[%s7451_s13 + $0x100] sm:$0xff] %vm3184_vm0, %v5523_v18  ;;  %5544 = vpow2.f32 %v4584_v49  ;;  %v472_v49 = vadd.f32 %v7192_v58, %v7472_v34  ;;  %v4530_v33 = vmul.f32 -1.442695, %v2341_v21 }
 0x433   :  { %v5527_v15 = vpop.eup %5526  ;;  %3218 = vst.msk [vmem:[%s7451_s13 + $0x108] sm:$0xff] %vm3184_vm0, %v5525_v37  ;;  %5546 = vpow2.f32 %v4521_v48 }
 0x434   :  { %v5529_v56 = vpop.eup %5528  ;;  %3223 = vst.msk [vmem:[%s7451_s13 + $0x130] sm:$0xff] %vm3184_vm0, %v5527_v15  ;;  %5548 = vpow2.f32 %v4522_v61 }
 0x435   :  { %v5531_v43 = vpop.eup %5530  ;;  %3224 = vst.msk [vmem:[%s7451_s13 + $0x138] sm:$0xff] %vm3184_vm0, %v5529_v56  ;;  %5550 = vpow2.f32 %v4527_v4  ;;  %v7474_v56 = vld [vmem:[#allocation11_spill] sm:$0xff] }
 0x436   :  { %v5533_v11 = vpop.eup %5532  ;;  %v3029_v22 = vadd.f32 1.0, %v5531_v43  ;;  %5552 = vpow2.f32 %v4528_v23  ;;  %v7473_v23 = vld [vmem:[#allocation14_spill] sm:$0xff]  ;;  %v470_v43 = vadd.f32 %v7192_v58, %v7474_v56 }
 0x437   :  { %v5535_v27 = vpop.eup %5534  ;;  %3221 = vst.msk [vmem:[%s7451_s13 + $0x120] sm:$0xff] %vm3184_vm0, %v5533_v11  ;;  %5554 = vpow2.f32 %v4525_v30  ;;  %v473_v1 = vadd.f32 %v7192_v58, %v7473_v23 }
 0x438   :  { %v5537_v3 = vpop.eup %5536  ;;  %5556 = vrcp.f32 %v3029_v22  ;;  %v2776_v50 = vadd.f32 %v5535_v27, %v466_v62  ;;  %v7475_v62 = vld [vmem:[#allocation12_spill] sm:$0xff] }
 0x439   :  { %v5539_v36 = vpop.eup %5538  ;;  %v2585_v2 = vadd.f32 1.0, %v5537_v3  ;;  %5558 = vpow2.f32 %v4526_v6  ;;  %v4535_v6 = vmul.f32 -1.442695, %v2346_v53  ;;  %v471_v22 = vadd.f32 %v7192_v58, %v7475_v62  ;;  %v2266_v53 = vpop.xlane.xlu1 %2265 }
 0x43a   :  { %v5541_v39 = vpop.eup %5540  ;;  %v3034_v35 = vadd.f32 1.0, %v5539_v36  ;;  %v4581_v55 = vmul.f32 -1.442695, %v2776_v50  ;;  %5560 = vpow2.f32 %v4531_v12  ;;  %v7476_v50 = vld [vmem:[#allocation17_spill] sm:$0xff] }
 0x43b   :  { %v5543_v26 = vpop.eup %5542  ;;  %5562 = vrcp.f32 %v2585_v2  ;;  %v2590_v9 = vadd.f32 1.0, %v5541_v39  ;;  %v476_v36 = vadd.f32 %v7192_v58, %v7476_v50  ;;  %v2344_v50 = vadd.f32 %v7175_v59, %v2266_v53 }
 0x43c   :  { %v5545_v10 = vpop.eup %5544  ;;  %5564 = vrcp.f32 %v3034_v35  ;;  %v2591_v52 = vadd.f32 1.0, %v5543_v26  ;;  %v7477_v35 = vld [vmem:[#allocation18_spill] sm:$0xff] }
 0x43d   :  { %v5547_v20 = vpop.eup %5546  ;;  %v3035_v47 = vadd.f32 1.0, %v5545_v10  ;;  %5566 = vpow2.f32 %v4581_v55  ;;  %v477_v55 = vadd.f32 %v7192_v58, %v7477_v35  ;;  %v7478_v10 = vld [vmem:[#allocation15_spill] sm:$0xff]  ;;  %v2274_v56 = vpop.xlane.xlu1 %2273 }
 0x43e   :  { %v5549_v40 = vpop.eup %5548  ;;  %5568 = vrcp.f32 %v2590_v9  ;;  %v2588_v5 = vadd.f32 1.0, %v5547_v20 }
 0x43f   :  { %v5551_v16 = vpop.eup %5550  ;;  %5570 = vrcp.f32 %v3035_v47  ;;  %v2589_v14 = vadd.f32 1.0, %v5549_v40  ;;  %v7479_v40 = vld [vmem:[#allocation16_spill] sm:$0xff] }
 0x440   :  { %v5553_v32 = vpop.eup %5552  ;;  %5572 = vrcp.f32 %v2591_v52  ;;  %v2594_v17 = vadd.f32 1.0, %v5551_v16  ;;  %v474_v52 = vadd.f32 %v7192_v58, %v7478_v10 }
 0x441   :  { %v5555_v44 = vpop.eup %5554  ;;  %5574 = vrcp.f32 %v2588_v5  ;;  %v2595_v57 = vadd.f32 1.0, %v5553_v32  ;;  %v475_v5 = vadd.f32 %v7192_v58, %v7479_v40 }
 0x442   :  { %v5557_v54 = vpop.eup %5556  ;;  %5576 = vrcp.f32 %v2589_v14  ;;  %v2592_v42 = vadd.f32 1.0, %v5555_v44 }
 0x443   :  { %v5559_v31 = vpop.eup %5558  ;;  %3222 = vst.msk [vmem:[%s7451_s13 + $0x128] sm:$0xff] %vm3184_vm0, %v5557_v54  ;;  %5578 = vrcp.f32 %v2594_v17  ;;  %v7480_v17 = vld [vmem:[#allocation20_spill] sm:$0xff] }
 0x444   :  { %v5561_v60 = vpop.eup %5560  ;;  %5580 = vrcp.f32 %v2595_v57  ;;  %v2593_v29 = vadd.f32 1.0, %v5559_v31  ;;  %v480_v51 = vadd.f32 %v7192_v58, %v7480_v17 }
 0x445   :  { %v5563_v0 = vpop.eup %5562  ;;  %5582 = vrcp.f32 %v2592_v42  ;;  %v2598_v25 = vadd.f32 1.0, %v5561_v60  ;;  %v2272_v42 = vpop.xlane.xlu0 %2271 }
 0x446   :  { %v5565_v48 = vpop.eup %5564  ;;  %v2777_v45 = vadd.f32 %v5563_v0, %v467_v13  ;;  %5584 = vrcp.f32 %v2593_v29 }
 0x447   :  { %v5567_v38 = vpop.eup %5566  ;;  %3227 = vst.msk [vmem:[%s7451_s13 + $0x150] sm:$0xff] %vm3184_vm0, %v5565_v48  ;;  %5586 = vrcp.f32 %v2598_v25 }
 0x448   :  { %v5569_v61 = vpop.eup %5568  ;;  %v3032_v18 = vadd.f32 1.0, %v5567_v38  ;;  %v4582_v4 = vmul.f32 -1.442695, %v2777_v45  ;;  %5588 = vpow2.f32 %v4532_v8 }
 0x449   :  { %v5571_v37 = vpop.eup %5570  ;;  %v2782_v15 = vadd.f32 %v5569_v61, %v472_v49  ;;  %5590 = vpow2.f32 %v4529_v7  ;;  %v2268_v49 = vpop.xlane.xlu0 %2267 }
 0x44a   :  { %v5573_v30 = vpop.eup %5572  ;;  %3228 = vst.msk [vmem:[%s7451_s13 + $0x158] sm:$0xff] %vm3184_vm0, %v5571_v37  ;;  %5592 = vrcp.f32 %v3032_v18 }
 0x44b   :  { %v5575_v11 = vpop.eup %5574  ;;  %5594 = vpow2.f32 %v4582_v4  ;;  %v4587_v12 = vmul.f32 -1.442695, %v2782_v15  ;;  %v2783_v27 = vadd.f32 %v5573_v30, %v473_v1 }
 0x44c   :  { %v5577_v3 = vpop.eup %5576  ;;  %v2780_v2 = vadd.f32 %v5575_v11, %v470_v43  ;;  %5596 = vpow2.f32 %v4530_v33  ;;  %v2347_v11 = vadd.f32 %v7175_v59, %v2272_v42 }
 0x44d   :  { %v5579_v39 = vpop.eup %5578  ;;  %5598 = vpow2.f32 %v4587_v12  ;;  %v4588_v26 = vmul.f32 -1.442695, %v2783_v27  ;;  %v2781_v9 = vadd.f32 %v5577_v3, %v471_v22  ;;  %v2276_v62 = vpop.xlane.xlu0 %2275 }
 0x44e   :  { %v5581_v46 = vpop.eup %5580  ;;  %v4585_v20 = vmul.f32 -1.442695, %v2780_v2  ;;  %v2786_v47 = vadd.f32 %v5579_v39, %v476_v36  ;;  %5600 = vpow2.f32 %v4535_v6  ;;  %v481_v2 = vadd.f32 %v7192_v58, %v6929_v41 }
 0x44f   :  { %v5583_v19 = vpop.eup %5582  ;;  %5602 = vpow2.f32 %v4588_v26  ;;  %v4586_v16 = vmul.f32 -1.442695, %v2781_v9  ;;  %v2787_v14 = vadd.f32 %v5581_v46, %v477_v55  ;;  %v4536_v9 = vmul.f32 -1.442695, %v2347_v11 }
 0x450   :  { %v5585_v32 = vpop.eup %5584  ;;  %5604 = vpow2.f32 %v4585_v20  ;;  %v4591_v44 = vmul.f32 -1.442695, %v2786_v47  ;;  %v2784_v57 = vadd.f32 %v5583_v19, %v474_v52  ;;  %v2345_v46 = vadd.f32 %v7175_v59, %v2268_v49  ;;  %v7481_v52 = vld [vmem:[#allocation19_spill] sm:$0xff]  ;;  %v2278_v19 = vpop.xlane.xlu1 %2277 }
 0x451   :  { %v5587_v63 = vpop.eup %5586  ;;  %5606 = vpow2.f32 %v4586_v16  ;;  %v4592_v28 = vmul.f32 -1.442695, %v2787_v14  ;;  %v2785_v54 = vadd.f32 %v5585_v32, %v475_v5  ;;  %v478_v20 = vadd.f32 %v7192_v58, %v7481_v52  ;;  %v7482_v5 = vld [vmem:[#allocation21_spill] sm:$0xff]  ;;  %v2280_v32 = vpop.xlane.xlu0 %2279 }
 0x452   :  { %v5589_v31 = vpop.eup %5588  ;;  %5608 = vpow2.f32 %v4591_v44  ;;  %v4589_v13 = vmul.f32 -1.442695, %v2784_v57  ;;  %v2790_v24 = vadd.f32 %v5587_v63, %v480_v51  ;;  %v479_v41 = vadd.f32 %v7192_v58, %v7482_v5 }
 0x453   :  { %v5591_v60 = vpop.eup %5590  ;;  %5610 = vpow2.f32 %v4592_v28  ;;  %v4590_v29 = vmul.f32 -1.442695, %v2785_v54  ;;  %v2599_v8 = vadd.f32 1.0, %v5589_v31  ;;  %v4533_v16 = vmul.f32 -1.442695, %v2344_v50 }
 0x454   :  { %v5593_v21 = vpop.eup %5592  ;;  %5612 = vpow2.f32 %v4589_v13  ;;  %v4595_v0 = vmul.f32 -1.442695, %v2790_v24  ;;  %v2596_v7 = vadd.f32 1.0, %v5591_v60  ;;  %v2348_v14 = vadd.f32 %v7175_v59, %v2274_v56 }
 0x455   :  { %v5595_v25 = vpop.eup %5594  ;;  %3225 = vst.msk [vmem:[%s7451_s13 + $0x140] sm:$0xff] %vm3184_vm0, %v5593_v21  ;;  %5614 = vpow2.f32 %v4590_v29  ;;  %v2349_v57 = vadd.f32 %v7175_v59, %v2276_v62  ;;  %v4534_v28 = vmul.f32 -1.442695, %v2345_v46  ;;  %v2350_v54 = vadd.f32 %v7175_v59, %v2278_v19 }
 0x456   :  { %v5597_v48 = vpop.eup %5596  ;;  %v3033_v45 = vadd.f32 1.0, %v5595_v25  ;;  %5616 = vpow2.f32 %v4595_v0  ;;  %v2351_v24 = vadd.f32 %v7175_v59, %v2280_v32  ;;  %v4537_v29 = vmul.f32 -1.442695, %v2348_v14  ;;  %v7486_v32 = vld [vmem:[#allocation24_spill] sm:$0xff] }
 0x457   :  { %v5599_v38 = vpop.eup %5598  ;;  %5618 = vrcp.f32 %v2599_v8  ;;  %v2597_v34 = vadd.f32 1.0, %v5597_v48  ;;  %v4538_v0 = vmul.f32 -1.442695, %v2349_v57  ;;  %v4539_v59 = vmul.f32 -1.442695, %v2350_v54  ;;  %v7487_v57 = vld [vmem:[#allocation25_spill] sm:$0xff] }
 0x458   :  { %v5601_v61 = vpop.eup %5600  ;;  %5620 = vrcp.f32 %v3033_v45  ;;  %v3038_v18 = vadd.f32 1.0, %v5599_v38  ;;  %v4540_v48 = vmul.f32 -1.442695, %v2351_v24  ;;  %v7488_v54 = vld [vmem:[#allocation28_spill] sm:$0xff] }
 0x459   :  { %v5603_v4 = vpop.eup %5602  ;;  %5622 = vrcp.f32 %v2596_v7  ;;  %v2602_v35 = vadd.f32 1.0, %v5601_v61 }
 0x45a   :  { %v5605_v33 = vpop.eup %5604  ;;  %5624 = vrcp.f32 %v3038_v18  ;;  %v3039_v37 = vadd.f32 1.0, %v5603_v4 }
 0x45b   :  { %v5607_v23 = vpop.eup %5606  ;;  %v3036_v1 = vadd.f32 1.0, %v5605_v33  ;;  %5626 = vrcp.f32 %v2597_v34  ;;  %v7483_v34 = vld [vmem:[#allocation23_spill] sm:$0xff] }
 0x45c   :  { %v5609_v15 = vpop.eup %5608  ;;  %5628 = vrcp.f32 %v3039_v37  ;;  %v3037_v30 = vadd.f32 1.0, %v5607_v23  ;;  %v484_v49 = vadd.f32 %v7192_v58, %v7483_v34 }
 0x45d   :  { %v5611_v43 = vpop.eup %5610  ;;  %5630 = vrcp.f32 %v3036_v1  ;;  %v3042_v6 = vadd.f32 1.0, %v5609_v15 }
 0x45e   :  { %v5613_v22 = vpop.eup %5612  ;;  %5632 = vrcp.f32 %v3037_v30  ;;  %v3043_v12 = vadd.f32 1.0, %v5611_v43 }
 0x45f   :  { %v5615_v27 = vpop.eup %5614  ;;  %5634 = vrcp.f32 %v3042_v6  ;;  %v3040_v3 = vadd.f32 1.0, %v5613_v22 }
 0x460   :  { %v5617_v36 = vpop.eup %5616  ;;  %5636 = vrcp.f32 %v3043_v12  ;;  %v3041_v39 = vadd.f32 1.0, %v5615_v27 }
 0x461   :  { %v5619_v55 = vpop.eup %5618  ;;  %5638 = vrcp.f32 %v3040_v3  ;;  %v3046_v26 = vadd.f32 1.0, %v5617_v36 }
 0x462   :  { %v5621_v10 = vpop.eup %5620  ;;  %5640 = vrcp.f32 %v3041_v39  ;;  %v2791_v47 = vadd.f32 %v5619_v55, %v481_v2  ;;  %v7484_v55 = vld [vmem:[#allocation26_spill] sm:$0xff] }
 0x463   :  { %v5623_v40 = vpop.eup %5622  ;;  %3226 = vst.msk [vmem:[%s7451_s13 + $0x148] sm:$0xff] %vm3184_vm0, %v5621_v10  ;;  %5642 = vrcp.f32 %v3046_v26  ;;  %v485_v26 = vadd.f32 %v7192_v58, %v7484_v55 }
 0x464   :  { %v5625_v17 = vpop.eup %5624  ;;  %v4596_v51 = vmul.f32 -1.442695, %v2791_v47  ;;  %v2788_v44 = vadd.f32 %v5623_v40, %v478_v20  ;;  %5644 = vrcp.f32 %v2602_v35  ;;  %v7485_v47 = vld [vmem:[#allocation22_spill] sm:$0xff] }
 0x465   :  { %v5627_v63 = vpop.eup %5626  ;;  %3231 = vst.msk [vmem:[%s7451_s13 + $0x170] sm:$0xff] %vm3184_vm0, %v5625_v17  ;;  %5646 = vpow2.f32 %v4536_v9  ;;  %v482_v19 = vadd.f32 %v7192_v58, %v7485_v47  ;;  %v483_v17 = vadd.f32 %v7192_v58, %v7486_v32 }
 0x466   :  { %v5629_v42 = vpop.eup %5628  ;;  %5648 = vpow2.f32 %v4596_v51  ;;  %v4593_v31 = vmul.f32 -1.442695, %v2788_v44  ;;  %v2789_v13 = vadd.f32 %v5627_v63, %v479_v41  ;;  %v486_v63 = vadd.f32 %v7192_v58, %v7487_v57 }
 0x467   :  { %v5631_v60 = vpop.eup %5630  ;;  %3232 = vst.msk [vmem:[%s7451_s13 + $0x178] sm:$0xff] %vm3184_vm0, %v5629_v42  ;;  %5650 = vpow2.f32 %v4533_v16  ;;  %v418_v16 = vpop.xlane.xlu1 %417  ;;  %v487_v42 = vadd.f32 %v7192_v58, %v7488_v54 }
 0x468   :  { %v5633_v8 = vpop.eup %5632  ;;  %3229 = vst.msk [vmem:[%s7451_s13 + $0x160] sm:$0xff] %vm3184_vm0, %v5631_v60  ;;  %5652 = vpow2.f32 %v4593_v31  ;;  %v4594_v21 = vmul.f32 -1.442695, %v2789_v13  ;;  %v489_v24 = vadd.f32 %v7192_v58, %v418_v16 }
 0x469   :  { %v5635_v25 = vpop.eup %5634  ;;  %3230 = vst.msk [vmem:[%s7451_s13 + $0x168] sm:$0xff] %vm3184_vm0, %v5633_v8  ;;  %5654 = vpow2.f32 %v4534_v28 }
 0x46a   :  { %v5637_v7 = vpop.eup %5636  ;;  %3235 = vst.msk [vmem:[%s7451_s13 + $0x190] sm:$0xff] %vm3184_vm0, %v5635_v25  ;;  %5656 = vpow2.f32 %v4594_v21 }
 0x46b   :  { %v5639_v45 = vpop.eup %5638  ;;  %3236 = vst.msk [vmem:[%s7451_s13 + $0x198] sm:$0xff] %vm3184_vm0, %v5637_v7  ;;  %5658 = vpow2.f32 %v4537_v29  ;;  %v7489_v29 = vld [vmem:[#allocation27_spill] sm:$0xff] }
 0x46c   :  { %v5641_v53 = vpop.eup %5640  ;;  %3233 = vst.msk [vmem:[%s7451_s13 + $0x180] sm:$0xff] %vm3184_vm0, %v5639_v45  ;;  %5660 = vpow2.f32 %v4538_v0  ;;  %v488_v8 = vadd.f32 %v7192_v58, %v7489_v29 }
 0x46d   :  { %v5643_v38 = vpop.eup %5642  ;;  %3234 = vst.msk [vmem:[%s7451_s13 + $0x188] sm:$0xff] %vm3184_vm0, %v5641_v53  ;;  %5662 = vpow2.f32 %v4539_v59 }
 0x46e   :  { %v5645_v61 = vpop.eup %5644  ;;  %3239 = vst.msk [vmem:[%s7451_s13 + $0x1b0] sm:$0xff] %vm3184_vm0, %v5643_v38  ;;  %5664 = vpow2.f32 %v4540_v48 }
 0x46f   :  { %v5647_v18 = vpop.eup %5646  ;;  %v2794_v4 = vadd.f32 %v5645_v61, %v484_v49 }
 0x470   :  { %v5649_v33 = vpop.eup %5648  ;;  %v2603_v37 = vadd.f32 1.0, %v5647_v18 }
 0x471   :  { %v5651_v23 = vpop.eup %5650  ;;  %v3047_v1 = vadd.f32 1.0, %v5649_v33  ;;  %v4599_v15 = vmul.f32 -1.442695, %v2794_v4 }
 0x472   :  { %v5653_v30 = vpop.eup %5652  ;;  %5666 = vrcp.f32 %v2603_v37  ;;  %v2600_v56 = vadd.f32 1.0, %v5651_v23 }
 0x473   :  { %v5655_v43 = vpop.eup %5654  ;;  %5668 = vrcp.f32 %v3047_v1  ;;  %v3044_v6 = vadd.f32 1.0, %v5653_v30 }
 0x474   :  { %v5657_v11 = vpop.eup %5656  ;;  %5670 = vpow2.f32 %v4599_v15  ;;  %v2601_v62 = vadd.f32 1.0, %v5655_v43 }
 0x475   :  { %v5659_v22 = vpop.eup %5658  ;;  %5672 = vrcp.f32 %v3044_v6  ;;  %v3045_v12 = vadd.f32 1.0, %v5657_v11 }
 0x476   :  { %v5661_v27 = vpop.eup %5660  ;;  %5674 = vrcp.f32 %v2600_v56  ;;  %v2604_v3 = vadd.f32 1.0, %v5659_v22 }
 0x477   :  { %v5663_v50 = vpop.eup %5662  ;;  %5676 = vrcp.f32 %v3045_v12  ;;  %v2605_v36 = vadd.f32 1.0, %v5661_v27 }
 0x478   :  { %v5665_v2 = vpop.eup %5664  ;;  %5678 = vrcp.f32 %v2601_v62  ;;  %v2606_v39 = vadd.f32 1.0, %v5663_v50 }
 0x479   :  { %5680 = vrcp.f32 %v2604_v3  ;;  %v2607_v35 = vadd.f32 1.0, %v5665_v2 }
 0x47a   :  { %5682 = vrcp.f32 %v2605_v36 }
 0x47b   :  { %5684 = vrcp.f32 %v2606_v39 }
 0x47c   :  { %v5667_v9 = vpop.eup %5666  ;;  %5686 = vrcp.f32 %v2607_v35 }
 0x47d   :  { %v5669_v46 = vpop.eup %5668  ;;  %v2795_v10 = vadd.f32 %v5667_v9, %v485_v26 }
 0x47e   :  { %v5671_v52 = vpop.eup %5670  ;;  %3240 = vst.msk [vmem:[%s7451_s13 + $0x1b8] sm:$0xff] %vm3184_vm0, %v5669_v46 }
 0x47f   :  { %v5673_v20 = vpop.eup %5672  ;;  %v3050_v40 = vadd.f32 1.0, %v5671_v52  ;;  %v4600_v5 = vmul.f32 -1.442695, %v2795_v10 }
 0x480   :  { %v5675_v41 = vpop.eup %5674  ;;  %3237 = vst.msk [vmem:[%s7451_s13 + $0x1a0] sm:$0xff] %vm3184_vm0, %v5673_v20 }
 0x481   :  { %v5677_v14 = vpop.eup %5676  ;;  %5688 = vrcp.f32 %v3050_v40  ;;  %v2792_v51 = vadd.f32 %v5675_v41, %v482_v19 }
 0x482   :  { %v5679_v44 = vpop.eup %5678  ;;  %3238 = vst.msk [vmem:[%s7451_s13 + $0x1a8] sm:$0xff] %vm3184_vm0, %v5677_v14  ;;  %5690 = vpow2.f32 %v4600_v5 }
 0x483   :  { %v5681_v28 = vpop.eup %5680  ;;  %v4597_v31 = vmul.f32 -1.442695, %v2792_v51  ;;  %v2793_v13 = vadd.f32 %v5679_v44, %v483_v17 }
 0x484   :  { %v5683_v60 = vpop.eup %5682  ;;  %v2796_v21 = vadd.f32 %v5681_v28, %v486_v63 }
 0x485   :  { %v5685_v0 = vpop.eup %5684  ;;  %5692 = vpow2.f32 %v4597_v31  ;;  %v4598_v25 = vmul.f32 -1.442695, %v2793_v13  ;;  %v2797_v59 = vadd.f32 %v5683_v60, %v487_v42 }
 0x486   :  { %v5687_v7 = vpop.eup %5686  ;;  %v4601_v48 = vmul.f32 -1.442695, %v2796_v21  ;;  %v2798_v45 = vadd.f32 %v5685_v0, %v488_v8 }
 0x487   :  { %5694 = vpow2.f32 %v4598_v25  ;;  %v4602_v53 = vmul.f32 -1.442695, %v2797_v59  ;;  %v2799_v38 = vadd.f32 %v5687_v7, %v489_v24 }
 0x488   :  { %5696 = vpow2.f32 %v4601_v48  ;;  %v4603_v34 = vmul.f32 -1.442695, %v2798_v45 }
 0x489   :  { %5698 = vpow2.f32 %v4602_v53  ;;  %v4604_v49 = vmul.f32 -1.442695, %v2799_v38 }
 0x48a   :  { %5700 = vpow2.f32 %v4603_v34 }
 0x48b   :  { %v5689_v61 = vpop.eup %5688  ;;  %5702 = vpow2.f32 %v4604_v49 }
 0x48c   :  { %v5691_v18 = vpop.eup %5690  ;;  %3243 = vst.msk [vmem:[%s7451_s13 + $0x1d0] sm:$0xff] %vm3184_vm0, %v5689_v61 }
 0x48d   :  { %v3051_v58 = vadd.f32 1.0, %v5691_v18 }
 0x48f   :  { %v5693_v4 = vpop.eup %5692  ;;  %5704 = vrcp.f32 %v3051_v58 }
 0x490   :  { %v3048_v33 = vadd.f32 1.0, %v5693_v4 }
 0x491   :  { %v5695_v37 = vpop.eup %5694 }
 0x492   :  { %v5697_v23 = vpop.eup %5696  ;;  %5706 = vrcp.f32 %v3048_v33  ;;  %v3049_v1 = vadd.f32 1.0, %v5695_v37 }
 0x493   :  { %v5699_v15 = vpop.eup %5698  ;;  %v3052_v30 = vadd.f32 1.0, %v5697_v23 }
 0x494   :  { %v5701_v56 = vpop.eup %5700  ;;  %5708 = vrcp.f32 %v3049_v1  ;;  %v3053_v43 = vadd.f32 1.0, %v5699_v15 }
 0x495   :  { %v5703_v6 = vpop.eup %5702  ;;  %5710 = vrcp.f32 %v3052_v30  ;;  %v3054_v11 = vadd.f32 1.0, %v5701_v56 }
 0x496   :  { %5712 = vrcp.f32 %v3053_v43  ;;  %v3055_v62 = vadd.f32 1.0, %v5703_v6 }
 0x497   :  { %5714 = vrcp.f32 %v3054_v11 }
 0x498   :  { %5716 = vrcp.f32 %v3055_v62 }
 0x499   :  { %v5705_v22 = vpop.eup %5704 }
 0x49a   :  { %3244 = vst.msk [vmem:[%s7451_s13 + $0x1d8] sm:$0xff] %vm3184_vm0, %v5705_v22 }
 0x49c   :  { %v5707_v12 = vpop.eup %5706 }
 0x49d   :  { %3241 = vst.msk [vmem:[%s7451_s13 + $0x1c0] sm:$0xff] %vm3184_vm0, %v5707_v12 }
 0x49e   :  { %v5709_v27 = vpop.eup %5708 }
 0x49f   :  { %v5711_v3 = vpop.eup %5710  ;;  %3242 = vst.msk [vmem:[%s7451_s13 + $0x1c8] sm:$0xff] %vm3184_vm0, %v5709_v27 }
 0x4a0   :  { %v5713_v50 = vpop.eup %5712  ;;  %3245 = vst.msk [vmem:[%s7451_s13 + $0x1e0] sm:$0xff] %vm3184_vm0, %v5711_v3 }
 0x4a1   :  { %v5715_v36 = vpop.eup %5714  ;;  %3246 = vst.msk [vmem:[%s7451_s13 + $0x1e8] sm:$0xff] %vm3184_vm0, %v5713_v50 }
 0x4a2   :  { %v5717_v2 = vpop.eup %5716  ;;  %3247 = vst.msk [vmem:[%s7451_s13 + $0x1f0] sm:$0xff] %vm3184_vm0, %v5715_v36 }
 0x4a3   :  { %3248 = vst.msk [vmem:[%s7451_s13 + $0x1f8] sm:$0xff] %vm3184_vm0, %v5717_v2 }
 0x4a4   :  { %4412 = vsyncpa [#allocation5], 1 }
 0x4a5   :  { %4413 = vsyncpa [#allocation7], 1 }

</bundles_post_ra>
